<compile_context>
chip_gen: v7x
topology: tpu7x:2x2x1
jax: 0.10.0
libtpu: 0.0.40
codegen_flags: <defaults>
</compile_context>

<pallas_src>
import jax
import jax.numpy as jnp
from jax.experimental import pallas as pl
from jax.experimental.pallas import tpu as pltpu

_LANE = 128


def _dropout2d_kernel(x_ref, mask_ref, o_ref):
    # x_ref / o_ref: (1, TT, L) tile, L = C1*C2 (lane-dense, multiple of 128).
    # mask_ref:      (1, 1, L) pre-scaled keep mask: 0.0 (dropped) or 1/(1-p).
    # Broadcast over the time (sublane) axis only — pure VPU multiply with
    # full-width (unmasked) vector stores.
    o_ref[...] = x_ref[...] * mask_ref[...]


def _sublane_multiple(itemsize):
    # Sub-32-bit dtypes pack along sublanes: f32 -> 8, bf16 -> 16, int8/fp8 -> 32.
    return max(8, 32 // max(int(itemsize), 1))


def _choose_time_tile(T, row_bytes, block_budget_bytes, sublane):
    """Largest time tile (multiple of `sublane`, or full T) within the budget."""
    tt = max(1, block_budget_bytes // max(row_bytes, 1))
    if tt >= T:
        return T
    return max(sublane, (tt // sublane) * sublane)


def dropout2d(x, drop_rate, key, training=True, *,
              block_budget_bytes=8 << 20,   # per-block VMEM budget (x4 double buffers)
              min_pallas_bytes=8 << 20,     # below this, stay on the fusable XLA path
              donate_input=False):
    """Pallas implementation of the SpeechBrain Dropout2d forward.

    x: (batch, time, channel1, channel2). Drops whole (batch, channel1) channels
    with probability `drop_rate` and rescales survivors by 1/(1-drop_rate)
    (training mode). Identity in eval mode.
    """
    drop_rate = float(drop_rate)  # must be static
    if not 0.0 <= drop_rate <= 1.0:
        raise ValueError(f"drop_rate must be in [0, 1], got {drop_rate}")
    if (not training) or drop_rate == 0.0:
        return x
    if drop_rate == 1.0:
        # Every channel dropped; 1/(1-p) is undefined — match PyTorch: zeros.
        return jnp.zeros_like(x)

    B, T, C1, C2 = x.shape
    L = C1 * C2
    itemsize = x.dtype.itemsize
    sublane = _sublane_multiple(itemsize)

    # Per-(batch, channel1) Bernoulli keep mask, pre-scaled by 1/(1-p).
    keep = jax.random.bernoulli(key, p=1.0 - drop_rate, shape=(B, C1))
    scale = (keep.astype(jnp.float32) / (1.0 - drop_rate)).astype(x.dtype)  # (B, C1)

    total_bytes = x.size * itemsize
    row_bytes = L * itemsize
    use_pallas = (
        total_bytes >= min_pallas_bytes            # amortize dispatch + pipeline warm-up
        and L % _LANE == 0                         # full-width vector stores (no vst.msk)
        and sublane * row_bytes <= block_budget_bytes  # a legal minimum tile fits the budget
    )
    if not use_pallas:
        # Plain XLA broadcast multiply: fuses with adjacent ops, handles any lane
        # width, and beats a standalone kernel at small sizes.
        return x * scale[:, None, :, None]

    # Lane-dense reshape (free: C1, C2 are trailing contiguous dims).
    x2 = x.reshape(B, T, L)
    # Expand mask to (B, 1, L): each c1 value repeated across its C2 lanes.
    mask = jnp.repeat(scale[:, None, :], C2, axis=-1)  # (B, 1, L)

    TT = _choose_time_tile(T, row_bytes, block_budget_bytes, sublane)
    # v7x shards the ("parallel","parallel") grid across 2 TensorCores: make sure a
    # single-batch input still yields >= 2 grid steps so both cores get work.
    if B == 1 and TT >= T and T > sublane:
        half = -(-T // 2)
        TT = min(T, -(-half // sublane) * sublane)
    grid = (B, pl.cdiv(T, TT))

    # Explicit VMEM limit derived from the chosen tile: 2 in-bufs + 2 out-bufs
    # + mask double-buffer + slack. Capped at 48 MiB => safe on v5e/v6e (128 MiB
    # physical, 16/32 MiB scoped defaults) and v7x (64 MiB per TC).
    block_bytes = TT * L * itemsize
    mask_bytes = L * itemsize
    vmem_limit = int(min(max(4 * block_bytes + 2 * mask_bytes + (2 << 20), 16 << 20),
                         48 << 20))

    out = pl.pallas_call(
        _dropout2d_kernel,
        out_shape=jax.ShapeDtypeStruct((B, T, L), x.dtype),
        grid=grid,
        in_specs=[
            pl.BlockSpec((1, TT, L), lambda b, t: (b, t, 0)),
            pl.BlockSpec((1, 1, L), lambda b, t: (b, 0, 0)),
        ],
        out_specs=pl.BlockSpec((1, TT, L), lambda b, t: (b, t, 0)),
        compiler_params=pltpu.CompilerParams(
            dimension_semantics=("parallel", "parallel"),
            vmem_limit_bytes=vmem_limit,
        ),
        # Dropout is elementwise-in-place-safe: alias x2 -> out only when the
        # caller actually donates the activation (otherwise XLA would insert a
        # defensive copy, adding HBM traffic).
        input_output_aliases=({0: 0} if donate_input else {}),
    )(x2, mask)

    return out.reshape(B, T, C1, C2)


def _reference(x, drop_rate, key):
    B, T, C1, C2 = x.shape
    if drop_rate >= 1.0:
        return jnp.zeros_like(x)
    keep = jax.random.bernoulli(key, p=1.0 - drop_rate, shape=(B, C1))
    scale = (keep.astype(jnp.float32) / (1.0 - drop_rate)).astype(x.dtype)
    return x * scale[:, None, :, None]


if __name__ == "__main__":
    key = jax.random.PRNGKey(0)
    k1, k2, k3, k4, kd = jax.random.split(key, 5)
    p = 0.5

    # Case 1: small module-scale shape — plain-XLA fast path.
    B, T, C1, C2 = 2, 8, 4, 16
    x_small = jax.random.normal(k1, (B, T, C1, C2), dtype=jnp.float32)
    out_small = jax.block_until_ready(dropout2d(x_small, p, kd))
    exp_small = _reference(x_small, p, kd)
    assert out_small.shape == x_small.shape and out_small.dtype == x_small.dtype
    assert jnp.allclose(out_small, exp_small, atol=1e-6), "small-path mismatch"

    # Case 2: speech-sized f32 input (16 MiB, L=256 lanes) — Pallas kernel path.
    B, T, C1, C2 = 4, 4096, 8, 32
    x_big = jax.random.normal(k2, (B, T, C1, C2), dtype=jnp.float32)
    out_big = jax.block_until_ready(dropout2d(x_big, p, kd))
    exp_big = _reference(x_big, p, kd)
    assert out_big.shape == x_big.shape and out_big.dtype == x_big.dtype
    assert jnp.allclose(out_big, exp_big, atol=1e-6), "pallas f32 path mismatch"

    # Case 3: bf16 through the Pallas path (forced dispatch) — exercises
    # dtype-aware sublane rounding and full-lane (L=128) stores.
    B, T, C1, C2 = 2, 512, 4, 32
    x_bf16 = jax.random.normal(k3, (B, T, C1, C2), dtype=jnp.float32).astype(jnp.bfloat16)
    out_bf16 = jax.block_until_ready(dropout2d(x_bf16, p, kd, min_pallas_bytes=0))
    exp_bf16 = _reference(x_bf16, p, kd)
    assert out_bf16.shape == x_bf16.shape and out_bf16.dtype == x_bf16.dtype
    assert jnp.allclose(out_bf16.astype(jnp.float32), exp_bf16.astype(jnp.float32),
                        atol=1e-2, rtol=1e-2), "pallas bf16 path mismatch"

    # Case 4: lane width not a multiple of 128 (L=96) — falls back to XLA path.
    B, T, C1, C2 = 2, 64, 4, 24
    x_odd = jax.random.normal(k4, (B, T, C1, C2), dtype=jnp.float32)
    out_odd = jax.block_until_ready(dropout2d(x_odd, p, kd))
    exp_odd = _reference(x_odd, p, kd)
    assert jnp.allclose(out_odd, exp_odd, atol=1e-6), "unaligned-lane fallback mismatch"

    # Eval mode is identity; p == 1.0 zeroes everything (no NaNs).
    out_eval = dropout2d(x_big, p, kd, training=False)
    assert out_eval is x_big
    out_all = dropout2d(x_small, 1.0, kd)
    assert jnp.all(out_all == 0.0) and not jnp.any(jnp.isnan(out_all))

    print("KERNEL_OK")
</pallas_src>

<mosaic_0001>
module attributes {stable_mosaic.version = 11 : i64} {
  func.func @_dropout2d_kernel(%arg0: i32, %arg1: i32, %arg2: memref<1x4096x256xf32, #tpu.memory_space<vmem>>, %arg3: memref<1x1x256xf32, #tpu.memory_space<vmem>>, %arg4: memref<1x4096x256xf32, #tpu.memory_space<vmem>>) attributes {dimension_semantics = [#tpu.dimension_semantics<parallel>, #tpu.dimension_semantics<parallel>], iteration_bounds = array<i64: 4, 1>, scalar_prefetch = 0 : i64, scratch_operands = 0 : i64, tpu.core_type = #tpu.core_type<tc>, window_params = [{transform_indices = @transform_0, window_bounds = array<i64: 1, 4096, 256>}, {transform_indices = @transform_1, window_bounds = array<i64: 1, 1, 256>}, {transform_indices = @transform_2, window_bounds = array<i64: 1, 4096, 256>}]} {
    %c0 = arith.constant 0 : index
    %c0_0 = arith.constant 0 : index
    %c0_1 = arith.constant 0 : index
    %0 = vector.load %arg2[%c0, %c0_0, %c0_1] : memref<1x4096x256xf32, #tpu.memory_space<vmem>>, vector<1x4096x256xf32>
    %c0_2 = arith.constant 0 : index
    %c0_3 = arith.constant 0 : index
    %c0_4 = arith.constant 0 : index
    %1 = vector.load %arg3[%c0_2, %c0_3, %c0_4] : memref<1x1x256xf32, #tpu.memory_space<vmem>>, vector<1x1x256xf32>
    %2 = vector.broadcast %1 : vector<1x1x256xf32> to vector<1x4096x256xf32>
    %3 = arith.mulf %0, %2 : vector<1x4096x256xf32>
    %c0_5 = arith.constant 0 : index
    %c0_6 = arith.constant 0 : index
    %c0_7 = arith.constant 0 : index
    %4 = vector.load %arg4[%c0_5, %c0_6, %c0_7] : memref<1x4096x256xf32, #tpu.memory_space<vmem>>, vector<1x4096x256xf32>
    tpu.vector_store %arg4[%c0_5, %c0_6, %c0_7], %3 {strides = array<i32>} : memref<1x4096x256xf32, #tpu.memory_space<vmem>>, vector<1x4096x256xf32>,
    return
  }
  func.func @transform_0(%arg0: i32, %arg1: i32) -> (i32, i32, i32) {
    %c0_i32 = arith.constant 0 : i32
    %c0_i32_0 = arith.constant 0 : i32
    return %arg0, %arg1, %c0_i32 : i32, i32, i32
  }
  func.func @transform_1(%arg0: i32, %arg1: i32) -> (i32, i32, i32) {
    %c0_i32 = arith.constant 0 : i32
    %c0_i32_0 = arith.constant 0 : i32
    %c0_i32_1 = arith.constant 0 : i32
    return %arg0, %c0_i32, %c0_i32_0 : i32, i32, i32
  }
  func.func @transform_2(%arg0: i32, %arg1: i32) -> (i32, i32, i32) {
    %c0_i32 = arith.constant 0 : i32
    %c0_i32_0 = arith.constant 0 : i32
    return %arg0, %arg1, %c0_i32 : i32, i32, i32
  }
}

</mosaic_0001>

<bundles_post_ra>
// kernel: tpu_custom_call.1
= control target key start
LH: loop header
LB: loop body
LE: loop exit
PB: predicated region body
PF: predicated region fallthrough
CT: control target
= control target key end

     0   :  { %7 = vsyncpa [#allocation3], 0  ;;  %s6995_s0 = inlined_call_operand.hbm [shape: f32[4,4096,256], index: 0, kind: input, shape index: {}]   ;;  %s6996_s1 = inlined_call_operand.hbm [shape: f32[4,1,256], index: 1, kind: input, shape index: {}]   ;;  %s6997_s2 = inlined_call_operand.hbm [shape: f32[4,4096,256], index: 2, kind: output, shape index: {}]  }
   0x1   :  { %9 = vsyncpa [#allocation3 + $0x1], 0 }
   0x2   :  { %10 = vsyncpa [#allocation6], 0 }
   0x3   :  { %12 = vsyncpa [#allocation6 + $0x1], 0 }
   0x4   :  { %13 = vsyncpa [#allocation4], 0 }
   0x5   :  { %15 = vsyncpa [#allocation4 + $0x1], 0  ;;  %s3695_s9 = smov 0   ;;  %s3697_s10 = smov 0  }
   0x6   :  { %s3699_s11 = smov 0   ;;  %s3701_s12 = smov 0  }
   0x7   :  { %s3703_s13 = smov 0   ;;  %s3705_s14 = smov 0  }
   0x8 LB: > { %s3432_s15 = sadd.s32 4294967295, %s3671_s14   ;;  %s3433_s16 = sadd.s32 4294967294, %s3671_s14   ;;  %s3671_s14 = sphi %s3705_s14, %s21_s14   ;;  %s3667_s13 = sphi %s3703_s13, %s7015_s13   ;;  %s3663_s12 = sphi %s3701_s12, %s7014_s12   ;;  %s3659_s11 = sphi %s3699_s11, %s7013_s11   ;;  %s3655_s10 = sphi %s3697_s10, %s7012_s10   ;;  %s3651_s9 = sphi %s3695_s9, %s7011_s9  }
   0x9   : > { %s33_s17 = sadd.s32 1, %s3667_s13  ;;  %s42_s18 = sadd.s32 1, %s3659_s11 }
   0xa   : > { %p35_p0 = scmp.ge.s32.totalorder %s33_s17, 4  ;;  %p49_p1 = scmp.ne.s32.totalorder %s3659_s11, %s3655_s10 }
   0xb   : > { %p50_p2 = scmp.eq.s32.totalorder %s3671_s14, 0  ;;  %p55_p3 = scmp.ne.s32.totalorder %s3655_s10, %s3651_s9 }
   0xc   : > { %s7017_s17 = smov (%p35_p0, %s33_s17), 0  ;;  %p56_p5 = scmp.eq.s32.totalorder %s3432_s15, 0 }
   0xd   : > { %p3736_p4 = por %p50_p2, %p49_p1  ;;  %s37_s20 = ssub.s32 %s3667_s13, %s7017_s17 }
   0xe   : > { %p107_p6 = scmp.eq.s32.totalorder %s3432_s15, 3  ;;  %p40_p7 = scmp.eq.s32.totalorder %s37_s20, 0 }
   0xf   : > { %p3742_p8 = por %p56_p5, %p55_p3  ;;  %p113_p10 = scmp.eq.s32.totalorder %s3433_s16, 3 }
  0x10   : > { %p3746_p9 = por %p107_p6, %p49_p1  ;;  %p3471_p12 = scmp.lt.s32.totalorder %s3671_s14, 4 }
  0x11   : > { %s7001_s21 = scalar_select %p3742_p8, 1, 0 }
  0x12   : > { %s7002_s22 = scalar_select %p3746_p9, 1, 0 }
  0x13   : > { %s3751_s23 = scalar_select %p40_p7, %s3659_s11, %s42_s18  }
  0x14   : > { %p3753_p11 = por %p113_p10, %p55_p3  ;;  %s3759_s25 = sand.u32 1, %s3659_s11  }
  0x15   : > { %s3436_s26 = sshll.u32 %s3759_s25, 13  ;;  %s3451_s27 = sshll.u32 %s3667_s13, 17 }
  0x16   : > { %s7003_s24 = scalar_select %p3753_p11, 1, 0 }
  0x17   : > { %s3766_s30 = scalar_lea.hbm %s6995_s0, %s3451_s27  ;;  %s137_s3 = scalar_lea.vmem [#allocation2], %s3436_s26 }
  0x18   : > { %s147_s4 = sshll.u32 %s137_s3, 4  ;;  %p3772_p13 = pnand %p3471_p12, %p3736_p4  ;;  %s3768_s4 = int_to_ptr.vmem [resolvable:$true] %s147_s4 }
  0x19   : > { %s134_s6 = scalar_lea.sflag [#allocation3], %s3759_s25  ;;  %s3525_s7 = scalar_lea.hbm %s3766_s30, 131072 }
  0x1a   : > { %p3526_p1 = scmp.ne.s32.totalorder %s3766_s30, %s3525_s7  ;;  %p3527_p2 = pneg %p3772_p13 }
  0x1b   : > { %s3530_s16 = scalar_lea.hbm %s6995_s0, 524288  ;;  %p3531_p4 = scmp.lt.u32.totalorder %s3766_s30, %s6995_s0 }
  0x1c   : > { %p3528_p3 = pnand %p3527_p2, %p3526_p1  ;;  %p3532_p6 = scmp.lt.u32.totalorder %s3530_s16, %s3525_s7 }
  0x1d   : > { %p3534_p10 = scmp.lt.u32.totalorder %s3525_s7, %s3766_s30 }
  0x1e   : > { %p3529_p5 = pneg %p3528_p3  ;;  %p3533_p7 = por %p3532_p6, %p3531_p4 }
  0x20   : > { %p3535_p12 = por %p3534_p10, %p3533_p7 }
  0x22   : > { %p3536_p0 = pnand %p3535_p12, %p3529_p5 }
  0x24   : > { %3539 = shalt.err (!%p3536_p0)
}
  0x25   : > { %s3540_s20 = scalar_lea.vmem %s3768_s4, 131072  ;;  %s3673_s26 = smov [#allocation2]  }
  0x26   : > { %p3541_p1 = scmp.ne.s32.totalorder %s3768_s4, %s3540_s20  ;;  %s3545_s27 = sshll.u32 %s3673_s26, 4  ;;  %s3546_s27 = int_to_ptr.vmem [resolvable:$false] %s3545_s27 }
  0x27   : > { %s3547_s28 = scalar_lea.vmem %s3546_s27, 262144  ;;  %p3548_p9 = scmp.lt.s32.totalorder %s3768_s4, %s3546_s27 }
  0x28   : > { %p3543_p3 = pnand %p3541_p1, %p3527_p2  ;;  %p3549_p4 = scmp.lt.s32.totalorder %s3547_s28, %s3540_s20 }
  0x2a   : > { %p3544_p11 = pneg %p3543_p3  ;;  %p3550_p6 = por %p3549_p4, %p3548_p9 }
  0x2c   : > { %p3551_p7 = pnand %p3550_p6, %p3544_p11 }
  0x2e   : > { %3554 = shalt.err (!%p3551_p7)
}
  0x2f   : > { %s3674_s29 = smov 256   ;;  %s3675_s3 = smov 16  }
  0x30   : > { %3463 = dma.hbm_to_vmem [thread:$0]  (!%p3772_p13), %s3766_s30, 131072, %s3768_s4, %s134_s6, %s3674_s29, %s3674_s29, %s3675_s3  }
  0x31   : > { %p174_p0 = scmp.lt.s32.totalorder %s3671_s14, 5  ;;  %s3439_s7 = sshll.u32 %s3759_s25, 1 }
  0x32   : > { %s3452_s8 = sshll.u32 %s3667_s13, 5  ;;  %p7005_p9 = scmp.ge.s32.totalorder %s3671_s14, 1 }
  0x33   : > { %s3817_s19 = scalar_lea.hbm %s6996_s1, %s3452_s8  ;;  %s161_s20 = scalar_lea.vmem [#allocation5], %s3439_s7 }
  0x34   : > { %p3810_p11 = pnand %p7005_p9, %p174_p0  ;;  %s169_s26 = sshll.u32 %s161_s20, 4  ;;  %s170_s26 = int_to_ptr.vmem [resolvable:$true] %s169_s26 }
  0x35   : > { %s158_s30 = scalar_lea.sflag [#allocation6], %s3759_s25  ;;  %s3555_s4 = scalar_lea.hbm %s3817_s19, 32 }
  0x36   : > { %s7006_s15 = scalar_select %p3810_p11, 1, 0 }
  0x37   : > { %p3556_p5 = scmp.ne.s32.totalorder %s3817_s19, %s3555_s4  ;;  %s3560_s28 = scalar_lea.hbm %s6996_s1, 128 }
  0x38   : > { %p3561_p1 = scmp.lt.u32.totalorder %s3817_s19, %s6996_s1  ;;  %p3562_p3 = scmp.lt.u32.totalorder %s3560_s28, %s3555_s4 }
  0x39   : > { %p3558_p10 = pnand %p3556_p5, %p3527_p2  ;;  %p3564_p6 = scmp.lt.u32.totalorder %s3555_s4, %s3817_s19 }
  0x3a   : > { %p3563_p4 = por %p3562_p3, %p3561_p1 }
  0x3b   : > { %p3559_p12 = pneg %p3558_p10 }
  0x3c   : > { %p3565_p7 = por %p3564_p6, %p3563_p4 }
  0x3e   : > { %p3566_p0 = pnand %p3565_p7, %p3559_p12 }
  0x40   : > { %3569 = shalt.err (!%p3566_p0)
}
  0x41   : > { %s3570_s25 = scalar_lea.vmem %s170_s26, 32  ;;  %s3676_s7 = smov [#allocation5]  }
  0x42   : > { %p3571_p9 = scmp.ne.s32.totalorder %s170_s26, %s3570_s25  ;;  %s3575_s8 = sshll.u32 %s3676_s7, 4  ;;  %s3576_s8 = int_to_ptr.vmem [resolvable:$false] %s3575_s8 }
  0x43   : > { %s3577_s16 = scalar_lea.vmem %s3576_s8, 64  ;;  %p3578_p8 = scmp.lt.s32.totalorder %s170_s26, %s3576_s8 }
  0x44   : > { %p3573_p5 = pnand %p3571_p9, %p3527_p2  ;;  %p3579_p11 = scmp.lt.s32.totalorder %s3577_s16, %s3570_s25 }
  0x46   : > { %p3574_p10 = pneg %p3573_p5  ;;  %p3580_p1 = por %p3579_p11, %p3578_p8 }
  0x48   : > { %p3581_p3 = pnand %p3580_p1, %p3574_p10 }
  0x4a   : > { %3584 = shalt.err (!%p3581_p3)
}
  0x4b   : > { %3466 = dma.hbm_to_vmem [thread:$0]  (!%p3772_p13), %s3817_s19, 32, %s170_s26, %s158_s30  }
  0x4c   : > { %p7007_p12 = scmp.ne.s32.totalorder %s7006_s15, 0 }
  0x4d   : > { %s3842_s18 = sand.u32 (!%p7007_p12), 1, %s3655_s10   ;;  %p7008_p8 = scmp.ne.s32.totalorder (!%p7007_p12), %s7001_s21, 0 }
  0x4e   : > { %178 = sbr.rel (%p7007_p12) target bundleno = 625 (0x271), region = 28  ;;  %s3443_s20 = sshll.u32 (!%p7007_p12), %s3842_s18, 13 }
  0x4f   : > { %s181_s4 = scalar_lea.sflag (!%p7007_p12), [#allocation3], %s3842_s18  ;;  %s3848_s6 = scalar_lea.vmem (!%p7007_p12), [#allocation2], %s3443_s20 }
  0x55   : > { %3638 = dma.done.wait (%p7008_p8), %s181_s4, 131072  }
  0x56   : > { %3640 = vsyncadd (%p7008_p8), %s181_s4, 4294836224  ;;  %s3444_s5 = sshll.u32 %s3842_s18, 1  ;;  %s190_s15 = scalar_lea.sflag [#allocation6], %s3842_s18 }
  0x57   : > { %s193_s19 = scalar_lea.vmem [#allocation5], %s3444_s5 }
  0x58   : > { %3642 = dma.done.wait (%p7008_p8), %s190_s15, 32  }
  0x59   : > { %3644 = vsyncadd (%p7008_p8), %s190_s15, 4294967264  ;;  %v1247_v0 = vlaneseq  ;;  %v221_v4 = vld [vmem:[%s3848_s6] sm:$0xff]  ;;  %v222_v6 = vld [vmem:[%s3848_s6 + $0x8] sm:$0xff]  ;;  %s3888_s21 = scalar_lea.vmem [#allocation7], %s3443_s20  ;;  %s3453_s26 = sshll.u32 %s3663_s12, 17 }
  0x5a   : > { %v1245_v5 = vld [vmem:[%s193_s19] sm:$0x3]  ;;  %v223_v9 = vld [vmem:[%s3848_s6 + $0x10] sm:$0xff]  ;;  %v224_v10 = vld [vmem:[%s3848_s6 + $0x18] sm:$0xff]  ;;  %s3322_s30 = sshll.u32 %s3888_s21, 4  ;;  %s6935_s28 = scalar_lea.hbm %s6997_s2, %s3453_s26  ;;  %s6937_s30 = int_to_ptr.vmem [resolvable:$true] %s3322_s30 }
  0x5b   : > { %v1248_v1 = vshrl.u32 %v1247_v0, 7  ;;  %v225_v11 = vld [vmem:[%s3848_s6 + $0x20] sm:$0xff]  ;;  %v226_v12 = vld [vmem:[%s3848_s6 + $0x28] sm:$0xff]  ;;  %v227_v13 = vld [vmem:[%s3848_s6 + $0x30] sm:$0xff]  ;;  %s3306_s29 = scalar_lea.sflag [#allocation4], %s3842_s18  ;;  %s3585_s3 = scalar_lea.vmem %s6937_s30, 131072 }
  0x5c   : > { %v228_v14 = vld [vmem:[%s3848_s6 + $0x38] sm:$0xff]  ;;  %v229_v19 = vld [vmem:[%s3848_s6 + $0x40] sm:$0xff]  ;;  %v230_v20 = vld [vmem:[%s3848_s6 + $0x48] sm:$0xff]  ;;  %p3586_p13 = scmp.ne.s32.totalorder %s6937_s30, %s3585_s3  ;;  %p7009_p2 = scmp.ne.s32.totalorder %s7002_s22, 0 }
  0x5d   : > { %v1249_v2 = vsub.s32 0, %v1248_v1  ;;  %v1253_v3 = vsub.s32 1, %v1248_v1  ;;  %v231_v21 = vld [vmem:[%s3848_s6 + $0x50] sm:$0xff]  ;;  %v232_v26 = vld [vmem:[%s3848_s6 + $0x58] sm:$0xff]  ;;  %v233_v27 = vld [vmem:[%s3848_s6 + $0x60] sm:$0xff]  ;;  %s3677_s25 = smov [#allocation7]  }
  0x5e   : > { %v234_v28 = vld [vmem:[%s3848_s6 + $0x68] sm:$0xff]  ;;  %v235_v33 = vld [vmem:[%s3848_s6 + $0x70] sm:$0xff]  ;;  %v236_v34 = vld [vmem:[%s3848_s6 + $0x78] sm:$0xff]  ;;  %p3587_p11 = pnand %p3586_p13, %p7009_p2  ;;  %s3589_s7 = sshll.u32 %s3677_s25, 4  ;;  %s3590_s7 = int_to_ptr.vmem [resolvable:$false] %s3589_s7 }
  0x5f   : > { %v3862_v7 = vrot.slane %v1245_v5, %v1249_v2  ;;  %v3864_v8 = vrot.slane %v1245_v5, %v1253_v3  ;;  %v237_v35 = vld [vmem:[%s3848_s6 + $0x80] sm:$0xff]  ;;  %v238_v40 = vld [vmem:[%s3848_s6 + $0x88] sm:$0xff]  ;;  %v239_v41 = vld [vmem:[%s3848_s6 + $0x90] sm:$0xff]  ;;  %s3591_s8 = scalar_lea.vmem %s3590_s7, 262144  ;;  %p3592_p6 = scmp.lt.s32.totalorder %s6937_s30, %s3590_s7 }
  0x60   : > { %v240_v42 = vld [vmem:[%s3848_s6 + $0x98] sm:$0xff]  ;;  %v241_v47 = vld [vmem:[%s3848_s6 + $0xa0] sm:$0xff]  ;;  %v242_v48 = vld [vmem:[%s3848_s6 + $0xa8] sm:$0xff]  ;;  %p3588_p4 = pneg %p3587_p11  ;;  %p3593_p7 = scmp.lt.s32.totalorder %s3591_s8, %s3585_s3 }
  0x61   : > { %v1257_v15 = vmul.f32 %v3862_v7, %v221_v4  ;;  %v1258_v16 = vmul.f32 %v3864_v8, %v222_v6  ;;  %v1259_v17 = vmul.f32 %v3862_v7, %v223_v9  ;;  %v1260_v18 = vmul.f32 %v3864_v8, %v224_v10  ;;  %v243_v49 = vld [vmem:[%s3848_s6 + $0xb0] sm:$0xff]  ;;  %v244_v53 = vld [vmem:[%s3848_s6 + $0xb8] sm:$0xff]  ;;  %v245_v54 = vld [vmem:[%s3848_s6 + $0xc0] sm:$0xff] }
  0x62   : > { %v1261_v22 = vmul.f32 %v3862_v7, %v225_v11  ;;  %v1262_v23 = vmul.f32 %v3864_v8, %v226_v12  ;;  %v1263_v24 = vmul.f32 %v3862_v7, %v227_v13  ;;  %v1264_v25 = vmul.f32 %v3864_v8, %v228_v14  ;;  %v246_v55 = vld [vmem:[%s3848_s6 + $0xc8] sm:$0xff]  ;;  %v247_v59 = vld [vmem:[%s3848_s6 + $0xd0] sm:$0xff]  ;;  %v248_v60 = vld [vmem:[%s3848_s6 + $0xd8] sm:$0xff]  ;;  %p3594_p0 = por %p3593_p7, %p3592_p6 }
  0x63   : > { %2281 = vst [vmem:[%s3888_s21] sm:$0xff] %v1257_v15  ;;  %2282 = vst [vmem:[%s3888_s21 + $0x8] sm:$0xff] %v1258_v16  ;;  %v1265_v29 = vmul.f32 %v3862_v7, %v229_v19  ;;  %v1266_v30 = vmul.f32 %v3864_v8, %v230_v20  ;;  %v1267_v31 = vmul.f32 %v3862_v7, %v231_v21  ;;  %v249_v61 = vld [vmem:[%s3848_s6 + $0xe0] sm:$0xff]  ;;  %v250_v1 = vld [vmem:[%s3848_s6 + $0xe8] sm:$0xff] }
  0x64   : > { %2283 = vst [vmem:[%s3888_s21 + $0x10] sm:$0xff] %v1259_v17  ;;  %2284 = vst [vmem:[%s3888_s21 + $0x18] sm:$0xff] %v1260_v18  ;;  %v1268_v32 = vmul.f32 %v3864_v8, %v232_v26  ;;  %v1269_v36 = vmul.f32 %v3862_v7, %v233_v27  ;;  %v1270_v37 = vmul.f32 %v3864_v8, %v234_v28  ;;  %v251_v2 = vld [vmem:[%s3848_s6 + $0xf0] sm:$0xff]  ;;  %v252_v3 = vld [vmem:[%s3848_s6 + $0xf8] sm:$0xff]  ;;  %p3595_p9 = pnand %p3594_p0, %p3588_p4 }
  0x65   : > { %2285 = vst [vmem:[%s3888_s21 + $0x20] sm:$0xff] %v1261_v22  ;;  %2286 = vst [vmem:[%s3888_s21 + $0x28] sm:$0xff] %v1262_v23  ;;  %v1271_v38 = vmul.f32 %v3862_v7, %v235_v33  ;;  %v1272_v39 = vmul.f32 %v3864_v8, %v236_v34  ;;  %v1273_v43 = vmul.f32 %v3862_v7, %v237_v35  ;;  %v253_v9 = vld [vmem:[%s3848_s6 + $0x100] sm:$0xff]  ;;  %v254_v10 = vld [vmem:[%s3848_s6 + $0x108] sm:$0xff] }
  0x66   : > { %2287 = vst [vmem:[%s3888_s21 + $0x30] sm:$0xff] %v1263_v24  ;;  %2288 = vst [vmem:[%s3888_s21 + $0x38] sm:$0xff] %v1264_v25  ;;  %v1274_v44 = vmul.f32 %v3864_v8, %v238_v40  ;;  %v1275_v45 = vmul.f32 %v3862_v7, %v239_v41  ;;  %v1276_v46 = vmul.f32 %v3864_v8, %v240_v42  ;;  %v255_v11 = vld [vmem:[%s3848_s6 + $0x110] sm:$0xff]  ;;  %v256_v15 = vld [vmem:[%s3848_s6 + $0x118] sm:$0xff] }
  0x67   : > { %2289 = vst [vmem:[%s3888_s21 + $0x40] sm:$0xff] %v1265_v29  ;;  %2290 = vst [vmem:[%s3888_s21 + $0x48] sm:$0xff] %v1266_v30  ;;  %v1277_v50 = vmul.f32 %v3862_v7, %v241_v47  ;;  %v1278_v51 = vmul.f32 %v3864_v8, %v242_v48  ;;  %v1279_v52 = vmul.f32 %v3862_v7, %v243_v49  ;;  %v257_v16 = vld [vmem:[%s3848_s6 + $0x120] sm:$0xff]  ;;  %v258_v17 = vld [vmem:[%s3848_s6 + $0x128] sm:$0xff] }
  0x68   : > { %2291 = vst [vmem:[%s3888_s21 + $0x50] sm:$0xff] %v1267_v31  ;;  %2292 = vst [vmem:[%s3888_s21 + $0x58] sm:$0xff] %v1268_v32  ;;  %v1280_v56 = vmul.f32 %v3864_v8, %v244_v53  ;;  %v1281_v57 = vmul.f32 %v3862_v7, %v245_v54  ;;  %v1282_v58 = vmul.f32 %v3864_v8, %v246_v55  ;;  %v259_v21 = vld [vmem:[%s3848_s6 + $0x130] sm:$0xff]  ;;  %v260_v22 = vld [vmem:[%s3848_s6 + $0x138] sm:$0xff] }
  0x69   : > { %2293 = vst [vmem:[%s3888_s21 + $0x60] sm:$0xff] %v1269_v36  ;;  %2294 = vst [vmem:[%s3888_s21 + $0x68] sm:$0xff] %v1270_v37  ;;  %v1283_v62 = vmul.f32 %v3862_v7, %v247_v59  ;;  %v1284_v63 = vmul.f32 %v3864_v8, %v248_v60  ;;  %v1285_v0 = vmul.f32 %v3862_v7, %v249_v61  ;;  %v261_v23 = vld [vmem:[%s3848_s6 + $0x140] sm:$0xff]  ;;  %v262_v27 = vld [vmem:[%s3848_s6 + $0x148] sm:$0xff] }
  0x6a   : > { %2295 = vst [vmem:[%s3888_s21 + $0x70] sm:$0xff] %v1271_v38  ;;  %2296 = vst [vmem:[%s3888_s21 + $0x78] sm:$0xff] %v1272_v39  ;;  %v1286_v4 = vmul.f32 %v3864_v8, %v250_v1  ;;  %v1287_v5 = vmul.f32 %v3862_v7, %v251_v2  ;;  %v1288_v6 = vmul.f32 %v3864_v8, %v252_v3  ;;  %v263_v28 = vld [vmem:[%s3848_s6 + $0x150] sm:$0xff]  ;;  %v264_v29 = vld [vmem:[%s3848_s6 + $0x158] sm:$0xff] }
  0x6b   : > { %2297 = vst [vmem:[%s3888_s21 + $0x80] sm:$0xff] %v1273_v43  ;;  %2298 = vst [vmem:[%s3888_s21 + $0x88] sm:$0xff] %v1274_v44  ;;  %v1289_v12 = vmul.f32 %v3862_v7, %v253_v9  ;;  %v1290_v13 = vmul.f32 %v3864_v8, %v254_v10  ;;  %v1291_v14 = vmul.f32 %v3862_v7, %v255_v11  ;;  %v265_v33 = vld [vmem:[%s3848_s6 + $0x160] sm:$0xff]  ;;  %v266_v34 = vld [vmem:[%s3848_s6 + $0x168] sm:$0xff] }
  0x6c   : > { %2299 = vst [vmem:[%s3888_s21 + $0x90] sm:$0xff] %v1275_v45  ;;  %2300 = vst [vmem:[%s3888_s21 + $0x98] sm:$0xff] %v1276_v46  ;;  %v1292_v18 = vmul.f32 %v3864_v8, %v256_v15  ;;  %v1293_v19 = vmul.f32 %v3862_v7, %v257_v16  ;;  %v1294_v20 = vmul.f32 %v3864_v8, %v258_v17  ;;  %v267_v35 = vld [vmem:[%s3848_s6 + $0x170] sm:$0xff]  ;;  %v268_v39 = vld [vmem:[%s3848_s6 + $0x178] sm:$0xff] }
  0x6d   : > { %2301 = vst [vmem:[%s3888_s21 + $0xa0] sm:$0xff] %v1277_v50  ;;  %2302 = vst [vmem:[%s3888_s21 + $0xa8] sm:$0xff] %v1278_v51  ;;  %v1295_v24 = vmul.f32 %v3862_v7, %v259_v21  ;;  %v1296_v25 = vmul.f32 %v3864_v8, %v260_v22  ;;  %v1297_v26 = vmul.f32 %v3862_v7, %v261_v23  ;;  %v269_v40 = vld [vmem:[%s3848_s6 + $0x180] sm:$0xff]  ;;  %v270_v41 = vld [vmem:[%s3848_s6 + $0x188] sm:$0xff] }
  0x6e   : > { %2303 = vst [vmem:[%s3888_s21 + $0xb0] sm:$0xff] %v1279_v52  ;;  %2304 = vst [vmem:[%s3888_s21 + $0xb8] sm:$0xff] %v1280_v56  ;;  %v1298_v30 = vmul.f32 %v3864_v8, %v262_v27  ;;  %v1299_v31 = vmul.f32 %v3862_v7, %v263_v28  ;;  %v1300_v32 = vmul.f32 %v3864_v8, %v264_v29  ;;  %v271_v45 = vld [vmem:[%s3848_s6 + $0x190] sm:$0xff]  ;;  %v272_v46 = vld [vmem:[%s3848_s6 + $0x198] sm:$0xff] }
  0x6f   : > { %2305 = vst [vmem:[%s3888_s21 + $0xc0] sm:$0xff] %v1281_v57  ;;  %2306 = vst [vmem:[%s3888_s21 + $0xc8] sm:$0xff] %v1282_v58  ;;  %v1301_v36 = vmul.f32 %v3862_v7, %v265_v33  ;;  %v1302_v37 = vmul.f32 %v3864_v8, %v266_v34  ;;  %v1303_v38 = vmul.f32 %v3862_v7, %v267_v35  ;;  %v273_v47 = vld [vmem:[%s3848_s6 + $0x1a0] sm:$0xff]  ;;  %v274_v51 = vld [vmem:[%s3848_s6 + $0x1a8] sm:$0xff] }
  0x70   : > { %2307 = vst [vmem:[%s3888_s21 + $0xd0] sm:$0xff] %v1283_v62  ;;  %2308 = vst [vmem:[%s3888_s21 + $0xd8] sm:$0xff] %v1284_v63  ;;  %v1304_v42 = vmul.f32 %v3864_v8, %v268_v39  ;;  %v1305_v43 = vmul.f32 %v3862_v7, %v269_v40  ;;  %v1306_v44 = vmul.f32 %v3864_v8, %v270_v41  ;;  %v275_v52 = vld [vmem:[%s3848_s6 + $0x1b0] sm:$0xff]  ;;  %v276_v53 = vld [vmem:[%s3848_s6 + $0x1b8] sm:$0xff] }
  0x71   : > { %2309 = vst [vmem:[%s3888_s21 + $0xe0] sm:$0xff] %v1285_v0  ;;  %2310 = vst [vmem:[%s3888_s21 + $0xe8] sm:$0xff] %v1286_v4  ;;  %v1307_v48 = vmul.f32 %v3862_v7, %v271_v45  ;;  %v1308_v49 = vmul.f32 %v3864_v8, %v272_v46  ;;  %v1309_v50 = vmul.f32 %v3862_v7, %v273_v47  ;;  %v277_v57 = vld [vmem:[%s3848_s6 + $0x1c0] sm:$0xff]  ;;  %v278_v58 = vld [vmem:[%s3848_s6 + $0x1c8] sm:$0xff] }
  0x72   : > { %2311 = vst [vmem:[%s3888_s21 + $0xf0] sm:$0xff] %v1287_v5  ;;  %2312 = vst [vmem:[%s3888_s21 + $0xf8] sm:$0xff] %v1288_v6  ;;  %v1310_v54 = vmul.f32 %v3864_v8, %v274_v51  ;;  %v1311_v55 = vmul.f32 %v3862_v7, %v275_v52  ;;  %v1312_v56 = vmul.f32 %v3864_v8, %v276_v53  ;;  %v279_v59 = vld [vmem:[%s3848_s6 + $0x1d0] sm:$0xff]  ;;  %v280_v63 = vld [vmem:[%s3848_s6 + $0x1d8] sm:$0xff] }
  0x73   : > { %2313 = vst [vmem:[%s3888_s21 + $0x100] sm:$0xff] %v1289_v12  ;;  %2314 = vst [vmem:[%s3888_s21 + $0x108] sm:$0xff] %v1290_v13  ;;  %v1313_v60 = vmul.f32 %v3862_v7, %v277_v57  ;;  %v1314_v61 = vmul.f32 %v3864_v8, %v278_v58  ;;  %v1315_v62 = vmul.f32 %v3862_v7, %v279_v59  ;;  %v281_v0 = vld [vmem:[%s3848_s6 + $0x1e0] sm:$0xff]  ;;  %v282_v1 = vld [vmem:[%s3848_s6 + $0x1e8] sm:$0xff] }
  0x74   : > { %2315 = vst [vmem:[%s3888_s21 + $0x110] sm:$0xff] %v1291_v14  ;;  %2316 = vst [vmem:[%s3888_s21 + $0x118] sm:$0xff] %v1292_v18  ;;  %v1316_v2 = vmul.f32 %v3864_v8, %v280_v63  ;;  %v1317_v3 = vmul.f32 %v3862_v7, %v281_v0  ;;  %v1318_v4 = vmul.f32 %v3864_v8, %v282_v1  ;;  %v283_v5 = vld [vmem:[%s3848_s6 + $0x1f0] sm:$0xff]  ;;  %v284_v6 = vld [vmem:[%s3848_s6 + $0x1f8] sm:$0xff] }
  0x75   : > { %2317 = vst [vmem:[%s3888_s21 + $0x120] sm:$0xff] %v1293_v19  ;;  %2318 = vst [vmem:[%s3888_s21 + $0x128] sm:$0xff] %v1294_v20  ;;  %v285_v9 = vld [vmem:[%s3848_s6 + $0x200] sm:$0xff]  ;;  %v1319_v10 = vmul.f32 %v3862_v7, %v283_v5  ;;  %v1320_v11 = vmul.f32 %v3864_v8, %v284_v6  ;;  %v286_v13 = vld [vmem:[%s3848_s6 + $0x208] sm:$0xff] }
  0x76   : > { %2319 = vst [vmem:[%s3888_s21 + $0x130] sm:$0xff] %v1295_v24  ;;  %2320 = vst [vmem:[%s3888_s21 + $0x138] sm:$0xff] %v1296_v25  ;;  %v1321_v12 = vmul.f32 %v3862_v7, %v285_v9  ;;  %v287_v14 = vld [vmem:[%s3848_s6 + $0x210] sm:$0xff]  ;;  %v288_v15 = vld [vmem:[%s3848_s6 + $0x218] sm:$0xff]  ;;  %v1322_v16 = vmul.f32 %v3864_v8, %v286_v13 }
  0x77   : > { %2321 = vst [vmem:[%s3888_s21 + $0x140] sm:$0xff] %v1297_v26  ;;  %2322 = vst [vmem:[%s3888_s21 + $0x148] sm:$0xff] %v1298_v30  ;;  %v1323_v17 = vmul.f32 %v3862_v7, %v287_v14  ;;  %v1324_v18 = vmul.f32 %v3864_v8, %v288_v15  ;;  %v289_v19 = vld [vmem:[%s3848_s6 + $0x220] sm:$0xff]  ;;  %v290_v20 = vld [vmem:[%s3848_s6 + $0x228] sm:$0xff] }
  0x78   : > { %2323 = vst [vmem:[%s3888_s21 + $0x150] sm:$0xff] %v1299_v31  ;;  %2324 = vst [vmem:[%s3888_s21 + $0x158] sm:$0xff] %v1300_v32  ;;  %v291_v21 = vld [vmem:[%s3848_s6 + $0x230] sm:$0xff]  ;;  %v1325_v22 = vmul.f32 %v3862_v7, %v289_v19  ;;  %v1326_v23 = vmul.f32 %v3864_v8, %v290_v20  ;;  %v292_v25 = vld [vmem:[%s3848_s6 + $0x238] sm:$0xff] }
  0x79   : > { %2325 = vst [vmem:[%s3888_s21 + $0x160] sm:$0xff] %v1301_v36  ;;  %2326 = vst [vmem:[%s3888_s21 + $0x168] sm:$0xff] %v1302_v37  ;;  %v1327_v24 = vmul.f32 %v3862_v7, %v291_v21  ;;  %v293_v26 = vld [vmem:[%s3848_s6 + $0x240] sm:$0xff]  ;;  %v294_v27 = vld [vmem:[%s3848_s6 + $0x248] sm:$0xff]  ;;  %v1328_v28 = vmul.f32 %v3864_v8, %v292_v25 }
  0x7a   : > { %2327 = vst [vmem:[%s3888_s21 + $0x170] sm:$0xff] %v1303_v38  ;;  %2328 = vst [vmem:[%s3888_s21 + $0x178] sm:$0xff] %v1304_v42  ;;  %v1329_v29 = vmul.f32 %v3862_v7, %v293_v26  ;;  %v1330_v30 = vmul.f32 %v3864_v8, %v294_v27  ;;  %v295_v31 = vld [vmem:[%s3848_s6 + $0x250] sm:$0xff]  ;;  %v296_v32 = vld [vmem:[%s3848_s6 + $0x258] sm:$0xff] }
  0x7b   : > { %2329 = vst [vmem:[%s3888_s21 + $0x180] sm:$0xff] %v1305_v43  ;;  %2330 = vst [vmem:[%s3888_s21 + $0x188] sm:$0xff] %v1306_v44  ;;  %v297_v33 = vld [vmem:[%s3848_s6 + $0x260] sm:$0xff]  ;;  %v1331_v34 = vmul.f32 %v3862_v7, %v295_v31  ;;  %v1332_v35 = vmul.f32 %v3864_v8, %v296_v32  ;;  %v298_v37 = vld [vmem:[%s3848_s6 + $0x268] sm:$0xff] }
  0x7c   : > { %2331 = vst [vmem:[%s3888_s21 + $0x190] sm:$0xff] %v1307_v48  ;;  %2332 = vst [vmem:[%s3888_s21 + $0x198] sm:$0xff] %v1308_v49  ;;  %v1333_v36 = vmul.f32 %v3862_v7, %v297_v33  ;;  %v299_v38 = vld [vmem:[%s3848_s6 + $0x270] sm:$0xff]  ;;  %v300_v39 = vld [vmem:[%s3848_s6 + $0x278] sm:$0xff]  ;;  %v1334_v40 = vmul.f32 %v3864_v8, %v298_v37 }
  0x7d   : > { %2333 = vst [vmem:[%s3888_s21 + $0x1a0] sm:$0xff] %v1309_v50  ;;  %2334 = vst [vmem:[%s3888_s21 + $0x1a8] sm:$0xff] %v1310_v54  ;;  %v1335_v41 = vmul.f32 %v3862_v7, %v299_v38  ;;  %v1336_v42 = vmul.f32 %v3864_v8, %v300_v39  ;;  %v301_v43 = vld [vmem:[%s3848_s6 + $0x280] sm:$0xff]  ;;  %v302_v44 = vld [vmem:[%s3848_s6 + $0x288] sm:$0xff] }
  0x7e   : > { %2335 = vst [vmem:[%s3888_s21 + $0x1b0] sm:$0xff] %v1311_v55  ;;  %2336 = vst [vmem:[%s3888_s21 + $0x1b8] sm:$0xff] %v1312_v56  ;;  %v303_v45 = vld [vmem:[%s3848_s6 + $0x290] sm:$0xff]  ;;  %v1337_v46 = vmul.f32 %v3862_v7, %v301_v43  ;;  %v1338_v47 = vmul.f32 %v3864_v8, %v302_v44  ;;  %v304_v49 = vld [vmem:[%s3848_s6 + $0x298] sm:$0xff] }
  0x7f   : > { %2337 = vst [vmem:[%s3888_s21 + $0x1c0] sm:$0xff] %v1313_v60  ;;  %2338 = vst [vmem:[%s3888_s21 + $0x1c8] sm:$0xff] %v1314_v61  ;;  %v1339_v48 = vmul.f32 %v3862_v7, %v303_v45  ;;  %v305_v50 = vld [vmem:[%s3848_s6 + $0x2a0] sm:$0xff]  ;;  %v306_v51 = vld [vmem:[%s3848_s6 + $0x2a8] sm:$0xff]  ;;  %v1340_v52 = vmul.f32 %v3864_v8, %v304_v49 }
  0x80   : > { %2339 = vst [vmem:[%s3888_s21 + $0x1d0] sm:$0xff] %v1315_v62  ;;  %2340 = vst [vmem:[%s3888_s21 + $0x1d8] sm:$0xff] %v1316_v2  ;;  %v1341_v53 = vmul.f32 %v3862_v7, %v305_v50  ;;  %v1342_v54 = vmul.f32 %v3864_v8, %v306_v51  ;;  %v307_v55 = vld [vmem:[%s3848_s6 + $0x2b0] sm:$0xff]  ;;  %v308_v56 = vld [vmem:[%s3848_s6 + $0x2b8] sm:$0xff] }
  0x81   : > { %2341 = vst [vmem:[%s3888_s21 + $0x1e0] sm:$0xff] %v1317_v3  ;;  %2342 = vst [vmem:[%s3888_s21 + $0x1e8] sm:$0xff] %v1318_v4  ;;  %v309_v57 = vld [vmem:[%s3848_s6 + $0x2c0] sm:$0xff]  ;;  %v1343_v58 = vmul.f32 %v3862_v7, %v307_v55  ;;  %v1344_v59 = vmul.f32 %v3864_v8, %v308_v56  ;;  %v310_v61 = vld [vmem:[%s3848_s6 + $0x2c8] sm:$0xff] }
  0x82   : > { %2343 = vst [vmem:[%s3888_s21 + $0x1f0] sm:$0xff] %v1319_v10  ;;  %2344 = vst [vmem:[%s3888_s21 + $0x1f8] sm:$0xff] %v1320_v11  ;;  %v1345_v60 = vmul.f32 %v3862_v7, %v309_v57  ;;  %v311_v62 = vld [vmem:[%s3848_s6 + $0x2d0] sm:$0xff]  ;;  %v312_v63 = vld [vmem:[%s3848_s6 + $0x2d8] sm:$0xff]  ;;  %v1346_v0 = vmul.f32 %v3864_v8, %v310_v61 }
  0x83   : > { %2345 = vst [vmem:[%s3888_s21 + $0x200] sm:$0xff] %v1321_v12  ;;  %2346 = vst [vmem:[%s3888_s21 + $0x208] sm:$0xff] %v1322_v16  ;;  %v1347_v1 = vmul.f32 %v3862_v7, %v311_v62  ;;  %v1348_v2 = vmul.f32 %v3864_v8, %v312_v63  ;;  %v313_v3 = vld [vmem:[%s3848_s6 + $0x2e0] sm:$0xff]  ;;  %v314_v4 = vld [vmem:[%s3848_s6 + $0x2e8] sm:$0xff] }
  0x84   : > { %2347 = vst [vmem:[%s3888_s21 + $0x210] sm:$0xff] %v1323_v17  ;;  %2348 = vst [vmem:[%s3888_s21 + $0x218] sm:$0xff] %v1324_v18  ;;  %v315_v5 = vld [vmem:[%s3848_s6 + $0x2f0] sm:$0xff]  ;;  %v1349_v6 = vmul.f32 %v3862_v7, %v313_v3  ;;  %v1350_v9 = vmul.f32 %v3864_v8, %v314_v4  ;;  %v316_v11 = vld [vmem:[%s3848_s6 + $0x2f8] sm:$0xff] }
  0x85   : > { %2349 = vst [vmem:[%s3888_s21 + $0x220] sm:$0xff] %v1325_v22  ;;  %2350 = vst [vmem:[%s3888_s21 + $0x228] sm:$0xff] %v1326_v23  ;;  %v1351_v10 = vmul.f32 %v3862_v7, %v315_v5  ;;  %v317_v12 = vld [vmem:[%s3848_s6 + $0x300] sm:$0xff]  ;;  %v318_v13 = vld [vmem:[%s3848_s6 + $0x308] sm:$0xff]  ;;  %v1352_v14 = vmul.f32 %v3864_v8, %v316_v11 }
  0x86   : > { %2351 = vst [vmem:[%s3888_s21 + $0x230] sm:$0xff] %v1327_v24  ;;  %2352 = vst [vmem:[%s3888_s21 + $0x238] sm:$0xff] %v1328_v28  ;;  %v1353_v15 = vmul.f32 %v3862_v7, %v317_v12  ;;  %v1354_v16 = vmul.f32 %v3864_v8, %v318_v13  ;;  %v319_v17 = vld [vmem:[%s3848_s6 + $0x310] sm:$0xff]  ;;  %v320_v18 = vld [vmem:[%s3848_s6 + $0x318] sm:$0xff] }
  0x87   : > { %2353 = vst [vmem:[%s3888_s21 + $0x240] sm:$0xff] %v1329_v29  ;;  %2354 = vst [vmem:[%s3888_s21 + $0x248] sm:$0xff] %v1330_v30  ;;  %v321_v19 = vld [vmem:[%s3848_s6 + $0x320] sm:$0xff]  ;;  %v1355_v20 = vmul.f32 %v3862_v7, %v319_v17  ;;  %v1356_v21 = vmul.f32 %v3864_v8, %v320_v18  ;;  %v322_v23 = vld [vmem:[%s3848_s6 + $0x328] sm:$0xff] }
  0x88   : > { %2355 = vst [vmem:[%s3888_s21 + $0x250] sm:$0xff] %v1331_v34  ;;  %2356 = vst [vmem:[%s3888_s21 + $0x258] sm:$0xff] %v1332_v35  ;;  %v1357_v22 = vmul.f32 %v3862_v7, %v321_v19  ;;  %v323_v24 = vld [vmem:[%s3848_s6 + $0x330] sm:$0xff]  ;;  %v324_v25 = vld [vmem:[%s3848_s6 + $0x338] sm:$0xff]  ;;  %v1358_v26 = vmul.f32 %v3864_v8, %v322_v23 }
  0x89   : > { %2357 = vst [vmem:[%s3888_s21 + $0x260] sm:$0xff] %v1333_v36  ;;  %2358 = vst [vmem:[%s3888_s21 + $0x268] sm:$0xff] %v1334_v40  ;;  %v1359_v27 = vmul.f32 %v3862_v7, %v323_v24  ;;  %v1360_v28 = vmul.f32 %v3864_v8, %v324_v25  ;;  %v325_v29 = vld [vmem:[%s3848_s6 + $0x340] sm:$0xff]  ;;  %v326_v30 = vld [vmem:[%s3848_s6 + $0x348] sm:$0xff] }
  0x8a   : > { %2359 = vst [vmem:[%s3888_s21 + $0x270] sm:$0xff] %v1335_v41  ;;  %2360 = vst [vmem:[%s3888_s21 + $0x278] sm:$0xff] %v1336_v42  ;;  %v327_v31 = vld [vmem:[%s3848_s6 + $0x350] sm:$0xff]  ;;  %v1361_v32 = vmul.f32 %v3862_v7, %v325_v29  ;;  %v1362_v33 = vmul.f32 %v3864_v8, %v326_v30  ;;  %v328_v35 = vld [vmem:[%s3848_s6 + $0x358] sm:$0xff] }
  0x8b   : > { %2361 = vst [vmem:[%s3888_s21 + $0x280] sm:$0xff] %v1337_v46  ;;  %2362 = vst [vmem:[%s3888_s21 + $0x288] sm:$0xff] %v1338_v47  ;;  %v1363_v34 = vmul.f32 %v3862_v7, %v327_v31  ;;  %v329_v36 = vld [vmem:[%s3848_s6 + $0x360] sm:$0xff]  ;;  %v330_v37 = vld [vmem:[%s3848_s6 + $0x368] sm:$0xff]  ;;  %v1364_v38 = vmul.f32 %v3864_v8, %v328_v35 }
  0x8c   : > { %2363 = vst [vmem:[%s3888_s21 + $0x290] sm:$0xff] %v1339_v48  ;;  %2364 = vst [vmem:[%s3888_s21 + $0x298] sm:$0xff] %v1340_v52  ;;  %v1365_v39 = vmul.f32 %v3862_v7, %v329_v36  ;;  %v1366_v40 = vmul.f32 %v3864_v8, %v330_v37  ;;  %v331_v41 = vld [vmem:[%s3848_s6 + $0x370] sm:$0xff]  ;;  %v332_v42 = vld [vmem:[%s3848_s6 + $0x378] sm:$0xff] }
  0x8d   : > { %2365 = vst [vmem:[%s3888_s21 + $0x2a0] sm:$0xff] %v1341_v53  ;;  %2366 = vst [vmem:[%s3888_s21 + $0x2a8] sm:$0xff] %v1342_v54  ;;  %v333_v43 = vld [vmem:[%s3848_s6 + $0x380] sm:$0xff]  ;;  %v1367_v44 = vmul.f32 %v3862_v7, %v331_v41  ;;  %v1368_v45 = vmul.f32 %v3864_v8, %v332_v42  ;;  %v334_v47 = vld [vmem:[%s3848_s6 + $0x388] sm:$0xff] }
  0x8e   : > { %2367 = vst [vmem:[%s3888_s21 + $0x2b0] sm:$0xff] %v1343_v58  ;;  %2368 = vst [vmem:[%s3888_s21 + $0x2b8] sm:$0xff] %v1344_v59  ;;  %v1369_v46 = vmul.f32 %v3862_v7, %v333_v43  ;;  %v335_v48 = vld [vmem:[%s3848_s6 + $0x390] sm:$0xff]  ;;  %v336_v49 = vld [vmem:[%s3848_s6 + $0x398] sm:$0xff]  ;;  %v1370_v50 = vmul.f32 %v3864_v8, %v334_v47 }
  0x8f   : > { %2369 = vst [vmem:[%s3888_s21 + $0x2c0] sm:$0xff] %v1345_v60  ;;  %2370 = vst [vmem:[%s3888_s21 + $0x2c8] sm:$0xff] %v1346_v0  ;;  %v1371_v51 = vmul.f32 %v3862_v7, %v335_v48  ;;  %v1372_v52 = vmul.f32 %v3864_v8, %v336_v49  ;;  %v337_v53 = vld [vmem:[%s3848_s6 + $0x3a0] sm:$0xff]  ;;  %v338_v54 = vld [vmem:[%s3848_s6 + $0x3a8] sm:$0xff] }
  0x90   : > { %2371 = vst [vmem:[%s3888_s21 + $0x2d0] sm:$0xff] %v1347_v1  ;;  %2372 = vst [vmem:[%s3888_s21 + $0x2d8] sm:$0xff] %v1348_v2  ;;  %v339_v55 = vld [vmem:[%s3848_s6 + $0x3b0] sm:$0xff]  ;;  %v1373_v56 = vmul.f32 %v3862_v7, %v337_v53  ;;  %v1374_v57 = vmul.f32 %v3864_v8, %v338_v54  ;;  %v340_v59 = vld [vmem:[%s3848_s6 + $0x3b8] sm:$0xff] }
  0x91   : > { %2373 = vst [vmem:[%s3888_s21 + $0x2e0] sm:$0xff] %v1349_v6  ;;  %2374 = vst [vmem:[%s3888_s21 + $0x2e8] sm:$0xff] %v1350_v9  ;;  %v1375_v58 = vmul.f32 %v3862_v7, %v339_v55  ;;  %v341_v60 = vld [vmem:[%s3848_s6 + $0x3c0] sm:$0xff]  ;;  %v342_v61 = vld [vmem:[%s3848_s6 + $0x3c8] sm:$0xff]  ;;  %v1376_v62 = vmul.f32 %v3864_v8, %v340_v59 }
  0x92   : > { %2375 = vst [vmem:[%s3888_s21 + $0x2f0] sm:$0xff] %v1351_v10  ;;  %2376 = vst [vmem:[%s3888_s21 + $0x2f8] sm:$0xff] %v1352_v14  ;;  %v1377_v63 = vmul.f32 %v3862_v7, %v341_v60  ;;  %v1378_v0 = vmul.f32 %v3864_v8, %v342_v61  ;;  %v343_v1 = vld [vmem:[%s3848_s6 + $0x3d0] sm:$0xff]  ;;  %v344_v2 = vld [vmem:[%s3848_s6 + $0x3d8] sm:$0xff] }
  0x93   : > { %2377 = vst [vmem:[%s3888_s21 + $0x300] sm:$0xff] %v1353_v15  ;;  %2378 = vst [vmem:[%s3888_s21 + $0x308] sm:$0xff] %v1354_v16  ;;  %v345_v3 = vld [vmem:[%s3848_s6 + $0x3e0] sm:$0xff]  ;;  %v1379_v4 = vmul.f32 %v3862_v7, %v343_v1  ;;  %v1380_v5 = vmul.f32 %v3864_v8, %v344_v2  ;;  %v346_v9 = vld [vmem:[%s3848_s6 + $0x3e8] sm:$0xff] }
  0x94   : > { %2379 = vst [vmem:[%s3888_s21 + $0x310] sm:$0xff] %v1355_v20  ;;  %2380 = vst [vmem:[%s3888_s21 + $0x318] sm:$0xff] %v1356_v21  ;;  %v1381_v6 = vmul.f32 %v3862_v7, %v345_v3  ;;  %v347_v10 = vld [vmem:[%s3848_s6 + $0x3f0] sm:$0xff]  ;;  %v348_v11 = vld [vmem:[%s3848_s6 + $0x3f8] sm:$0xff]  ;;  %v1382_v12 = vmul.f32 %v3864_v8, %v346_v9 }
  0x95   : > { %2381 = vst [vmem:[%s3888_s21 + $0x320] sm:$0xff] %v1357_v22  ;;  %2382 = vst [vmem:[%s3888_s21 + $0x328] sm:$0xff] %v1358_v26  ;;  %v1383_v13 = vmul.f32 %v3862_v7, %v347_v10  ;;  %v1384_v14 = vmul.f32 %v3864_v8, %v348_v11  ;;  %v349_v15 = vld [vmem:[%s3848_s6 + $0x400] sm:$0xff]  ;;  %v350_v16 = vld [vmem:[%s3848_s6 + $0x408] sm:$0xff] }
  0x96   : > { %2383 = vst [vmem:[%s3888_s21 + $0x330] sm:$0xff] %v1359_v27  ;;  %2384 = vst [vmem:[%s3888_s21 + $0x338] sm:$0xff] %v1360_v28  ;;  %v351_v17 = vld [vmem:[%s3848_s6 + $0x410] sm:$0xff]  ;;  %v1385_v18 = vmul.f32 %v3862_v7, %v349_v15  ;;  %v1386_v19 = vmul.f32 %v3864_v8, %v350_v16  ;;  %v352_v21 = vld [vmem:[%s3848_s6 + $0x418] sm:$0xff] }
  0x97   : > { %2385 = vst [vmem:[%s3888_s21 + $0x340] sm:$0xff] %v1361_v32  ;;  %2386 = vst [vmem:[%s3888_s21 + $0x348] sm:$0xff] %v1362_v33  ;;  %v1387_v20 = vmul.f32 %v3862_v7, %v351_v17  ;;  %v353_v22 = vld [vmem:[%s3848_s6 + $0x420] sm:$0xff]  ;;  %v354_v23 = vld [vmem:[%s3848_s6 + $0x428] sm:$0xff]  ;;  %v1388_v24 = vmul.f32 %v3864_v8, %v352_v21 }
  0x98   : > { %2387 = vst [vmem:[%s3888_s21 + $0x350] sm:$0xff] %v1363_v34  ;;  %2388 = vst [vmem:[%s3888_s21 + $0x358] sm:$0xff] %v1364_v38  ;;  %v1389_v25 = vmul.f32 %v3862_v7, %v353_v22  ;;  %v1390_v26 = vmul.f32 %v3864_v8, %v354_v23  ;;  %v355_v27 = vld [vmem:[%s3848_s6 + $0x430] sm:$0xff]  ;;  %v356_v28 = vld [vmem:[%s3848_s6 + $0x438] sm:$0xff] }
  0x99   : > { %2389 = vst [vmem:[%s3888_s21 + $0x360] sm:$0xff] %v1365_v39  ;;  %2390 = vst [vmem:[%s3888_s21 + $0x368] sm:$0xff] %v1366_v40  ;;  %v357_v29 = vld [vmem:[%s3848_s6 + $0x440] sm:$0xff]  ;;  %v1391_v30 = vmul.f32 %v3862_v7, %v355_v27  ;;  %v1392_v31 = vmul.f32 %v3864_v8, %v356_v28  ;;  %v358_v33 = vld [vmem:[%s3848_s6 + $0x448] sm:$0xff] }
  0x9a   : > { %2391 = vst [vmem:[%s3888_s21 + $0x370] sm:$0xff] %v1367_v44  ;;  %2392 = vst [vmem:[%s3888_s21 + $0x378] sm:$0xff] %v1368_v45  ;;  %v1393_v32 = vmul.f32 %v3862_v7, %v357_v29  ;;  %v359_v34 = vld [vmem:[%s3848_s6 + $0x450] sm:$0xff]  ;;  %v360_v35 = vld [vmem:[%s3848_s6 + $0x458] sm:$0xff]  ;;  %v1394_v36 = vmul.f32 %v3864_v8, %v358_v33 }
  0x9b   : > { %2393 = vst [vmem:[%s3888_s21 + $0x380] sm:$0xff] %v1369_v46  ;;  %2394 = vst [vmem:[%s3888_s21 + $0x388] sm:$0xff] %v1370_v50  ;;  %v1395_v37 = vmul.f32 %v3862_v7, %v359_v34  ;;  %v1396_v38 = vmul.f32 %v3864_v8, %v360_v35  ;;  %v361_v39 = vld [vmem:[%s3848_s6 + $0x460] sm:$0xff]  ;;  %v362_v40 = vld [vmem:[%s3848_s6 + $0x468] sm:$0xff] }
  0x9c   : > { %2395 = vst [vmem:[%s3888_s21 + $0x390] sm:$0xff] %v1371_v51  ;;  %2396 = vst [vmem:[%s3888_s21 + $0x398] sm:$0xff] %v1372_v52  ;;  %v363_v41 = vld [vmem:[%s3848_s6 + $0x470] sm:$0xff]  ;;  %v1397_v42 = vmul.f32 %v3862_v7, %v361_v39  ;;  %v1398_v43 = vmul.f32 %v3864_v8, %v362_v40  ;;  %v364_v45 = vld [vmem:[%s3848_s6 + $0x478] sm:$0xff] }
  0x9d   : > { %2397 = vst [vmem:[%s3888_s21 + $0x3a0] sm:$0xff] %v1373_v56  ;;  %2398 = vst [vmem:[%s3888_s21 + $0x3a8] sm:$0xff] %v1374_v57  ;;  %v1399_v44 = vmul.f32 %v3862_v7, %v363_v41  ;;  %v365_v46 = vld [vmem:[%s3848_s6 + $0x480] sm:$0xff]  ;;  %v366_v47 = vld [vmem:[%s3848_s6 + $0x488] sm:$0xff]  ;;  %v1400_v48 = vmul.f32 %v3864_v8, %v364_v45 }
  0x9e   : > { %2399 = vst [vmem:[%s3888_s21 + $0x3b0] sm:$0xff] %v1375_v58  ;;  %2400 = vst [vmem:[%s3888_s21 + $0x3b8] sm:$0xff] %v1376_v62  ;;  %v1401_v49 = vmul.f32 %v3862_v7, %v365_v46  ;;  %v1402_v50 = vmul.f32 %v3864_v8, %v366_v47  ;;  %v367_v51 = vld [vmem:[%s3848_s6 + $0x490] sm:$0xff]  ;;  %v368_v52 = vld [vmem:[%s3848_s6 + $0x498] sm:$0xff] }
  0x9f   : > { %2401 = vst [vmem:[%s3888_s21 + $0x3c0] sm:$0xff] %v1377_v63  ;;  %2402 = vst [vmem:[%s3888_s21 + $0x3c8] sm:$0xff] %v1378_v0  ;;  %v369_v53 = vld [vmem:[%s3848_s6 + $0x4a0] sm:$0xff]  ;;  %v1403_v54 = vmul.f32 %v3862_v7, %v367_v51  ;;  %v1404_v55 = vmul.f32 %v3864_v8, %v368_v52  ;;  %v370_v57 = vld [vmem:[%s3848_s6 + $0x4a8] sm:$0xff] }
  0xa0   : > { %2403 = vst [vmem:[%s3888_s21 + $0x3d0] sm:$0xff] %v1379_v4  ;;  %2404 = vst [vmem:[%s3888_s21 + $0x3d8] sm:$0xff] %v1380_v5  ;;  %v1405_v56 = vmul.f32 %v3862_v7, %v369_v53  ;;  %v371_v58 = vld [vmem:[%s3848_s6 + $0x4b0] sm:$0xff]  ;;  %v372_v59 = vld [vmem:[%s3848_s6 + $0x4b8] sm:$0xff]  ;;  %v1406_v60 = vmul.f32 %v3864_v8, %v370_v57 }
  0xa1   : > { %2405 = vst [vmem:[%s3888_s21 + $0x3e0] sm:$0xff] %v1381_v6  ;;  %2406 = vst [vmem:[%s3888_s21 + $0x3e8] sm:$0xff] %v1382_v12  ;;  %v1407_v61 = vmul.f32 %v3862_v7, %v371_v58  ;;  %v1408_v62 = vmul.f32 %v3864_v8, %v372_v59  ;;  %v373_v63 = vld [vmem:[%s3848_s6 + $0x4c0] sm:$0xff]  ;;  %v374_v0 = vld [vmem:[%s3848_s6 + $0x4c8] sm:$0xff] }
  0xa2   : > { %2407 = vst [vmem:[%s3888_s21 + $0x3f0] sm:$0xff] %v1383_v13  ;;  %2408 = vst [vmem:[%s3888_s21 + $0x3f8] sm:$0xff] %v1384_v14  ;;  %v375_v1 = vld [vmem:[%s3848_s6 + $0x4d0] sm:$0xff]  ;;  %v1409_v2 = vmul.f32 %v3862_v7, %v373_v63  ;;  %v1410_v3 = vmul.f32 %v3864_v8, %v374_v0  ;;  %v376_v5 = vld [vmem:[%s3848_s6 + $0x4d8] sm:$0xff] }
  0xa3   : > { %2409 = vst [vmem:[%s3888_s21 + $0x400] sm:$0xff] %v1385_v18  ;;  %2410 = vst [vmem:[%s3888_s21 + $0x408] sm:$0xff] %v1386_v19  ;;  %v1411_v4 = vmul.f32 %v3862_v7, %v375_v1  ;;  %v377_v6 = vld [vmem:[%s3848_s6 + $0x4e0] sm:$0xff]  ;;  %v378_v9 = vld [vmem:[%s3848_s6 + $0x4e8] sm:$0xff]  ;;  %v1412_v10 = vmul.f32 %v3864_v8, %v376_v5 }
  0xa4   : > { %2411 = vst [vmem:[%s3888_s21 + $0x410] sm:$0xff] %v1387_v20  ;;  %2412 = vst [vmem:[%s3888_s21 + $0x418] sm:$0xff] %v1388_v24  ;;  %v1413_v11 = vmul.f32 %v3862_v7, %v377_v6  ;;  %v1414_v12 = vmul.f32 %v3864_v8, %v378_v9  ;;  %v379_v13 = vld [vmem:[%s3848_s6 + $0x4f0] sm:$0xff]  ;;  %v380_v14 = vld [vmem:[%s3848_s6 + $0x4f8] sm:$0xff] }
  0xa5   : > { %2413 = vst [vmem:[%s3888_s21 + $0x420] sm:$0xff] %v1389_v25  ;;  %2414 = vst [vmem:[%s3888_s21 + $0x428] sm:$0xff] %v1390_v26  ;;  %v381_v15 = vld [vmem:[%s3848_s6 + $0x500] sm:$0xff]  ;;  %v1415_v16 = vmul.f32 %v3862_v7, %v379_v13  ;;  %v1416_v17 = vmul.f32 %v3864_v8, %v380_v14  ;;  %v382_v19 = vld [vmem:[%s3848_s6 + $0x508] sm:$0xff] }
  0xa6   : > { %2415 = vst [vmem:[%s3888_s21 + $0x430] sm:$0xff] %v1391_v30  ;;  %2416 = vst [vmem:[%s3888_s21 + $0x438] sm:$0xff] %v1392_v31  ;;  %v1417_v18 = vmul.f32 %v3862_v7, %v381_v15  ;;  %v383_v20 = vld [vmem:[%s3848_s6 + $0x510] sm:$0xff]  ;;  %v384_v21 = vld [vmem:[%s3848_s6 + $0x518] sm:$0xff]  ;;  %v1418_v22 = vmul.f32 %v3864_v8, %v382_v19 }
  0xa7   : > { %2417 = vst [vmem:[%s3888_s21 + $0x440] sm:$0xff] %v1393_v32  ;;  %2418 = vst [vmem:[%s3888_s21 + $0x448] sm:$0xff] %v1394_v36  ;;  %v1419_v23 = vmul.f32 %v3862_v7, %v383_v20  ;;  %v1420_v24 = vmul.f32 %v3864_v8, %v384_v21  ;;  %v385_v25 = vld [vmem:[%s3848_s6 + $0x520] sm:$0xff]  ;;  %v386_v26 = vld [vmem:[%s3848_s6 + $0x528] sm:$0xff] }
  0xa8   : > { %2419 = vst [vmem:[%s3888_s21 + $0x450] sm:$0xff] %v1395_v37  ;;  %2420 = vst [vmem:[%s3888_s21 + $0x458] sm:$0xff] %v1396_v38  ;;  %v387_v27 = vld [vmem:[%s3848_s6 + $0x530] sm:$0xff]  ;;  %v1421_v28 = vmul.f32 %v3862_v7, %v385_v25  ;;  %v1422_v29 = vmul.f32 %v3864_v8, %v386_v26  ;;  %v388_v31 = vld [vmem:[%s3848_s6 + $0x538] sm:$0xff] }
  0xa9   : > { %2421 = vst [vmem:[%s3888_s21 + $0x460] sm:$0xff] %v1397_v42  ;;  %2422 = vst [vmem:[%s3888_s21 + $0x468] sm:$0xff] %v1398_v43  ;;  %v1423_v30 = vmul.f32 %v3862_v7, %v387_v27  ;;  %v389_v32 = vld [vmem:[%s3848_s6 + $0x540] sm:$0xff]  ;;  %v390_v33 = vld [vmem:[%s3848_s6 + $0x548] sm:$0xff]  ;;  %v1424_v34 = vmul.f32 %v3864_v8, %v388_v31 }
  0xaa   : > { %2423 = vst [vmem:[%s3888_s21 + $0x470] sm:$0xff] %v1399_v44  ;;  %2424 = vst [vmem:[%s3888_s21 + $0x478] sm:$0xff] %v1400_v48  ;;  %v1425_v35 = vmul.f32 %v3862_v7, %v389_v32  ;;  %v1426_v36 = vmul.f32 %v3864_v8, %v390_v33  ;;  %v391_v37 = vld [vmem:[%s3848_s6 + $0x550] sm:$0xff]  ;;  %v392_v38 = vld [vmem:[%s3848_s6 + $0x558] sm:$0xff] }
  0xab   : > { %2425 = vst [vmem:[%s3888_s21 + $0x480] sm:$0xff] %v1401_v49  ;;  %2426 = vst [vmem:[%s3888_s21 + $0x488] sm:$0xff] %v1402_v50  ;;  %v393_v39 = vld [vmem:[%s3848_s6 + $0x560] sm:$0xff]  ;;  %v1427_v40 = vmul.f32 %v3862_v7, %v391_v37  ;;  %v1428_v41 = vmul.f32 %v3864_v8, %v392_v38  ;;  %v394_v43 = vld [vmem:[%s3848_s6 + $0x568] sm:$0xff] }
  0xac   : > { %2427 = vst [vmem:[%s3888_s21 + $0x490] sm:$0xff] %v1403_v54  ;;  %2428 = vst [vmem:[%s3888_s21 + $0x498] sm:$0xff] %v1404_v55  ;;  %v1429_v42 = vmul.f32 %v3862_v7, %v393_v39  ;;  %v395_v44 = vld [vmem:[%s3848_s6 + $0x570] sm:$0xff]  ;;  %v396_v45 = vld [vmem:[%s3848_s6 + $0x578] sm:$0xff]  ;;  %v1430_v46 = vmul.f32 %v3864_v8, %v394_v43 }
  0xad   : > { %2429 = vst [vmem:[%s3888_s21 + $0x4a0] sm:$0xff] %v1405_v56  ;;  %2430 = vst [vmem:[%s3888_s21 + $0x4a8] sm:$0xff] %v1406_v60  ;;  %v1431_v47 = vmul.f32 %v3862_v7, %v395_v44  ;;  %v1432_v48 = vmul.f32 %v3864_v8, %v396_v45  ;;  %v397_v49 = vld [vmem:[%s3848_s6 + $0x580] sm:$0xff]  ;;  %v398_v50 = vld [vmem:[%s3848_s6 + $0x588] sm:$0xff] }
  0xae   : > { %2431 = vst [vmem:[%s3888_s21 + $0x4b0] sm:$0xff] %v1407_v61  ;;  %2432 = vst [vmem:[%s3888_s21 + $0x4b8] sm:$0xff] %v1408_v62  ;;  %v399_v51 = vld [vmem:[%s3848_s6 + $0x590] sm:$0xff]  ;;  %v1433_v52 = vmul.f32 %v3862_v7, %v397_v49  ;;  %v1434_v53 = vmul.f32 %v3864_v8, %v398_v50  ;;  %v400_v55 = vld [vmem:[%s3848_s6 + $0x598] sm:$0xff] }
  0xaf   : > { %2433 = vst [vmem:[%s3888_s21 + $0x4c0] sm:$0xff] %v1409_v2  ;;  %2434 = vst [vmem:[%s3888_s21 + $0x4c8] sm:$0xff] %v1410_v3  ;;  %v1435_v54 = vmul.f32 %v3862_v7, %v399_v51  ;;  %v401_v56 = vld [vmem:[%s3848_s6 + $0x5a0] sm:$0xff]  ;;  %v402_v57 = vld [vmem:[%s3848_s6 + $0x5a8] sm:$0xff]  ;;  %v1436_v58 = vmul.f32 %v3864_v8, %v400_v55 }
  0xb0   : > { %2435 = vst [vmem:[%s3888_s21 + $0x4d0] sm:$0xff] %v1411_v4  ;;  %2436 = vst [vmem:[%s3888_s21 + $0x4d8] sm:$0xff] %v1412_v10  ;;  %v1437_v59 = vmul.f32 %v3862_v7, %v401_v56  ;;  %v1438_v60 = vmul.f32 %v3864_v8, %v402_v57  ;;  %v403_v61 = vld [vmem:[%s3848_s6 + $0x5b0] sm:$0xff]  ;;  %v404_v62 = vld [vmem:[%s3848_s6 + $0x5b8] sm:$0xff] }
  0xb1   : > { %2437 = vst [vmem:[%s3888_s21 + $0x4e0] sm:$0xff] %v1413_v11  ;;  %2438 = vst [vmem:[%s3888_s21 + $0x4e8] sm:$0xff] %v1414_v12  ;;  %v405_v63 = vld [vmem:[%s3848_s6 + $0x5c0] sm:$0xff]  ;;  %v1439_v0 = vmul.f32 %v3862_v7, %v403_v61  ;;  %v1440_v1 = vmul.f32 %v3864_v8, %v404_v62  ;;  %v406_v3 = vld [vmem:[%s3848_s6 + $0x5c8] sm:$0xff] }
  0xb2   : > { %2439 = vst [vmem:[%s3888_s21 + $0x4f0] sm:$0xff] %v1415_v16  ;;  %2440 = vst [vmem:[%s3888_s21 + $0x4f8] sm:$0xff] %v1416_v17  ;;  %v1441_v2 = vmul.f32 %v3862_v7, %v405_v63  ;;  %v407_v4 = vld [vmem:[%s3848_s6 + $0x5d0] sm:$0xff]  ;;  %v408_v5 = vld [vmem:[%s3848_s6 + $0x5d8] sm:$0xff]  ;;  %v1442_v6 = vmul.f32 %v3864_v8, %v406_v3 }
  0xb3   : > { %2441 = vst [vmem:[%s3888_s21 + $0x500] sm:$0xff] %v1417_v18  ;;  %2442 = vst [vmem:[%s3888_s21 + $0x508] sm:$0xff] %v1418_v22  ;;  %v1443_v9 = vmul.f32 %v3862_v7, %v407_v4  ;;  %v1444_v10 = vmul.f32 %v3864_v8, %v408_v5  ;;  %v409_v11 = vld [vmem:[%s3848_s6 + $0x5e0] sm:$0xff]  ;;  %v410_v12 = vld [vmem:[%s3848_s6 + $0x5e8] sm:$0xff] }
  0xb4   : > { %2443 = vst [vmem:[%s3888_s21 + $0x510] sm:$0xff] %v1419_v23  ;;  %2444 = vst [vmem:[%s3888_s21 + $0x518] sm:$0xff] %v1420_v24  ;;  %v411_v13 = vld [vmem:[%s3848_s6 + $0x5f0] sm:$0xff]  ;;  %v1445_v14 = vmul.f32 %v3862_v7, %v409_v11  ;;  %v1446_v15 = vmul.f32 %v3864_v8, %v410_v12  ;;  %v412_v17 = vld [vmem:[%s3848_s6 + $0x5f8] sm:$0xff] }
  0xb5   : > { %2445 = vst [vmem:[%s3888_s21 + $0x520] sm:$0xff] %v1421_v28  ;;  %2446 = vst [vmem:[%s3888_s21 + $0x528] sm:$0xff] %v1422_v29  ;;  %v1447_v16 = vmul.f32 %v3862_v7, %v411_v13  ;;  %v413_v18 = vld [vmem:[%s3848_s6 + $0x600] sm:$0xff]  ;;  %v414_v19 = vld [vmem:[%s3848_s6 + $0x608] sm:$0xff]  ;;  %v1448_v20 = vmul.f32 %v3864_v8, %v412_v17 }
  0xb6   : > { %2447 = vst [vmem:[%s3888_s21 + $0x530] sm:$0xff] %v1423_v30  ;;  %2448 = vst [vmem:[%s3888_s21 + $0x538] sm:$0xff] %v1424_v34  ;;  %v1449_v21 = vmul.f32 %v3862_v7, %v413_v18  ;;  %v1450_v22 = vmul.f32 %v3864_v8, %v414_v19  ;;  %v415_v23 = vld [vmem:[%s3848_s6 + $0x610] sm:$0xff]  ;;  %v416_v24 = vld [vmem:[%s3848_s6 + $0x618] sm:$0xff] }
  0xb7   : > { %2449 = vst [vmem:[%s3888_s21 + $0x540] sm:$0xff] %v1425_v35  ;;  %2450 = vst [vmem:[%s3888_s21 + $0x548] sm:$0xff] %v1426_v36  ;;  %v417_v25 = vld [vmem:[%s3848_s6 + $0x620] sm:$0xff]  ;;  %v1451_v26 = vmul.f32 %v3862_v7, %v415_v23  ;;  %v1452_v27 = vmul.f32 %v3864_v8, %v416_v24  ;;  %v418_v29 = vld [vmem:[%s3848_s6 + $0x628] sm:$0xff] }
  0xb8   : > { %2451 = vst [vmem:[%s3888_s21 + $0x550] sm:$0xff] %v1427_v40  ;;  %2452 = vst [vmem:[%s3888_s21 + $0x558] sm:$0xff] %v1428_v41  ;;  %v1453_v28 = vmul.f32 %v3862_v7, %v417_v25  ;;  %v419_v30 = vld [vmem:[%s3848_s6 + $0x630] sm:$0xff]  ;;  %v420_v31 = vld [vmem:[%s3848_s6 + $0x638] sm:$0xff]  ;;  %v1454_v32 = vmul.f32 %v3864_v8, %v418_v29 }
  0xb9   : > { %2453 = vst [vmem:[%s3888_s21 + $0x560] sm:$0xff] %v1429_v42  ;;  %2454 = vst [vmem:[%s3888_s21 + $0x568] sm:$0xff] %v1430_v46  ;;  %v1455_v33 = vmul.f32 %v3862_v7, %v419_v30  ;;  %v1456_v34 = vmul.f32 %v3864_v8, %v420_v31  ;;  %v421_v35 = vld [vmem:[%s3848_s6 + $0x640] sm:$0xff]  ;;  %v422_v36 = vld [vmem:[%s3848_s6 + $0x648] sm:$0xff] }
  0xba   : > { %2455 = vst [vmem:[%s3888_s21 + $0x570] sm:$0xff] %v1431_v47  ;;  %2456 = vst [vmem:[%s3888_s21 + $0x578] sm:$0xff] %v1432_v48  ;;  %v423_v37 = vld [vmem:[%s3848_s6 + $0x650] sm:$0xff]  ;;  %v1457_v38 = vmul.f32 %v3862_v7, %v421_v35  ;;  %v1458_v39 = vmul.f32 %v3864_v8, %v422_v36  ;;  %v424_v41 = vld [vmem:[%s3848_s6 + $0x658] sm:$0xff] }
  0xbb   : > { %2457 = vst [vmem:[%s3888_s21 + $0x580] sm:$0xff] %v1433_v52  ;;  %2458 = vst [vmem:[%s3888_s21 + $0x588] sm:$0xff] %v1434_v53  ;;  %v1459_v40 = vmul.f32 %v3862_v7, %v423_v37  ;;  %v425_v42 = vld [vmem:[%s3848_s6 + $0x660] sm:$0xff]  ;;  %v426_v43 = vld [vmem:[%s3848_s6 + $0x668] sm:$0xff]  ;;  %v1460_v44 = vmul.f32 %v3864_v8, %v424_v41 }
  0xbc   : > { %2459 = vst [vmem:[%s3888_s21 + $0x590] sm:$0xff] %v1435_v54  ;;  %2460 = vst [vmem:[%s3888_s21 + $0x598] sm:$0xff] %v1436_v58  ;;  %v1461_v45 = vmul.f32 %v3862_v7, %v425_v42  ;;  %v1462_v46 = vmul.f32 %v3864_v8, %v426_v43  ;;  %v427_v47 = vld [vmem:[%s3848_s6 + $0x670] sm:$0xff]  ;;  %v428_v48 = vld [vmem:[%s3848_s6 + $0x678] sm:$0xff] }
  0xbd   : > { %2461 = vst [vmem:[%s3888_s21 + $0x5a0] sm:$0xff] %v1437_v59  ;;  %2462 = vst [vmem:[%s3888_s21 + $0x5a8] sm:$0xff] %v1438_v60  ;;  %v429_v49 = vld [vmem:[%s3848_s6 + $0x680] sm:$0xff]  ;;  %v1463_v50 = vmul.f32 %v3862_v7, %v427_v47  ;;  %v1464_v51 = vmul.f32 %v3864_v8, %v428_v48  ;;  %v430_v53 = vld [vmem:[%s3848_s6 + $0x688] sm:$0xff] }
  0xbe   : > { %2463 = vst [vmem:[%s3888_s21 + $0x5b0] sm:$0xff] %v1439_v0  ;;  %2464 = vst [vmem:[%s3888_s21 + $0x5b8] sm:$0xff] %v1440_v1  ;;  %v1465_v52 = vmul.f32 %v3862_v7, %v429_v49  ;;  %v431_v54 = vld [vmem:[%s3848_s6 + $0x690] sm:$0xff]  ;;  %v432_v55 = vld [vmem:[%s3848_s6 + $0x698] sm:$0xff]  ;;  %v1466_v56 = vmul.f32 %v3864_v8, %v430_v53 }
  0xbf   : > { %2465 = vst [vmem:[%s3888_s21 + $0x5c0] sm:$0xff] %v1441_v2  ;;  %2466 = vst [vmem:[%s3888_s21 + $0x5c8] sm:$0xff] %v1442_v6  ;;  %v1467_v57 = vmul.f32 %v3862_v7, %v431_v54  ;;  %v1468_v58 = vmul.f32 %v3864_v8, %v432_v55  ;;  %v433_v59 = vld [vmem:[%s3848_s6 + $0x6a0] sm:$0xff]  ;;  %v434_v60 = vld [vmem:[%s3848_s6 + $0x6a8] sm:$0xff] }
  0xc0   : > { %2467 = vst [vmem:[%s3888_s21 + $0x5d0] sm:$0xff] %v1443_v9  ;;  %2468 = vst [vmem:[%s3888_s21 + $0x5d8] sm:$0xff] %v1444_v10  ;;  %v435_v61 = vld [vmem:[%s3848_s6 + $0x6b0] sm:$0xff]  ;;  %v1469_v62 = vmul.f32 %v3862_v7, %v433_v59  ;;  %v1470_v63 = vmul.f32 %v3864_v8, %v434_v60  ;;  %v436_v1 = vld [vmem:[%s3848_s6 + $0x6b8] sm:$0xff] }
  0xc1   : > { %2469 = vst [vmem:[%s3888_s21 + $0x5e0] sm:$0xff] %v1445_v14  ;;  %2470 = vst [vmem:[%s3888_s21 + $0x5e8] sm:$0xff] %v1446_v15  ;;  %v1471_v0 = vmul.f32 %v3862_v7, %v435_v61  ;;  %v437_v2 = vld [vmem:[%s3848_s6 + $0x6c0] sm:$0xff]  ;;  %v438_v3 = vld [vmem:[%s3848_s6 + $0x6c8] sm:$0xff]  ;;  %v1472_v4 = vmul.f32 %v3864_v8, %v436_v1 }
  0xc2   : > { %2471 = vst [vmem:[%s3888_s21 + $0x5f0] sm:$0xff] %v1447_v16  ;;  %2472 = vst [vmem:[%s3888_s21 + $0x5f8] sm:$0xff] %v1448_v20  ;;  %v1473_v5 = vmul.f32 %v3862_v7, %v437_v2  ;;  %v1474_v6 = vmul.f32 %v3864_v8, %v438_v3  ;;  %v439_v9 = vld [vmem:[%s3848_s6 + $0x6d0] sm:$0xff]  ;;  %v440_v10 = vld [vmem:[%s3848_s6 + $0x6d8] sm:$0xff] }
  0xc3   : > { %2473 = vst [vmem:[%s3888_s21 + $0x600] sm:$0xff] %v1449_v21  ;;  %2474 = vst [vmem:[%s3888_s21 + $0x608] sm:$0xff] %v1450_v22  ;;  %v441_v11 = vld [vmem:[%s3848_s6 + $0x6e0] sm:$0xff]  ;;  %v1475_v12 = vmul.f32 %v3862_v7, %v439_v9  ;;  %v1476_v13 = vmul.f32 %v3864_v8, %v440_v10  ;;  %v442_v15 = vld [vmem:[%s3848_s6 + $0x6e8] sm:$0xff] }
  0xc4   : > { %2475 = vst [vmem:[%s3888_s21 + $0x610] sm:$0xff] %v1451_v26  ;;  %2476 = vst [vmem:[%s3888_s21 + $0x618] sm:$0xff] %v1452_v27  ;;  %v1477_v14 = vmul.f32 %v3862_v7, %v441_v11  ;;  %v443_v16 = vld [vmem:[%s3848_s6 + $0x6f0] sm:$0xff]  ;;  %v444_v17 = vld [vmem:[%s3848_s6 + $0x6f8] sm:$0xff]  ;;  %v1478_v18 = vmul.f32 %v3864_v8, %v442_v15 }
  0xc5   : > { %2477 = vst [vmem:[%s3888_s21 + $0x620] sm:$0xff] %v1453_v28  ;;  %2478 = vst [vmem:[%s3888_s21 + $0x628] sm:$0xff] %v1454_v32  ;;  %v1479_v19 = vmul.f32 %v3862_v7, %v443_v16  ;;  %v1480_v20 = vmul.f32 %v3864_v8, %v444_v17  ;;  %v445_v21 = vld [vmem:[%s3848_s6 + $0x700] sm:$0xff]  ;;  %v446_v22 = vld [vmem:[%s3848_s6 + $0x708] sm:$0xff] }
  0xc6   : > { %2479 = vst [vmem:[%s3888_s21 + $0x630] sm:$0xff] %v1455_v33  ;;  %2480 = vst [vmem:[%s3888_s21 + $0x638] sm:$0xff] %v1456_v34  ;;  %v447_v23 = vld [vmem:[%s3848_s6 + $0x710] sm:$0xff]  ;;  %v1481_v24 = vmul.f32 %v3862_v7, %v445_v21  ;;  %v1482_v25 = vmul.f32 %v3864_v8, %v446_v22  ;;  %v448_v27 = vld [vmem:[%s3848_s6 + $0x718] sm:$0xff] }
  0xc7   : > { %2481 = vst [vmem:[%s3888_s21 + $0x640] sm:$0xff] %v1457_v38  ;;  %2482 = vst [vmem:[%s3888_s21 + $0x648] sm:$0xff] %v1458_v39  ;;  %v1483_v26 = vmul.f32 %v3862_v7, %v447_v23  ;;  %v449_v28 = vld [vmem:[%s3848_s6 + $0x720] sm:$0xff]  ;;  %v450_v29 = vld [vmem:[%s3848_s6 + $0x728] sm:$0xff]  ;;  %v1484_v30 = vmul.f32 %v3864_v8, %v448_v27 }
  0xc8   : > { %2483 = vst [vmem:[%s3888_s21 + $0x650] sm:$0xff] %v1459_v40  ;;  %2484 = vst [vmem:[%s3888_s21 + $0x658] sm:$0xff] %v1460_v44  ;;  %v1485_v31 = vmul.f32 %v3862_v7, %v449_v28  ;;  %v1486_v32 = vmul.f32 %v3864_v8, %v450_v29  ;;  %v451_v33 = vld [vmem:[%s3848_s6 + $0x730] sm:$0xff]  ;;  %v452_v34 = vld [vmem:[%s3848_s6 + $0x738] sm:$0xff] }
  0xc9   : > { %2485 = vst [vmem:[%s3888_s21 + $0x660] sm:$0xff] %v1461_v45  ;;  %2486 = vst [vmem:[%s3888_s21 + $0x668] sm:$0xff] %v1462_v46  ;;  %v453_v35 = vld [vmem:[%s3848_s6 + $0x740] sm:$0xff]  ;;  %v1487_v36 = vmul.f32 %v3862_v7, %v451_v33  ;;  %v1488_v37 = vmul.f32 %v3864_v8, %v452_v34  ;;  %v454_v39 = vld [vmem:[%s3848_s6 + $0x748] sm:$0xff] }
  0xca   : > { %2487 = vst [vmem:[%s3888_s21 + $0x670] sm:$0xff] %v1463_v50  ;;  %2488 = vst [vmem:[%s3888_s21 + $0x678] sm:$0xff] %v1464_v51  ;;  %v1489_v38 = vmul.f32 %v3862_v7, %v453_v35  ;;  %v455_v40 = vld [vmem:[%s3848_s6 + $0x750] sm:$0xff]  ;;  %v456_v41 = vld [vmem:[%s3848_s6 + $0x758] sm:$0xff]  ;;  %v1490_v42 = vmul.f32 %v3864_v8, %v454_v39 }
  0xcb   : > { %2489 = vst [vmem:[%s3888_s21 + $0x680] sm:$0xff] %v1465_v52  ;;  %2490 = vst [vmem:[%s3888_s21 + $0x688] sm:$0xff] %v1466_v56  ;;  %v1491_v43 = vmul.f32 %v3862_v7, %v455_v40  ;;  %v1492_v44 = vmul.f32 %v3864_v8, %v456_v41  ;;  %v457_v45 = vld [vmem:[%s3848_s6 + $0x760] sm:$0xff]  ;;  %v458_v46 = vld [vmem:[%s3848_s6 + $0x768] sm:$0xff] }
  0xcc   : > { %2491 = vst [vmem:[%s3888_s21 + $0x690] sm:$0xff] %v1467_v57  ;;  %2492 = vst [vmem:[%s3888_s21 + $0x698] sm:$0xff] %v1468_v58  ;;  %v459_v47 = vld [vmem:[%s3848_s6 + $0x770] sm:$0xff]  ;;  %v1493_v48 = vmul.f32 %v3862_v7, %v457_v45  ;;  %v1494_v49 = vmul.f32 %v3864_v8, %v458_v46  ;;  %v460_v51 = vld [vmem:[%s3848_s6 + $0x778] sm:$0xff] }
  0xcd   : > { %2493 = vst [vmem:[%s3888_s21 + $0x6a0] sm:$0xff] %v1469_v62  ;;  %2494 = vst [vmem:[%s3888_s21 + $0x6a8] sm:$0xff] %v1470_v63  ;;  %v1495_v50 = vmul.f32 %v3862_v7, %v459_v47  ;;  %v461_v52 = vld [vmem:[%s3848_s6 + $0x780] sm:$0xff]  ;;  %v462_v53 = vld [vmem:[%s3848_s6 + $0x788] sm:$0xff]  ;;  %v1496_v54 = vmul.f32 %v3864_v8, %v460_v51 }
  0xce   : > { %2495 = vst [vmem:[%s3888_s21 + $0x6b0] sm:$0xff] %v1471_v0  ;;  %2496 = vst [vmem:[%s3888_s21 + $0x6b8] sm:$0xff] %v1472_v4  ;;  %v1497_v55 = vmul.f32 %v3862_v7, %v461_v52  ;;  %v1498_v56 = vmul.f32 %v3864_v8, %v462_v53  ;;  %v463_v57 = vld [vmem:[%s3848_s6 + $0x790] sm:$0xff]  ;;  %v464_v58 = vld [vmem:[%s3848_s6 + $0x798] sm:$0xff] }
  0xcf   : > { %2497 = vst [vmem:[%s3888_s21 + $0x6c0] sm:$0xff] %v1473_v5  ;;  %2498 = vst [vmem:[%s3888_s21 + $0x6c8] sm:$0xff] %v1474_v6  ;;  %v465_v59 = vld [vmem:[%s3848_s6 + $0x7a0] sm:$0xff]  ;;  %v1499_v60 = vmul.f32 %v3862_v7, %v463_v57  ;;  %v1500_v61 = vmul.f32 %v3864_v8, %v464_v58  ;;  %v466_v63 = vld [vmem:[%s3848_s6 + $0x7a8] sm:$0xff] }
  0xd0   : > { %2499 = vst [vmem:[%s3888_s21 + $0x6d0] sm:$0xff] %v1475_v12  ;;  %2500 = vst [vmem:[%s3888_s21 + $0x6d8] sm:$0xff] %v1476_v13  ;;  %v1501_v62 = vmul.f32 %v3862_v7, %v465_v59  ;;  %v467_v0 = vld [vmem:[%s3848_s6 + $0x7b0] sm:$0xff]  ;;  %v468_v1 = vld [vmem:[%s3848_s6 + $0x7b8] sm:$0xff]  ;;  %v1502_v2 = vmul.f32 %v3864_v8, %v466_v63 }
  0xd1   : > { %2501 = vst [vmem:[%s3888_s21 + $0x6e0] sm:$0xff] %v1477_v14  ;;  %2502 = vst [vmem:[%s3888_s21 + $0x6e8] sm:$0xff] %v1478_v18  ;;  %v1503_v3 = vmul.f32 %v3862_v7, %v467_v0  ;;  %v1504_v4 = vmul.f32 %v3864_v8, %v468_v1  ;;  %v469_v5 = vld [vmem:[%s3848_s6 + $0x7c0] sm:$0xff]  ;;  %v470_v6 = vld [vmem:[%s3848_s6 + $0x7c8] sm:$0xff] }
  0xd2   : > { %2503 = vst [vmem:[%s3888_s21 + $0x6f0] sm:$0xff] %v1479_v19  ;;  %2504 = vst [vmem:[%s3888_s21 + $0x6f8] sm:$0xff] %v1480_v20  ;;  %v471_v9 = vld [vmem:[%s3848_s6 + $0x7d0] sm:$0xff]  ;;  %v1505_v10 = vmul.f32 %v3862_v7, %v469_v5  ;;  %v1506_v11 = vmul.f32 %v3864_v8, %v470_v6  ;;  %v472_v13 = vld [vmem:[%s3848_s6 + $0x7d8] sm:$0xff] }
  0xd3   : > { %2505 = vst [vmem:[%s3888_s21 + $0x700] sm:$0xff] %v1481_v24  ;;  %2506 = vst [vmem:[%s3888_s21 + $0x708] sm:$0xff] %v1482_v25  ;;  %v1507_v12 = vmul.f32 %v3862_v7, %v471_v9  ;;  %v473_v14 = vld [vmem:[%s3848_s6 + $0x7e0] sm:$0xff]  ;;  %v474_v15 = vld [vmem:[%s3848_s6 + $0x7e8] sm:$0xff]  ;;  %v1508_v16 = vmul.f32 %v3864_v8, %v472_v13 }
  0xd4   : > { %2507 = vst [vmem:[%s3888_s21 + $0x710] sm:$0xff] %v1483_v26  ;;  %2508 = vst [vmem:[%s3888_s21 + $0x718] sm:$0xff] %v1484_v30  ;;  %v1509_v17 = vmul.f32 %v3862_v7, %v473_v14  ;;  %v1510_v18 = vmul.f32 %v3864_v8, %v474_v15  ;;  %v475_v19 = vld [vmem:[%s3848_s6 + $0x7f0] sm:$0xff]  ;;  %v476_v20 = vld [vmem:[%s3848_s6 + $0x7f8] sm:$0xff] }
  0xd5   : > { %2509 = vst [vmem:[%s3888_s21 + $0x720] sm:$0xff] %v1485_v31  ;;  %2510 = vst [vmem:[%s3888_s21 + $0x728] sm:$0xff] %v1486_v32  ;;  %v477_v21 = vld [vmem:[%s3848_s6 + $0x800] sm:$0xff]  ;;  %v1511_v22 = vmul.f32 %v3862_v7, %v475_v19  ;;  %v1512_v23 = vmul.f32 %v3864_v8, %v476_v20  ;;  %v478_v25 = vld [vmem:[%s3848_s6 + $0x808] sm:$0xff] }
  0xd6   : > { %2511 = vst [vmem:[%s3888_s21 + $0x730] sm:$0xff] %v1487_v36  ;;  %2512 = vst [vmem:[%s3888_s21 + $0x738] sm:$0xff] %v1488_v37  ;;  %v1513_v24 = vmul.f32 %v3862_v7, %v477_v21  ;;  %v479_v26 = vld [vmem:[%s3848_s6 + $0x810] sm:$0xff]  ;;  %v480_v27 = vld [vmem:[%s3848_s6 + $0x818] sm:$0xff]  ;;  %v1514_v28 = vmul.f32 %v3864_v8, %v478_v25 }
  0xd7   : > { %2513 = vst [vmem:[%s3888_s21 + $0x740] sm:$0xff] %v1489_v38  ;;  %2514 = vst [vmem:[%s3888_s21 + $0x748] sm:$0xff] %v1490_v42  ;;  %v1515_v29 = vmul.f32 %v3862_v7, %v479_v26  ;;  %v1516_v30 = vmul.f32 %v3864_v8, %v480_v27  ;;  %v481_v31 = vld [vmem:[%s3848_s6 + $0x820] sm:$0xff]  ;;  %v482_v32 = vld [vmem:[%s3848_s6 + $0x828] sm:$0xff] }
  0xd8   : > { %2515 = vst [vmem:[%s3888_s21 + $0x750] sm:$0xff] %v1491_v43  ;;  %2516 = vst [vmem:[%s3888_s21 + $0x758] sm:$0xff] %v1492_v44  ;;  %v483_v33 = vld [vmem:[%s3848_s6 + $0x830] sm:$0xff]  ;;  %v1517_v34 = vmul.f32 %v3862_v7, %v481_v31  ;;  %v1518_v35 = vmul.f32 %v3864_v8, %v482_v32  ;;  %v484_v37 = vld [vmem:[%s3848_s6 + $0x838] sm:$0xff] }
  0xd9   : > { %2517 = vst [vmem:[%s3888_s21 + $0x760] sm:$0xff] %v1493_v48  ;;  %2518 = vst [vmem:[%s3888_s21 + $0x768] sm:$0xff] %v1494_v49  ;;  %v1519_v36 = vmul.f32 %v3862_v7, %v483_v33  ;;  %v485_v38 = vld [vmem:[%s3848_s6 + $0x840] sm:$0xff]  ;;  %v486_v39 = vld [vmem:[%s3848_s6 + $0x848] sm:$0xff]  ;;  %v1520_v40 = vmul.f32 %v3864_v8, %v484_v37 }
  0xda   : > { %2519 = vst [vmem:[%s3888_s21 + $0x770] sm:$0xff] %v1495_v50  ;;  %2520 = vst [vmem:[%s3888_s21 + $0x778] sm:$0xff] %v1496_v54  ;;  %v1521_v41 = vmul.f32 %v3862_v7, %v485_v38  ;;  %v1522_v42 = vmul.f32 %v3864_v8, %v486_v39  ;;  %v487_v43 = vld [vmem:[%s3848_s6 + $0x850] sm:$0xff]  ;;  %v488_v44 = vld [vmem:[%s3848_s6 + $0x858] sm:$0xff] }
  0xdb   : > { %2521 = vst [vmem:[%s3888_s21 + $0x780] sm:$0xff] %v1497_v55  ;;  %2522 = vst [vmem:[%s3888_s21 + $0x788] sm:$0xff] %v1498_v56  ;;  %v489_v45 = vld [vmem:[%s3848_s6 + $0x860] sm:$0xff]  ;;  %v1523_v46 = vmul.f32 %v3862_v7, %v487_v43  ;;  %v1524_v47 = vmul.f32 %v3864_v8, %v488_v44  ;;  %v490_v49 = vld [vmem:[%s3848_s6 + $0x868] sm:$0xff] }
  0xdc   : > { %2523 = vst [vmem:[%s3888_s21 + $0x790] sm:$0xff] %v1499_v60  ;;  %2524 = vst [vmem:[%s3888_s21 + $0x798] sm:$0xff] %v1500_v61  ;;  %v1525_v48 = vmul.f32 %v3862_v7, %v489_v45  ;;  %v491_v50 = vld [vmem:[%s3848_s6 + $0x870] sm:$0xff]  ;;  %v492_v51 = vld [vmem:[%s3848_s6 + $0x878] sm:$0xff]  ;;  %v1526_v52 = vmul.f32 %v3864_v8, %v490_v49 }
  0xdd   : > { %2525 = vst [vmem:[%s3888_s21 + $0x7a0] sm:$0xff] %v1501_v62  ;;  %2526 = vst [vmem:[%s3888_s21 + $0x7a8] sm:$0xff] %v1502_v2  ;;  %v1527_v53 = vmul.f32 %v3862_v7, %v491_v50  ;;  %v1528_v54 = vmul.f32 %v3864_v8, %v492_v51  ;;  %v493_v55 = vld [vmem:[%s3848_s6 + $0x880] sm:$0xff]  ;;  %v494_v56 = vld [vmem:[%s3848_s6 + $0x888] sm:$0xff] }
  0xde   : > { %2527 = vst [vmem:[%s3888_s21 + $0x7b0] sm:$0xff] %v1503_v3  ;;  %2528 = vst [vmem:[%s3888_s21 + $0x7b8] sm:$0xff] %v1504_v4  ;;  %v495_v57 = vld [vmem:[%s3848_s6 + $0x890] sm:$0xff]  ;;  %v1529_v58 = vmul.f32 %v3862_v7, %v493_v55  ;;  %v1530_v59 = vmul.f32 %v3864_v8, %v494_v56  ;;  %v496_v61 = vld [vmem:[%s3848_s6 + $0x898] sm:$0xff] }
  0xdf   : > { %2529 = vst [vmem:[%s3888_s21 + $0x7c0] sm:$0xff] %v1505_v10  ;;  %2530 = vst [vmem:[%s3888_s21 + $0x7c8] sm:$0xff] %v1506_v11  ;;  %v1531_v60 = vmul.f32 %v3862_v7, %v495_v57  ;;  %v497_v62 = vld [vmem:[%s3848_s6 + $0x8a0] sm:$0xff]  ;;  %v498_v63 = vld [vmem:[%s3848_s6 + $0x8a8] sm:$0xff]  ;;  %v1532_v0 = vmul.f32 %v3864_v8, %v496_v61 }
  0xe0   : > { %2531 = vst [vmem:[%s3888_s21 + $0x7d0] sm:$0xff] %v1507_v12  ;;  %2532 = vst [vmem:[%s3888_s21 + $0x7d8] sm:$0xff] %v1508_v16  ;;  %v1533_v1 = vmul.f32 %v3862_v7, %v497_v62  ;;  %v1534_v2 = vmul.f32 %v3864_v8, %v498_v63  ;;  %v499_v3 = vld [vmem:[%s3848_s6 + $0x8b0] sm:$0xff]  ;;  %v500_v4 = vld [vmem:[%s3848_s6 + $0x8b8] sm:$0xff] }
  0xe1   : > { %2533 = vst [vmem:[%s3888_s21 + $0x7e0] sm:$0xff] %v1509_v17  ;;  %2534 = vst [vmem:[%s3888_s21 + $0x7e8] sm:$0xff] %v1510_v18  ;;  %v501_v5 = vld [vmem:[%s3848_s6 + $0x8c0] sm:$0xff]  ;;  %v1535_v6 = vmul.f32 %v3862_v7, %v499_v3  ;;  %v1536_v9 = vmul.f32 %v3864_v8, %v500_v4  ;;  %v502_v11 = vld [vmem:[%s3848_s6 + $0x8c8] sm:$0xff] }
  0xe2   : > { %2535 = vst [vmem:[%s3888_s21 + $0x7f0] sm:$0xff] %v1511_v22  ;;  %2536 = vst [vmem:[%s3888_s21 + $0x7f8] sm:$0xff] %v1512_v23  ;;  %v1537_v10 = vmul.f32 %v3862_v7, %v501_v5  ;;  %v503_v12 = vld [vmem:[%s3848_s6 + $0x8d0] sm:$0xff]  ;;  %v504_v13 = vld [vmem:[%s3848_s6 + $0x8d8] sm:$0xff]  ;;  %v1538_v14 = vmul.f32 %v3864_v8, %v502_v11 }
  0xe3   : > { %2537 = vst [vmem:[%s3888_s21 + $0x800] sm:$0xff] %v1513_v24  ;;  %2538 = vst [vmem:[%s3888_s21 + $0x808] sm:$0xff] %v1514_v28  ;;  %v1539_v15 = vmul.f32 %v3862_v7, %v503_v12  ;;  %v1540_v16 = vmul.f32 %v3864_v8, %v504_v13  ;;  %v505_v17 = vld [vmem:[%s3848_s6 + $0x8e0] sm:$0xff]  ;;  %v506_v18 = vld [vmem:[%s3848_s6 + $0x8e8] sm:$0xff] }
  0xe4   : > { %2539 = vst [vmem:[%s3888_s21 + $0x810] sm:$0xff] %v1515_v29  ;;  %2540 = vst [vmem:[%s3888_s21 + $0x818] sm:$0xff] %v1516_v30  ;;  %v507_v19 = vld [vmem:[%s3848_s6 + $0x8f0] sm:$0xff]  ;;  %v1541_v20 = vmul.f32 %v3862_v7, %v505_v17  ;;  %v1542_v21 = vmul.f32 %v3864_v8, %v506_v18  ;;  %v508_v23 = vld [vmem:[%s3848_s6 + $0x8f8] sm:$0xff] }
  0xe5   : > { %2541 = vst [vmem:[%s3888_s21 + $0x820] sm:$0xff] %v1517_v34  ;;  %2542 = vst [vmem:[%s3888_s21 + $0x828] sm:$0xff] %v1518_v35  ;;  %v1543_v22 = vmul.f32 %v3862_v7, %v507_v19  ;;  %v509_v24 = vld [vmem:[%s3848_s6 + $0x900] sm:$0xff]  ;;  %v510_v25 = vld [vmem:[%s3848_s6 + $0x908] sm:$0xff]  ;;  %v1544_v26 = vmul.f32 %v3864_v8, %v508_v23 }
  0xe6   : > { %2543 = vst [vmem:[%s3888_s21 + $0x830] sm:$0xff] %v1519_v36  ;;  %2544 = vst [vmem:[%s3888_s21 + $0x838] sm:$0xff] %v1520_v40  ;;  %v1545_v27 = vmul.f32 %v3862_v7, %v509_v24  ;;  %v1546_v28 = vmul.f32 %v3864_v8, %v510_v25  ;;  %v511_v29 = vld [vmem:[%s3848_s6 + $0x910] sm:$0xff]  ;;  %v512_v30 = vld [vmem:[%s3848_s6 + $0x918] sm:$0xff] }
  0xe7   : > { %2545 = vst [vmem:[%s3888_s21 + $0x840] sm:$0xff] %v1521_v41  ;;  %2546 = vst [vmem:[%s3888_s21 + $0x848] sm:$0xff] %v1522_v42  ;;  %v513_v31 = vld [vmem:[%s3848_s6 + $0x920] sm:$0xff]  ;;  %v1547_v32 = vmul.f32 %v3862_v7, %v511_v29  ;;  %v1548_v33 = vmul.f32 %v3864_v8, %v512_v30  ;;  %v514_v35 = vld [vmem:[%s3848_s6 + $0x928] sm:$0xff] }
  0xe8   : > { %2547 = vst [vmem:[%s3888_s21 + $0x850] sm:$0xff] %v1523_v46  ;;  %2548 = vst [vmem:[%s3888_s21 + $0x858] sm:$0xff] %v1524_v47  ;;  %v1549_v34 = vmul.f32 %v3862_v7, %v513_v31  ;;  %v515_v36 = vld [vmem:[%s3848_s6 + $0x930] sm:$0xff]  ;;  %v516_v37 = vld [vmem:[%s3848_s6 + $0x938] sm:$0xff]  ;;  %v1550_v38 = vmul.f32 %v3864_v8, %v514_v35 }
  0xe9   : > { %2549 = vst [vmem:[%s3888_s21 + $0x860] sm:$0xff] %v1525_v48  ;;  %2550 = vst [vmem:[%s3888_s21 + $0x868] sm:$0xff] %v1526_v52  ;;  %v1551_v39 = vmul.f32 %v3862_v7, %v515_v36  ;;  %v1552_v40 = vmul.f32 %v3864_v8, %v516_v37  ;;  %v517_v41 = vld [vmem:[%s3848_s6 + $0x940] sm:$0xff]  ;;  %v518_v42 = vld [vmem:[%s3848_s6 + $0x948] sm:$0xff] }
  0xea   : > { %2551 = vst [vmem:[%s3888_s21 + $0x870] sm:$0xff] %v1527_v53  ;;  %2552 = vst [vmem:[%s3888_s21 + $0x878] sm:$0xff] %v1528_v54  ;;  %v519_v43 = vld [vmem:[%s3848_s6 + $0x950] sm:$0xff]  ;;  %v1553_v44 = vmul.f32 %v3862_v7, %v517_v41  ;;  %v1554_v45 = vmul.f32 %v3864_v8, %v518_v42  ;;  %v520_v47 = vld [vmem:[%s3848_s6 + $0x958] sm:$0xff] }
  0xeb   : > { %2553 = vst [vmem:[%s3888_s21 + $0x880] sm:$0xff] %v1529_v58  ;;  %2554 = vst [vmem:[%s3888_s21 + $0x888] sm:$0xff] %v1530_v59  ;;  %v1555_v46 = vmul.f32 %v3862_v7, %v519_v43  ;;  %v521_v48 = vld [vmem:[%s3848_s6 + $0x960] sm:$0xff]  ;;  %v522_v49 = vld [vmem:[%s3848_s6 + $0x968] sm:$0xff]  ;;  %v1556_v50 = vmul.f32 %v3864_v8, %v520_v47 }
  0xec   : > { %2555 = vst [vmem:[%s3888_s21 + $0x890] sm:$0xff] %v1531_v60  ;;  %2556 = vst [vmem:[%s3888_s21 + $0x898] sm:$0xff] %v1532_v0  ;;  %v1557_v51 = vmul.f32 %v3862_v7, %v521_v48  ;;  %v1558_v52 = vmul.f32 %v3864_v8, %v522_v49  ;;  %v523_v53 = vld [vmem:[%s3848_s6 + $0x970] sm:$0xff]  ;;  %v524_v54 = vld [vmem:[%s3848_s6 + $0x978] sm:$0xff] }
  0xed   : > { %2557 = vst [vmem:[%s3888_s21 + $0x8a0] sm:$0xff] %v1533_v1  ;;  %2558 = vst [vmem:[%s3888_s21 + $0x8a8] sm:$0xff] %v1534_v2  ;;  %v525_v55 = vld [vmem:[%s3848_s6 + $0x980] sm:$0xff]  ;;  %v1559_v56 = vmul.f32 %v3862_v7, %v523_v53  ;;  %v1560_v57 = vmul.f32 %v3864_v8, %v524_v54  ;;  %v526_v59 = vld [vmem:[%s3848_s6 + $0x988] sm:$0xff] }
  0xee   : > { %2559 = vst [vmem:[%s3888_s21 + $0x8b0] sm:$0xff] %v1535_v6  ;;  %2560 = vst [vmem:[%s3888_s21 + $0x8b8] sm:$0xff] %v1536_v9  ;;  %v1561_v58 = vmul.f32 %v3862_v7, %v525_v55  ;;  %v527_v60 = vld [vmem:[%s3848_s6 + $0x990] sm:$0xff]  ;;  %v528_v61 = vld [vmem:[%s3848_s6 + $0x998] sm:$0xff]  ;;  %v1562_v62 = vmul.f32 %v3864_v8, %v526_v59 }
  0xef   : > { %2561 = vst [vmem:[%s3888_s21 + $0x8c0] sm:$0xff] %v1537_v10  ;;  %2562 = vst [vmem:[%s3888_s21 + $0x8c8] sm:$0xff] %v1538_v14  ;;  %v1563_v63 = vmul.f32 %v3862_v7, %v527_v60  ;;  %v1564_v0 = vmul.f32 %v3864_v8, %v528_v61  ;;  %v529_v1 = vld [vmem:[%s3848_s6 + $0x9a0] sm:$0xff]  ;;  %v530_v2 = vld [vmem:[%s3848_s6 + $0x9a8] sm:$0xff] }
  0xf0   : > { %2563 = vst [vmem:[%s3888_s21 + $0x8d0] sm:$0xff] %v1539_v15  ;;  %2564 = vst [vmem:[%s3888_s21 + $0x8d8] sm:$0xff] %v1540_v16  ;;  %v531_v3 = vld [vmem:[%s3848_s6 + $0x9b0] sm:$0xff]  ;;  %v1565_v4 = vmul.f32 %v3862_v7, %v529_v1  ;;  %v1566_v5 = vmul.f32 %v3864_v8, %v530_v2  ;;  %v532_v9 = vld [vmem:[%s3848_s6 + $0x9b8] sm:$0xff] }
  0xf1   : > { %2565 = vst [vmem:[%s3888_s21 + $0x8e0] sm:$0xff] %v1541_v20  ;;  %2566 = vst [vmem:[%s3888_s21 + $0x8e8] sm:$0xff] %v1542_v21  ;;  %v1567_v6 = vmul.f32 %v3862_v7, %v531_v3  ;;  %v533_v10 = vld [vmem:[%s3848_s6 + $0x9c0] sm:$0xff]  ;;  %v534_v11 = vld [vmem:[%s3848_s6 + $0x9c8] sm:$0xff]  ;;  %v1568_v12 = vmul.f32 %v3864_v8, %v532_v9 }
  0xf2   : > { %2567 = vst [vmem:[%s3888_s21 + $0x8f0] sm:$0xff] %v1543_v22  ;;  %2568 = vst [vmem:[%s3888_s21 + $0x8f8] sm:$0xff] %v1544_v26  ;;  %v1569_v13 = vmul.f32 %v3862_v7, %v533_v10  ;;  %v1570_v14 = vmul.f32 %v3864_v8, %v534_v11  ;;  %v535_v15 = vld [vmem:[%s3848_s6 + $0x9d0] sm:$0xff]  ;;  %v536_v16 = vld [vmem:[%s3848_s6 + $0x9d8] sm:$0xff] }
  0xf3   : > { %2569 = vst [vmem:[%s3888_s21 + $0x900] sm:$0xff] %v1545_v27  ;;  %2570 = vst [vmem:[%s3888_s21 + $0x908] sm:$0xff] %v1546_v28  ;;  %v537_v17 = vld [vmem:[%s3848_s6 + $0x9e0] sm:$0xff]  ;;  %v1571_v18 = vmul.f32 %v3862_v7, %v535_v15  ;;  %v1572_v19 = vmul.f32 %v3864_v8, %v536_v16  ;;  %v538_v21 = vld [vmem:[%s3848_s6 + $0x9e8] sm:$0xff] }
  0xf4   : > { %2571 = vst [vmem:[%s3888_s21 + $0x910] sm:$0xff] %v1547_v32  ;;  %2572 = vst [vmem:[%s3888_s21 + $0x918] sm:$0xff] %v1548_v33  ;;  %v1573_v20 = vmul.f32 %v3862_v7, %v537_v17  ;;  %v539_v22 = vld [vmem:[%s3848_s6 + $0x9f0] sm:$0xff]  ;;  %v540_v23 = vld [vmem:[%s3848_s6 + $0x9f8] sm:$0xff]  ;;  %v1574_v24 = vmul.f32 %v3864_v8, %v538_v21 }
  0xf5   : > { %2573 = vst [vmem:[%s3888_s21 + $0x920] sm:$0xff] %v1549_v34  ;;  %2574 = vst [vmem:[%s3888_s21 + $0x928] sm:$0xff] %v1550_v38  ;;  %v1575_v25 = vmul.f32 %v3862_v7, %v539_v22  ;;  %v1576_v26 = vmul.f32 %v3864_v8, %v540_v23  ;;  %v541_v27 = vld [vmem:[%s3848_s6 + $0xa00] sm:$0xff]  ;;  %v542_v28 = vld [vmem:[%s3848_s6 + $0xa08] sm:$0xff] }
  0xf6   : > { %2575 = vst [vmem:[%s3888_s21 + $0x930] sm:$0xff] %v1551_v39  ;;  %2576 = vst [vmem:[%s3888_s21 + $0x938] sm:$0xff] %v1552_v40  ;;  %v543_v29 = vld [vmem:[%s3848_s6 + $0xa10] sm:$0xff]  ;;  %v1577_v30 = vmul.f32 %v3862_v7, %v541_v27  ;;  %v1578_v31 = vmul.f32 %v3864_v8, %v542_v28  ;;  %v544_v33 = vld [vmem:[%s3848_s6 + $0xa18] sm:$0xff] }
  0xf7   : > { %2577 = vst [vmem:[%s3888_s21 + $0x940] sm:$0xff] %v1553_v44  ;;  %2578 = vst [vmem:[%s3888_s21 + $0x948] sm:$0xff] %v1554_v45  ;;  %v1579_v32 = vmul.f32 %v3862_v7, %v543_v29  ;;  %v545_v34 = vld [vmem:[%s3848_s6 + $0xa20] sm:$0xff]  ;;  %v546_v35 = vld [vmem:[%s3848_s6 + $0xa28] sm:$0xff]  ;;  %v1580_v36 = vmul.f32 %v3864_v8, %v544_v33 }
  0xf8   : > { %2579 = vst [vmem:[%s3888_s21 + $0x950] sm:$0xff] %v1555_v46  ;;  %2580 = vst [vmem:[%s3888_s21 + $0x958] sm:$0xff] %v1556_v50  ;;  %v1581_v37 = vmul.f32 %v3862_v7, %v545_v34  ;;  %v1582_v38 = vmul.f32 %v3864_v8, %v546_v35  ;;  %v547_v39 = vld [vmem:[%s3848_s6 + $0xa30] sm:$0xff]  ;;  %v548_v40 = vld [vmem:[%s3848_s6 + $0xa38] sm:$0xff] }
  0xf9   : > { %2581 = vst [vmem:[%s3888_s21 + $0x960] sm:$0xff] %v1557_v51  ;;  %2582 = vst [vmem:[%s3888_s21 + $0x968] sm:$0xff] %v1558_v52  ;;  %v549_v41 = vld [vmem:[%s3848_s6 + $0xa40] sm:$0xff]  ;;  %v1583_v42 = vmul.f32 %v3862_v7, %v547_v39  ;;  %v1584_v43 = vmul.f32 %v3864_v8, %v548_v40  ;;  %v550_v45 = vld [vmem:[%s3848_s6 + $0xa48] sm:$0xff] }
  0xfa   : > { %2583 = vst [vmem:[%s3888_s21 + $0x970] sm:$0xff] %v1559_v56  ;;  %2584 = vst [vmem:[%s3888_s21 + $0x978] sm:$0xff] %v1560_v57  ;;  %v1585_v44 = vmul.f32 %v3862_v7, %v549_v41  ;;  %v551_v46 = vld [vmem:[%s3848_s6 + $0xa50] sm:$0xff]  ;;  %v552_v47 = vld [vmem:[%s3848_s6 + $0xa58] sm:$0xff]  ;;  %v1586_v48 = vmul.f32 %v3864_v8, %v550_v45 }
  0xfb   : > { %2585 = vst [vmem:[%s3888_s21 + $0x980] sm:$0xff] %v1561_v58  ;;  %2586 = vst [vmem:[%s3888_s21 + $0x988] sm:$0xff] %v1562_v62  ;;  %v1587_v49 = vmul.f32 %v3862_v7, %v551_v46  ;;  %v1588_v50 = vmul.f32 %v3864_v8, %v552_v47  ;;  %v553_v51 = vld [vmem:[%s3848_s6 + $0xa60] sm:$0xff]  ;;  %v554_v52 = vld [vmem:[%s3848_s6 + $0xa68] sm:$0xff] }
  0xfc   : > { %2587 = vst [vmem:[%s3888_s21 + $0x990] sm:$0xff] %v1563_v63  ;;  %2588 = vst [vmem:[%s3888_s21 + $0x998] sm:$0xff] %v1564_v0  ;;  %v555_v53 = vld [vmem:[%s3848_s6 + $0xa70] sm:$0xff]  ;;  %v1589_v54 = vmul.f32 %v3862_v7, %v553_v51  ;;  %v1590_v55 = vmul.f32 %v3864_v8, %v554_v52  ;;  %v556_v57 = vld [vmem:[%s3848_s6 + $0xa78] sm:$0xff] }
  0xfd   : > { %2589 = vst [vmem:[%s3888_s21 + $0x9a0] sm:$0xff] %v1565_v4  ;;  %2590 = vst [vmem:[%s3888_s21 + $0x9a8] sm:$0xff] %v1566_v5  ;;  %v1591_v56 = vmul.f32 %v3862_v7, %v555_v53  ;;  %v557_v58 = vld [vmem:[%s3848_s6 + $0xa80] sm:$0xff]  ;;  %v558_v59 = vld [vmem:[%s3848_s6 + $0xa88] sm:$0xff]  ;;  %v1592_v60 = vmul.f32 %v3864_v8, %v556_v57 }
  0xfe   : > { %2591 = vst [vmem:[%s3888_s21 + $0x9b0] sm:$0xff] %v1567_v6  ;;  %2592 = vst [vmem:[%s3888_s21 + $0x9b8] sm:$0xff] %v1568_v12  ;;  %v1593_v61 = vmul.f32 %v3862_v7, %v557_v58  ;;  %v1594_v62 = vmul.f32 %v3864_v8, %v558_v59  ;;  %v559_v63 = vld [vmem:[%s3848_s6 + $0xa90] sm:$0xff]  ;;  %v560_v0 = vld [vmem:[%s3848_s6 + $0xa98] sm:$0xff] }
  0xff   : > { %2593 = vst [vmem:[%s3888_s21 + $0x9c0] sm:$0xff] %v1569_v13  ;;  %2594 = vst [vmem:[%s3888_s21 + $0x9c8] sm:$0xff] %v1570_v14  ;;  %v561_v1 = vld [vmem:[%s3848_s6 + $0xaa0] sm:$0xff]  ;;  %v1595_v2 = vmul.f32 %v3862_v7, %v559_v63  ;;  %v1596_v3 = vmul.f32 %v3864_v8, %v560_v0  ;;  %v562_v5 = vld [vmem:[%s3848_s6 + $0xaa8] sm:$0xff] }
 0x100   : > { %2595 = vst [vmem:[%s3888_s21 + $0x9d0] sm:$0xff] %v1571_v18  ;;  %2596 = vst [vmem:[%s3888_s21 + $0x9d8] sm:$0xff] %v1572_v19  ;;  %v1597_v4 = vmul.f32 %v3862_v7, %v561_v1  ;;  %v563_v6 = vld [vmem:[%s3848_s6 + $0xab0] sm:$0xff]  ;;  %v564_v9 = vld [vmem:[%s3848_s6 + $0xab8] sm:$0xff]  ;;  %v1598_v10 = vmul.f32 %v3864_v8, %v562_v5 }
 0x101   : > { %2597 = vst [vmem:[%s3888_s21 + $0x9e0] sm:$0xff] %v1573_v20  ;;  %2598 = vst [vmem:[%s3888_s21 + $0x9e8] sm:$0xff] %v1574_v24  ;;  %v1599_v11 = vmul.f32 %v3862_v7, %v563_v6  ;;  %v1600_v12 = vmul.f32 %v3864_v8, %v564_v9  ;;  %v565_v13 = vld [vmem:[%s3848_s6 + $0xac0] sm:$0xff]  ;;  %v566_v14 = vld [vmem:[%s3848_s6 + $0xac8] sm:$0xff] }
 0x102   : > { %2599 = vst [vmem:[%s3888_s21 + $0x9f0] sm:$0xff] %v1575_v25  ;;  %2600 = vst [vmem:[%s3888_s21 + $0x9f8] sm:$0xff] %v1576_v26  ;;  %v567_v15 = vld [vmem:[%s3848_s6 + $0xad0] sm:$0xff]  ;;  %v1601_v16 = vmul.f32 %v3862_v7, %v565_v13  ;;  %v1602_v17 = vmul.f32 %v3864_v8, %v566_v14  ;;  %v568_v19 = vld [vmem:[%s3848_s6 + $0xad8] sm:$0xff] }
 0x103   : > { %2601 = vst [vmem:[%s3888_s21 + $0xa00] sm:$0xff] %v1577_v30  ;;  %2602 = vst [vmem:[%s3888_s21 + $0xa08] sm:$0xff] %v1578_v31  ;;  %v1603_v18 = vmul.f32 %v3862_v7, %v567_v15  ;;  %v569_v20 = vld [vmem:[%s3848_s6 + $0xae0] sm:$0xff]  ;;  %v570_v21 = vld [vmem:[%s3848_s6 + $0xae8] sm:$0xff]  ;;  %v1604_v22 = vmul.f32 %v3864_v8, %v568_v19 }
 0x104   : > { %2603 = vst [vmem:[%s3888_s21 + $0xa10] sm:$0xff] %v1579_v32  ;;  %2604 = vst [vmem:[%s3888_s21 + $0xa18] sm:$0xff] %v1580_v36  ;;  %v1605_v23 = vmul.f32 %v3862_v7, %v569_v20  ;;  %v1606_v24 = vmul.f32 %v3864_v8, %v570_v21  ;;  %v571_v25 = vld [vmem:[%s3848_s6 + $0xaf0] sm:$0xff]  ;;  %v572_v26 = vld [vmem:[%s3848_s6 + $0xaf8] sm:$0xff] }
 0x105   : > { %2605 = vst [vmem:[%s3888_s21 + $0xa20] sm:$0xff] %v1581_v37  ;;  %2606 = vst [vmem:[%s3888_s21 + $0xa28] sm:$0xff] %v1582_v38  ;;  %v573_v27 = vld [vmem:[%s3848_s6 + $0xb00] sm:$0xff]  ;;  %v1607_v28 = vmul.f32 %v3862_v7, %v571_v25  ;;  %v1608_v29 = vmul.f32 %v3864_v8, %v572_v26  ;;  %v574_v31 = vld [vmem:[%s3848_s6 + $0xb08] sm:$0xff] }
 0x106   : > { %2607 = vst [vmem:[%s3888_s21 + $0xa30] sm:$0xff] %v1583_v42  ;;  %2608 = vst [vmem:[%s3888_s21 + $0xa38] sm:$0xff] %v1584_v43  ;;  %v1609_v30 = vmul.f32 %v3862_v7, %v573_v27  ;;  %v575_v32 = vld [vmem:[%s3848_s6 + $0xb10] sm:$0xff]  ;;  %v576_v33 = vld [vmem:[%s3848_s6 + $0xb18] sm:$0xff]  ;;  %v1610_v34 = vmul.f32 %v3864_v8, %v574_v31 }
 0x107   : > { %2609 = vst [vmem:[%s3888_s21 + $0xa40] sm:$0xff] %v1585_v44  ;;  %2610 = vst [vmem:[%s3888_s21 + $0xa48] sm:$0xff] %v1586_v48  ;;  %v1611_v35 = vmul.f32 %v3862_v7, %v575_v32  ;;  %v1612_v36 = vmul.f32 %v3864_v8, %v576_v33  ;;  %v577_v37 = vld [vmem:[%s3848_s6 + $0xb20] sm:$0xff]  ;;  %v578_v38 = vld [vmem:[%s3848_s6 + $0xb28] sm:$0xff] }
 0x108   : > { %2611 = vst [vmem:[%s3888_s21 + $0xa50] sm:$0xff] %v1587_v49  ;;  %2612 = vst [vmem:[%s3888_s21 + $0xa58] sm:$0xff] %v1588_v50  ;;  %v579_v39 = vld [vmem:[%s3848_s6 + $0xb30] sm:$0xff]  ;;  %v1613_v40 = vmul.f32 %v3862_v7, %v577_v37  ;;  %v1614_v41 = vmul.f32 %v3864_v8, %v578_v38  ;;  %v580_v43 = vld [vmem:[%s3848_s6 + $0xb38] sm:$0xff] }
 0x109   : > { %2613 = vst [vmem:[%s3888_s21 + $0xa60] sm:$0xff] %v1589_v54  ;;  %2614 = vst [vmem:[%s3888_s21 + $0xa68] sm:$0xff] %v1590_v55  ;;  %v1615_v42 = vmul.f32 %v3862_v7, %v579_v39  ;;  %v581_v44 = vld [vmem:[%s3848_s6 + $0xb40] sm:$0xff]  ;;  %v582_v45 = vld [vmem:[%s3848_s6 + $0xb48] sm:$0xff]  ;;  %v1616_v46 = vmul.f32 %v3864_v8, %v580_v43 }
 0x10a   : > { %2615 = vst [vmem:[%s3888_s21 + $0xa70] sm:$0xff] %v1591_v56  ;;  %2616 = vst [vmem:[%s3888_s21 + $0xa78] sm:$0xff] %v1592_v60  ;;  %v1617_v47 = vmul.f32 %v3862_v7, %v581_v44  ;;  %v1618_v48 = vmul.f32 %v3864_v8, %v582_v45  ;;  %v583_v49 = vld [vmem:[%s3848_s6 + $0xb50] sm:$0xff]  ;;  %v584_v50 = vld [vmem:[%s3848_s6 + $0xb58] sm:$0xff] }
 0x10b   : > { %2617 = vst [vmem:[%s3888_s21 + $0xa80] sm:$0xff] %v1593_v61  ;;  %2618 = vst [vmem:[%s3888_s21 + $0xa88] sm:$0xff] %v1594_v62  ;;  %v585_v51 = vld [vmem:[%s3848_s6 + $0xb60] sm:$0xff]  ;;  %v1619_v52 = vmul.f32 %v3862_v7, %v583_v49  ;;  %v1620_v53 = vmul.f32 %v3864_v8, %v584_v50  ;;  %v586_v55 = vld [vmem:[%s3848_s6 + $0xb68] sm:$0xff] }
 0x10c   : > { %2619 = vst [vmem:[%s3888_s21 + $0xa90] sm:$0xff] %v1595_v2  ;;  %2620 = vst [vmem:[%s3888_s21 + $0xa98] sm:$0xff] %v1596_v3  ;;  %v1621_v54 = vmul.f32 %v3862_v7, %v585_v51  ;;  %v587_v56 = vld [vmem:[%s3848_s6 + $0xb70] sm:$0xff]  ;;  %v588_v57 = vld [vmem:[%s3848_s6 + $0xb78] sm:$0xff]  ;;  %v1622_v58 = vmul.f32 %v3864_v8, %v586_v55 }
 0x10d   : > { %2621 = vst [vmem:[%s3888_s21 + $0xaa0] sm:$0xff] %v1597_v4  ;;  %2622 = vst [vmem:[%s3888_s21 + $0xaa8] sm:$0xff] %v1598_v10  ;;  %v1623_v59 = vmul.f32 %v3862_v7, %v587_v56  ;;  %v1624_v60 = vmul.f32 %v3864_v8, %v588_v57  ;;  %v589_v61 = vld [vmem:[%s3848_s6 + $0xb80] sm:$0xff]  ;;  %v590_v62 = vld [vmem:[%s3848_s6 + $0xb88] sm:$0xff] }
 0x10e   : > { %2623 = vst [vmem:[%s3888_s21 + $0xab0] sm:$0xff] %v1599_v11  ;;  %2624 = vst [vmem:[%s3888_s21 + $0xab8] sm:$0xff] %v1600_v12  ;;  %v591_v63 = vld [vmem:[%s3848_s6 + $0xb90] sm:$0xff]  ;;  %v1625_v0 = vmul.f32 %v3862_v7, %v589_v61  ;;  %v1626_v1 = vmul.f32 %v3864_v8, %v590_v62  ;;  %v592_v3 = vld [vmem:[%s3848_s6 + $0xb98] sm:$0xff] }
 0x10f   : > { %2625 = vst [vmem:[%s3888_s21 + $0xac0] sm:$0xff] %v1601_v16  ;;  %2626 = vst [vmem:[%s3888_s21 + $0xac8] sm:$0xff] %v1602_v17  ;;  %v1627_v2 = vmul.f32 %v3862_v7, %v591_v63  ;;  %v593_v4 = vld [vmem:[%s3848_s6 + $0xba0] sm:$0xff]  ;;  %v594_v5 = vld [vmem:[%s3848_s6 + $0xba8] sm:$0xff]  ;;  %v1628_v6 = vmul.f32 %v3864_v8, %v592_v3 }
 0x110   : > { %2627 = vst [vmem:[%s3888_s21 + $0xad0] sm:$0xff] %v1603_v18  ;;  %2628 = vst [vmem:[%s3888_s21 + $0xad8] sm:$0xff] %v1604_v22  ;;  %v1629_v9 = vmul.f32 %v3862_v7, %v593_v4  ;;  %v1630_v10 = vmul.f32 %v3864_v8, %v594_v5  ;;  %v595_v11 = vld [vmem:[%s3848_s6 + $0xbb0] sm:$0xff]  ;;  %v596_v12 = vld [vmem:[%s3848_s6 + $0xbb8] sm:$0xff] }
 0x111   : > { %2629 = vst [vmem:[%s3888_s21 + $0xae0] sm:$0xff] %v1605_v23  ;;  %2630 = vst [vmem:[%s3888_s21 + $0xae8] sm:$0xff] %v1606_v24  ;;  %v597_v13 = vld [vmem:[%s3848_s6 + $0xbc0] sm:$0xff]  ;;  %v1631_v14 = vmul.f32 %v3862_v7, %v595_v11  ;;  %v1632_v15 = vmul.f32 %v3864_v8, %v596_v12  ;;  %v598_v17 = vld [vmem:[%s3848_s6 + $0xbc8] sm:$0xff] }
 0x112   : > { %2631 = vst [vmem:[%s3888_s21 + $0xaf0] sm:$0xff] %v1607_v28  ;;  %2632 = vst [vmem:[%s3888_s21 + $0xaf8] sm:$0xff] %v1608_v29  ;;  %v1633_v16 = vmul.f32 %v3862_v7, %v597_v13  ;;  %v599_v18 = vld [vmem:[%s3848_s6 + $0xbd0] sm:$0xff]  ;;  %v600_v19 = vld [vmem:[%s3848_s6 + $0xbd8] sm:$0xff]  ;;  %v1634_v20 = vmul.f32 %v3864_v8, %v598_v17 }
 0x113   : > { %2633 = vst [vmem:[%s3888_s21 + $0xb00] sm:$0xff] %v1609_v30  ;;  %2634 = vst [vmem:[%s3888_s21 + $0xb08] sm:$0xff] %v1610_v34  ;;  %v1635_v21 = vmul.f32 %v3862_v7, %v599_v18  ;;  %v1636_v22 = vmul.f32 %v3864_v8, %v600_v19  ;;  %v601_v23 = vld [vmem:[%s3848_s6 + $0xbe0] sm:$0xff]  ;;  %v602_v24 = vld [vmem:[%s3848_s6 + $0xbe8] sm:$0xff] }
 0x114   : > { %2635 = vst [vmem:[%s3888_s21 + $0xb10] sm:$0xff] %v1611_v35  ;;  %2636 = vst [vmem:[%s3888_s21 + $0xb18] sm:$0xff] %v1612_v36  ;;  %v603_v25 = vld [vmem:[%s3848_s6 + $0xbf0] sm:$0xff]  ;;  %v1637_v26 = vmul.f32 %v3862_v7, %v601_v23  ;;  %v1638_v27 = vmul.f32 %v3864_v8, %v602_v24  ;;  %v604_v29 = vld [vmem:[%s3848_s6 + $0xbf8] sm:$0xff] }
 0x115   : > { %2637 = vst [vmem:[%s3888_s21 + $0xb20] sm:$0xff] %v1613_v40  ;;  %2638 = vst [vmem:[%s3888_s21 + $0xb28] sm:$0xff] %v1614_v41  ;;  %v1639_v28 = vmul.f32 %v3862_v7, %v603_v25  ;;  %v605_v30 = vld [vmem:[%s3848_s6 + $0xc00] sm:$0xff]  ;;  %v606_v31 = vld [vmem:[%s3848_s6 + $0xc08] sm:$0xff]  ;;  %v1640_v32 = vmul.f32 %v3864_v8, %v604_v29 }
 0x116   : > { %2639 = vst [vmem:[%s3888_s21 + $0xb30] sm:$0xff] %v1615_v42  ;;  %2640 = vst [vmem:[%s3888_s21 + $0xb38] sm:$0xff] %v1616_v46  ;;  %v1641_v33 = vmul.f32 %v3862_v7, %v605_v30  ;;  %v1642_v34 = vmul.f32 %v3864_v8, %v606_v31  ;;  %v607_v35 = vld [vmem:[%s3848_s6 + $0xc10] sm:$0xff]  ;;  %v608_v36 = vld [vmem:[%s3848_s6 + $0xc18] sm:$0xff] }
 0x117   : > { %2641 = vst [vmem:[%s3888_s21 + $0xb40] sm:$0xff] %v1617_v47  ;;  %2642 = vst [vmem:[%s3888_s21 + $0xb48] sm:$0xff] %v1618_v48  ;;  %v609_v37 = vld [vmem:[%s3848_s6 + $0xc20] sm:$0xff]  ;;  %v1643_v38 = vmul.f32 %v3862_v7, %v607_v35  ;;  %v1644_v39 = vmul.f32 %v3864_v8, %v608_v36  ;;  %v610_v41 = vld [vmem:[%s3848_s6 + $0xc28] sm:$0xff] }
 0x118   : > { %2643 = vst [vmem:[%s3888_s21 + $0xb50] sm:$0xff] %v1619_v52  ;;  %2644 = vst [vmem:[%s3888_s21 + $0xb58] sm:$0xff] %v1620_v53  ;;  %v1645_v40 = vmul.f32 %v3862_v7, %v609_v37  ;;  %v611_v42 = vld [vmem:[%s3848_s6 + $0xc30] sm:$0xff]  ;;  %v612_v43 = vld [vmem:[%s3848_s6 + $0xc38] sm:$0xff]  ;;  %v1646_v44 = vmul.f32 %v3864_v8, %v610_v41 }
 0x119   : > { %2645 = vst [vmem:[%s3888_s21 + $0xb60] sm:$0xff] %v1621_v54  ;;  %2646 = vst [vmem:[%s3888_s21 + $0xb68] sm:$0xff] %v1622_v58  ;;  %v1647_v45 = vmul.f32 %v3862_v7, %v611_v42  ;;  %v1648_v46 = vmul.f32 %v3864_v8, %v612_v43  ;;  %v613_v47 = vld [vmem:[%s3848_s6 + $0xc40] sm:$0xff]  ;;  %v614_v48 = vld [vmem:[%s3848_s6 + $0xc48] sm:$0xff] }
 0x11a   : > { %2647 = vst [vmem:[%s3888_s21 + $0xb70] sm:$0xff] %v1623_v59  ;;  %2648 = vst [vmem:[%s3888_s21 + $0xb78] sm:$0xff] %v1624_v60  ;;  %v615_v49 = vld [vmem:[%s3848_s6 + $0xc50] sm:$0xff]  ;;  %v1649_v50 = vmul.f32 %v3862_v7, %v613_v47  ;;  %v1650_v51 = vmul.f32 %v3864_v8, %v614_v48  ;;  %v616_v53 = vld [vmem:[%s3848_s6 + $0xc58] sm:$0xff] }
 0x11b   : > { %2649 = vst [vmem:[%s3888_s21 + $0xb80] sm:$0xff] %v1625_v0  ;;  %2650 = vst [vmem:[%s3888_s21 + $0xb88] sm:$0xff] %v1626_v1  ;;  %v1651_v52 = vmul.f32 %v3862_v7, %v615_v49  ;;  %v617_v54 = vld [vmem:[%s3848_s6 + $0xc60] sm:$0xff]  ;;  %v618_v55 = vld [vmem:[%s3848_s6 + $0xc68] sm:$0xff]  ;;  %v1652_v56 = vmul.f32 %v3864_v8, %v616_v53 }
 0x11c   : > { %2651 = vst [vmem:[%s3888_s21 + $0xb90] sm:$0xff] %v1627_v2  ;;  %2652 = vst [vmem:[%s3888_s21 + $0xb98] sm:$0xff] %v1628_v6  ;;  %v1653_v57 = vmul.f32 %v3862_v7, %v617_v54  ;;  %v1654_v58 = vmul.f32 %v3864_v8, %v618_v55  ;;  %v619_v59 = vld [vmem:[%s3848_s6 + $0xc70] sm:$0xff]  ;;  %v620_v60 = vld [vmem:[%s3848_s6 + $0xc78] sm:$0xff] }
 0x11d   : > { %2653 = vst [vmem:[%s3888_s21 + $0xba0] sm:$0xff] %v1629_v9  ;;  %2654 = vst [vmem:[%s3888_s21 + $0xba8] sm:$0xff] %v1630_v10  ;;  %v621_v61 = vld [vmem:[%s3848_s6 + $0xc80] sm:$0xff]  ;;  %v1655_v62 = vmul.f32 %v3862_v7, %v619_v59  ;;  %v1656_v63 = vmul.f32 %v3864_v8, %v620_v60  ;;  %v622_v1 = vld [vmem:[%s3848_s6 + $0xc88] sm:$0xff] }
 0x11e   : > { %2655 = vst [vmem:[%s3888_s21 + $0xbb0] sm:$0xff] %v1631_v14  ;;  %2656 = vst [vmem:[%s3888_s21 + $0xbb8] sm:$0xff] %v1632_v15  ;;  %v1657_v0 = vmul.f32 %v3862_v7, %v621_v61  ;;  %v623_v2 = vld [vmem:[%s3848_s6 + $0xc90] sm:$0xff]  ;;  %v624_v3 = vld [vmem:[%s3848_s6 + $0xc98] sm:$0xff]  ;;  %v1658_v4 = vmul.f32 %v3864_v8, %v622_v1 }
 0x11f   : > { %2657 = vst [vmem:[%s3888_s21 + $0xbc0] sm:$0xff] %v1633_v16  ;;  %2658 = vst [vmem:[%s3888_s21 + $0xbc8] sm:$0xff] %v1634_v20  ;;  %v1659_v5 = vmul.f32 %v3862_v7, %v623_v2  ;;  %v1660_v6 = vmul.f32 %v3864_v8, %v624_v3  ;;  %v625_v9 = vld [vmem:[%s3848_s6 + $0xca0] sm:$0xff]  ;;  %v626_v10 = vld [vmem:[%s3848_s6 + $0xca8] sm:$0xff] }
 0x120   : > { %2659 = vst [vmem:[%s3888_s21 + $0xbd0] sm:$0xff] %v1635_v21  ;;  %2660 = vst [vmem:[%s3888_s21 + $0xbd8] sm:$0xff] %v1636_v22  ;;  %v627_v11 = vld [vmem:[%s3848_s6 + $0xcb0] sm:$0xff]  ;;  %v1661_v12 = vmul.f32 %v3862_v7, %v625_v9  ;;  %v1662_v13 = vmul.f32 %v3864_v8, %v626_v10  ;;  %v628_v15 = vld [vmem:[%s3848_s6 + $0xcb8] sm:$0xff] }
 0x121   : > { %2661 = vst [vmem:[%s3888_s21 + $0xbe0] sm:$0xff] %v1637_v26  ;;  %2662 = vst [vmem:[%s3888_s21 + $0xbe8] sm:$0xff] %v1638_v27  ;;  %v1663_v14 = vmul.f32 %v3862_v7, %v627_v11  ;;  %v629_v16 = vld [vmem:[%s3848_s6 + $0xcc0] sm:$0xff]  ;;  %v630_v17 = vld [vmem:[%s3848_s6 + $0xcc8] sm:$0xff]  ;;  %v1664_v18 = vmul.f32 %v3864_v8, %v628_v15 }
 0x122   : > { %2663 = vst [vmem:[%s3888_s21 + $0xbf0] sm:$0xff] %v1639_v28  ;;  %2664 = vst [vmem:[%s3888_s21 + $0xbf8] sm:$0xff] %v1640_v32  ;;  %v1665_v19 = vmul.f32 %v3862_v7, %v629_v16  ;;  %v1666_v20 = vmul.f32 %v3864_v8, %v630_v17  ;;  %v631_v21 = vld [vmem:[%s3848_s6 + $0xcd0] sm:$0xff]  ;;  %v632_v22 = vld [vmem:[%s3848_s6 + $0xcd8] sm:$0xff] }
 0x123   : > { %2665 = vst [vmem:[%s3888_s21 + $0xc00] sm:$0xff] %v1641_v33  ;;  %2666 = vst [vmem:[%s3888_s21 + $0xc08] sm:$0xff] %v1642_v34  ;;  %v633_v23 = vld [vmem:[%s3848_s6 + $0xce0] sm:$0xff]  ;;  %v1667_v24 = vmul.f32 %v3862_v7, %v631_v21  ;;  %v1668_v25 = vmul.f32 %v3864_v8, %v632_v22  ;;  %v634_v27 = vld [vmem:[%s3848_s6 + $0xce8] sm:$0xff] }
 0x124   : > { %2667 = vst [vmem:[%s3888_s21 + $0xc10] sm:$0xff] %v1643_v38  ;;  %2668 = vst [vmem:[%s3888_s21 + $0xc18] sm:$0xff] %v1644_v39  ;;  %v1669_v26 = vmul.f32 %v3862_v7, %v633_v23  ;;  %v635_v28 = vld [vmem:[%s3848_s6 + $0xcf0] sm:$0xff]  ;;  %v636_v29 = vld [vmem:[%s3848_s6 + $0xcf8] sm:$0xff]  ;;  %v1670_v30 = vmul.f32 %v3864_v8, %v634_v27 }
 0x125   : > { %2669 = vst [vmem:[%s3888_s21 + $0xc20] sm:$0xff] %v1645_v40  ;;  %2670 = vst [vmem:[%s3888_s21 + $0xc28] sm:$0xff] %v1646_v44  ;;  %v1671_v31 = vmul.f32 %v3862_v7, %v635_v28  ;;  %v1672_v32 = vmul.f32 %v3864_v8, %v636_v29  ;;  %v637_v33 = vld [vmem:[%s3848_s6 + $0xd00] sm:$0xff]  ;;  %v638_v34 = vld [vmem:[%s3848_s6 + $0xd08] sm:$0xff] }
 0x126   : > { %2671 = vst [vmem:[%s3888_s21 + $0xc30] sm:$0xff] %v1647_v45  ;;  %2672 = vst [vmem:[%s3888_s21 + $0xc38] sm:$0xff] %v1648_v46  ;;  %v639_v35 = vld [vmem:[%s3848_s6 + $0xd10] sm:$0xff]  ;;  %v1673_v36 = vmul.f32 %v3862_v7, %v637_v33  ;;  %v1674_v37 = vmul.f32 %v3864_v8, %v638_v34  ;;  %v640_v39 = vld [vmem:[%s3848_s6 + $0xd18] sm:$0xff] }
 0x127   : > { %2673 = vst [vmem:[%s3888_s21 + $0xc40] sm:$0xff] %v1649_v50  ;;  %2674 = vst [vmem:[%s3888_s21 + $0xc48] sm:$0xff] %v1650_v51  ;;  %v1675_v38 = vmul.f32 %v3862_v7, %v639_v35  ;;  %v641_v40 = vld [vmem:[%s3848_s6 + $0xd20] sm:$0xff]  ;;  %v642_v41 = vld [vmem:[%s3848_s6 + $0xd28] sm:$0xff]  ;;  %v1676_v42 = vmul.f32 %v3864_v8, %v640_v39 }
 0x128   : > { %2675 = vst [vmem:[%s3888_s21 + $0xc50] sm:$0xff] %v1651_v52  ;;  %2676 = vst [vmem:[%s3888_s21 + $0xc58] sm:$0xff] %v1652_v56  ;;  %v1677_v43 = vmul.f32 %v3862_v7, %v641_v40  ;;  %v1678_v44 = vmul.f32 %v3864_v8, %v642_v41  ;;  %v643_v45 = vld [vmem:[%s3848_s6 + $0xd30] sm:$0xff]  ;;  %v644_v46 = vld [vmem:[%s3848_s6 + $0xd38] sm:$0xff] }
 0x129   : > { %2677 = vst [vmem:[%s3888_s21 + $0xc60] sm:$0xff] %v1653_v57  ;;  %2678 = vst [vmem:[%s3888_s21 + $0xc68] sm:$0xff] %v1654_v58  ;;  %v645_v47 = vld [vmem:[%s3848_s6 + $0xd40] sm:$0xff]  ;;  %v1679_v48 = vmul.f32 %v3862_v7, %v643_v45  ;;  %v1680_v49 = vmul.f32 %v3864_v8, %v644_v46  ;;  %v646_v51 = vld [vmem:[%s3848_s6 + $0xd48] sm:$0xff] }
 0x12a   : > { %2679 = vst [vmem:[%s3888_s21 + $0xc70] sm:$0xff] %v1655_v62  ;;  %2680 = vst [vmem:[%s3888_s21 + $0xc78] sm:$0xff] %v1656_v63  ;;  %v1681_v50 = vmul.f32 %v3862_v7, %v645_v47  ;;  %v647_v52 = vld [vmem:[%s3848_s6 + $0xd50] sm:$0xff]  ;;  %v648_v53 = vld [vmem:[%s3848_s6 + $0xd58] sm:$0xff]  ;;  %v1682_v54 = vmul.f32 %v3864_v8, %v646_v51 }
 0x12b   : > { %2681 = vst [vmem:[%s3888_s21 + $0xc80] sm:$0xff] %v1657_v0  ;;  %2682 = vst [vmem:[%s3888_s21 + $0xc88] sm:$0xff] %v1658_v4  ;;  %v1683_v55 = vmul.f32 %v3862_v7, %v647_v52  ;;  %v1684_v56 = vmul.f32 %v3864_v8, %v648_v53  ;;  %v649_v57 = vld [vmem:[%s3848_s6 + $0xd60] sm:$0xff]  ;;  %v650_v58 = vld [vmem:[%s3848_s6 + $0xd68] sm:$0xff] }
 0x12c   : > { %2683 = vst [vmem:[%s3888_s21 + $0xc90] sm:$0xff] %v1659_v5  ;;  %2684 = vst [vmem:[%s3888_s21 + $0xc98] sm:$0xff] %v1660_v6  ;;  %v651_v59 = vld [vmem:[%s3848_s6 + $0xd70] sm:$0xff]  ;;  %v1685_v60 = vmul.f32 %v3862_v7, %v649_v57  ;;  %v1686_v61 = vmul.f32 %v3864_v8, %v650_v58  ;;  %v652_v63 = vld [vmem:[%s3848_s6 + $0xd78] sm:$0xff] }
 0x12d   : > { %2685 = vst [vmem:[%s3888_s21 + $0xca0] sm:$0xff] %v1661_v12  ;;  %2686 = vst [vmem:[%s3888_s21 + $0xca8] sm:$0xff] %v1662_v13  ;;  %v1687_v62 = vmul.f32 %v3862_v7, %v651_v59  ;;  %v653_v0 = vld [vmem:[%s3848_s6 + $0xd80] sm:$0xff]  ;;  %v654_v1 = vld [vmem:[%s3848_s6 + $0xd88] sm:$0xff]  ;;  %v1688_v2 = vmul.f32 %v3864_v8, %v652_v63 }
 0x12e   : > { %2687 = vst [vmem:[%s3888_s21 + $0xcb0] sm:$0xff] %v1663_v14  ;;  %2688 = vst [vmem:[%s3888_s21 + $0xcb8] sm:$0xff] %v1664_v18  ;;  %v1689_v3 = vmul.f32 %v3862_v7, %v653_v0  ;;  %v1690_v4 = vmul.f32 %v3864_v8, %v654_v1  ;;  %v655_v5 = vld [vmem:[%s3848_s6 + $0xd90] sm:$0xff]  ;;  %v656_v6 = vld [vmem:[%s3848_s6 + $0xd98] sm:$0xff] }
 0x12f   : > { %2689 = vst [vmem:[%s3888_s21 + $0xcc0] sm:$0xff] %v1665_v19  ;;  %2690 = vst [vmem:[%s3888_s21 + $0xcc8] sm:$0xff] %v1666_v20  ;;  %v657_v9 = vld [vmem:[%s3848_s6 + $0xda0] sm:$0xff]  ;;  %v1691_v10 = vmul.f32 %v3862_v7, %v655_v5  ;;  %v1692_v11 = vmul.f32 %v3864_v8, %v656_v6  ;;  %v658_v13 = vld [vmem:[%s3848_s6 + $0xda8] sm:$0xff] }
 0x130   : > { %2691 = vst [vmem:[%s3888_s21 + $0xcd0] sm:$0xff] %v1667_v24  ;;  %2692 = vst [vmem:[%s3888_s21 + $0xcd8] sm:$0xff] %v1668_v25  ;;  %v1693_v12 = vmul.f32 %v3862_v7, %v657_v9  ;;  %v659_v14 = vld [vmem:[%s3848_s6 + $0xdb0] sm:$0xff]  ;;  %v660_v15 = vld [vmem:[%s3848_s6 + $0xdb8] sm:$0xff]  ;;  %v1694_v16 = vmul.f32 %v3864_v8, %v658_v13 }
 0x131   : > { %2693 = vst [vmem:[%s3888_s21 + $0xce0] sm:$0xff] %v1669_v26  ;;  %2694 = vst [vmem:[%s3888_s21 + $0xce8] sm:$0xff] %v1670_v30  ;;  %v1695_v17 = vmul.f32 %v3862_v7, %v659_v14  ;;  %v1696_v18 = vmul.f32 %v3864_v8, %v660_v15  ;;  %v661_v19 = vld [vmem:[%s3848_s6 + $0xdc0] sm:$0xff]  ;;  %v662_v20 = vld [vmem:[%s3848_s6 + $0xdc8] sm:$0xff] }
 0x132   : > { %2695 = vst [vmem:[%s3888_s21 + $0xcf0] sm:$0xff] %v1671_v31  ;;  %2696 = vst [vmem:[%s3888_s21 + $0xcf8] sm:$0xff] %v1672_v32  ;;  %v663_v21 = vld [vmem:[%s3848_s6 + $0xdd0] sm:$0xff]  ;;  %v1697_v22 = vmul.f32 %v3862_v7, %v661_v19  ;;  %v1698_v23 = vmul.f32 %v3864_v8, %v662_v20  ;;  %v664_v25 = vld [vmem:[%s3848_s6 + $0xdd8] sm:$0xff] }
 0x133   : > { %2697 = vst [vmem:[%s3888_s21 + $0xd00] sm:$0xff] %v1673_v36  ;;  %2698 = vst [vmem:[%s3888_s21 + $0xd08] sm:$0xff] %v1674_v37  ;;  %v1699_v24 = vmul.f32 %v3862_v7, %v663_v21  ;;  %v665_v26 = vld [vmem:[%s3848_s6 + $0xde0] sm:$0xff]  ;;  %v666_v27 = vld [vmem:[%s3848_s6 + $0xde8] sm:$0xff]  ;;  %v1700_v28 = vmul.f32 %v3864_v8, %v664_v25 }
 0x134   : > { %2699 = vst [vmem:[%s3888_s21 + $0xd10] sm:$0xff] %v1675_v38  ;;  %2700 = vst [vmem:[%s3888_s21 + $0xd18] sm:$0xff] %v1676_v42  ;;  %v1701_v29 = vmul.f32 %v3862_v7, %v665_v26  ;;  %v1702_v30 = vmul.f32 %v3864_v8, %v666_v27  ;;  %v667_v31 = vld [vmem:[%s3848_s6 + $0xdf0] sm:$0xff]  ;;  %v668_v32 = vld [vmem:[%s3848_s6 + $0xdf8] sm:$0xff] }
 0x135   : > { %2701 = vst [vmem:[%s3888_s21 + $0xd20] sm:$0xff] %v1677_v43  ;;  %2702 = vst [vmem:[%s3888_s21 + $0xd28] sm:$0xff] %v1678_v44  ;;  %v669_v33 = vld [vmem:[%s3848_s6 + $0xe00] sm:$0xff]  ;;  %v1703_v34 = vmul.f32 %v3862_v7, %v667_v31  ;;  %v1704_v35 = vmul.f32 %v3864_v8, %v668_v32  ;;  %v670_v37 = vld [vmem:[%s3848_s6 + $0xe08] sm:$0xff] }
 0x136   : > { %2703 = vst [vmem:[%s3888_s21 + $0xd30] sm:$0xff] %v1679_v48  ;;  %2704 = vst [vmem:[%s3888_s21 + $0xd38] sm:$0xff] %v1680_v49  ;;  %v1705_v36 = vmul.f32 %v3862_v7, %v669_v33  ;;  %v671_v38 = vld [vmem:[%s3848_s6 + $0xe10] sm:$0xff]  ;;  %v672_v39 = vld [vmem:[%s3848_s6 + $0xe18] sm:$0xff]  ;;  %v1706_v40 = vmul.f32 %v3864_v8, %v670_v37 }
 0x137   : > { %2705 = vst [vmem:[%s3888_s21 + $0xd40] sm:$0xff] %v1681_v50  ;;  %2706 = vst [vmem:[%s3888_s21 + $0xd48] sm:$0xff] %v1682_v54  ;;  %v1707_v41 = vmul.f32 %v3862_v7, %v671_v38  ;;  %v1708_v42 = vmul.f32 %v3864_v8, %v672_v39  ;;  %v673_v43 = vld [vmem:[%s3848_s6 + $0xe20] sm:$0xff]  ;;  %v674_v44 = vld [vmem:[%s3848_s6 + $0xe28] sm:$0xff] }
 0x138   : > { %2707 = vst [vmem:[%s3888_s21 + $0xd50] sm:$0xff] %v1683_v55  ;;  %2708 = vst [vmem:[%s3888_s21 + $0xd58] sm:$0xff] %v1684_v56  ;;  %v675_v45 = vld [vmem:[%s3848_s6 + $0xe30] sm:$0xff]  ;;  %v1709_v46 = vmul.f32 %v3862_v7, %v673_v43  ;;  %v1710_v47 = vmul.f32 %v3864_v8, %v674_v44  ;;  %v676_v49 = vld [vmem:[%s3848_s6 + $0xe38] sm:$0xff] }
 0x139   : > { %2709 = vst [vmem:[%s3888_s21 + $0xd60] sm:$0xff] %v1685_v60  ;;  %2710 = vst [vmem:[%s3888_s21 + $0xd68] sm:$0xff] %v1686_v61  ;;  %v1711_v48 = vmul.f32 %v3862_v7, %v675_v45  ;;  %v677_v50 = vld [vmem:[%s3848_s6 + $0xe40] sm:$0xff]  ;;  %v678_v51 = vld [vmem:[%s3848_s6 + $0xe48] sm:$0xff]  ;;  %v1712_v52 = vmul.f32 %v3864_v8, %v676_v49 }
 0x13a   : > { %2711 = vst [vmem:[%s3888_s21 + $0xd70] sm:$0xff] %v1687_v62  ;;  %2712 = vst [vmem:[%s3888_s21 + $0xd78] sm:$0xff] %v1688_v2  ;;  %v1713_v53 = vmul.f32 %v3862_v7, %v677_v50  ;;  %v1714_v54 = vmul.f32 %v3864_v8, %v678_v51  ;;  %v679_v55 = vld [vmem:[%s3848_s6 + $0xe50] sm:$0xff]  ;;  %v680_v56 = vld [vmem:[%s3848_s6 + $0xe58] sm:$0xff] }
 0x13b   : > { %2713 = vst [vmem:[%s3888_s21 + $0xd80] sm:$0xff] %v1689_v3  ;;  %2714 = vst [vmem:[%s3888_s21 + $0xd88] sm:$0xff] %v1690_v4  ;;  %v681_v57 = vld [vmem:[%s3848_s6 + $0xe60] sm:$0xff]  ;;  %v1715_v58 = vmul.f32 %v3862_v7, %v679_v55  ;;  %v1716_v59 = vmul.f32 %v3864_v8, %v680_v56  ;;  %v682_v61 = vld [vmem:[%s3848_s6 + $0xe68] sm:$0xff] }
 0x13c   : > { %2715 = vst [vmem:[%s3888_s21 + $0xd90] sm:$0xff] %v1691_v10  ;;  %2716 = vst [vmem:[%s3888_s21 + $0xd98] sm:$0xff] %v1692_v11  ;;  %v1717_v60 = vmul.f32 %v3862_v7, %v681_v57  ;;  %v683_v62 = vld [vmem:[%s3848_s6 + $0xe70] sm:$0xff]  ;;  %v684_v63 = vld [vmem:[%s3848_s6 + $0xe78] sm:$0xff]  ;;  %v1718_v0 = vmul.f32 %v3864_v8, %v682_v61 }
 0x13d   : > { %2717 = vst [vmem:[%s3888_s21 + $0xda0] sm:$0xff] %v1693_v12  ;;  %2718 = vst [vmem:[%s3888_s21 + $0xda8] sm:$0xff] %v1694_v16  ;;  %v1719_v1 = vmul.f32 %v3862_v7, %v683_v62  ;;  %v1720_v2 = vmul.f32 %v3864_v8, %v684_v63  ;;  %v685_v3 = vld [vmem:[%s3848_s6 + $0xe80] sm:$0xff]  ;;  %v686_v4 = vld [vmem:[%s3848_s6 + $0xe88] sm:$0xff] }
 0x13e   : > { %2719 = vst [vmem:[%s3888_s21 + $0xdb0] sm:$0xff] %v1695_v17  ;;  %2720 = vst [vmem:[%s3888_s21 + $0xdb8] sm:$0xff] %v1696_v18  ;;  %v687_v5 = vld [vmem:[%s3848_s6 + $0xe90] sm:$0xff]  ;;  %v1721_v6 = vmul.f32 %v3862_v7, %v685_v3  ;;  %v1722_v9 = vmul.f32 %v3864_v8, %v686_v4  ;;  %v688_v11 = vld [vmem:[%s3848_s6 + $0xe98] sm:$0xff] }
 0x13f   : > { %2721 = vst [vmem:[%s3888_s21 + $0xdc0] sm:$0xff] %v1697_v22  ;;  %2722 = vst [vmem:[%s3888_s21 + $0xdc8] sm:$0xff] %v1698_v23  ;;  %v1723_v10 = vmul.f32 %v3862_v7, %v687_v5  ;;  %v689_v12 = vld [vmem:[%s3848_s6 + $0xea0] sm:$0xff]  ;;  %v690_v13 = vld [vmem:[%s3848_s6 + $0xea8] sm:$0xff]  ;;  %v1724_v14 = vmul.f32 %v3864_v8, %v688_v11 }
 0x140   : > { %2723 = vst [vmem:[%s3888_s21 + $0xdd0] sm:$0xff] %v1699_v24  ;;  %2724 = vst [vmem:[%s3888_s21 + $0xdd8] sm:$0xff] %v1700_v28  ;;  %v1725_v15 = vmul.f32 %v3862_v7, %v689_v12  ;;  %v1726_v16 = vmul.f32 %v3864_v8, %v690_v13  ;;  %v691_v17 = vld [vmem:[%s3848_s6 + $0xeb0] sm:$0xff]  ;;  %v692_v18 = vld [vmem:[%s3848_s6 + $0xeb8] sm:$0xff] }
 0x141   : > { %2725 = vst [vmem:[%s3888_s21 + $0xde0] sm:$0xff] %v1701_v29  ;;  %2726 = vst [vmem:[%s3888_s21 + $0xde8] sm:$0xff] %v1702_v30  ;;  %v693_v19 = vld [vmem:[%s3848_s6 + $0xec0] sm:$0xff]  ;;  %v1727_v20 = vmul.f32 %v3862_v7, %v691_v17  ;;  %v1728_v21 = vmul.f32 %v3864_v8, %v692_v18  ;;  %v694_v23 = vld [vmem:[%s3848_s6 + $0xec8] sm:$0xff] }
 0x142   : > { %2727 = vst [vmem:[%s3888_s21 + $0xdf0] sm:$0xff] %v1703_v34  ;;  %2728 = vst [vmem:[%s3888_s21 + $0xdf8] sm:$0xff] %v1704_v35  ;;  %v1729_v22 = vmul.f32 %v3862_v7, %v693_v19  ;;  %v695_v24 = vld [vmem:[%s3848_s6 + $0xed0] sm:$0xff]  ;;  %v696_v25 = vld [vmem:[%s3848_s6 + $0xed8] sm:$0xff]  ;;  %v1730_v26 = vmul.f32 %v3864_v8, %v694_v23 }
 0x143   : > { %2729 = vst [vmem:[%s3888_s21 + $0xe00] sm:$0xff] %v1705_v36  ;;  %2730 = vst [vmem:[%s3888_s21 + $0xe08] sm:$0xff] %v1706_v40  ;;  %v1731_v27 = vmul.f32 %v3862_v7, %v695_v24  ;;  %v1732_v28 = vmul.f32 %v3864_v8, %v696_v25  ;;  %v697_v29 = vld [vmem:[%s3848_s6 + $0xee0] sm:$0xff]  ;;  %v698_v30 = vld [vmem:[%s3848_s6 + $0xee8] sm:$0xff] }
 0x144   : > { %2731 = vst [vmem:[%s3888_s21 + $0xe10] sm:$0xff] %v1707_v41  ;;  %2732 = vst [vmem:[%s3888_s21 + $0xe18] sm:$0xff] %v1708_v42  ;;  %v699_v31 = vld [vmem:[%s3848_s6 + $0xef0] sm:$0xff]  ;;  %v1733_v32 = vmul.f32 %v3862_v7, %v697_v29  ;;  %v1734_v33 = vmul.f32 %v3864_v8, %v698_v30  ;;  %v700_v35 = vld [vmem:[%s3848_s6 + $0xef8] sm:$0xff] }
 0x145   : > { %2733 = vst [vmem:[%s3888_s21 + $0xe20] sm:$0xff] %v1709_v46  ;;  %2734 = vst [vmem:[%s3888_s21 + $0xe28] sm:$0xff] %v1710_v47  ;;  %v1735_v34 = vmul.f32 %v3862_v7, %v699_v31  ;;  %v701_v36 = vld [vmem:[%s3848_s6 + $0xf00] sm:$0xff]  ;;  %v702_v37 = vld [vmem:[%s3848_s6 + $0xf08] sm:$0xff]  ;;  %v1736_v38 = vmul.f32 %v3864_v8, %v700_v35 }
 0x146   : > { %2735 = vst [vmem:[%s3888_s21 + $0xe30] sm:$0xff] %v1711_v48  ;;  %2736 = vst [vmem:[%s3888_s21 + $0xe38] sm:$0xff] %v1712_v52  ;;  %v1737_v39 = vmul.f32 %v3862_v7, %v701_v36  ;;  %v1738_v40 = vmul.f32 %v3864_v8, %v702_v37  ;;  %v703_v41 = vld [vmem:[%s3848_s6 + $0xf10] sm:$0xff]  ;;  %v704_v42 = vld [vmem:[%s3848_s6 + $0xf18] sm:$0xff] }
 0x147   : > { %2737 = vst [vmem:[%s3888_s21 + $0xe40] sm:$0xff] %v1713_v53  ;;  %2738 = vst [vmem:[%s3888_s21 + $0xe48] sm:$0xff] %v1714_v54  ;;  %v705_v43 = vld [vmem:[%s3848_s6 + $0xf20] sm:$0xff]  ;;  %v1739_v44 = vmul.f32 %v3862_v7, %v703_v41  ;;  %v1740_v45 = vmul.f32 %v3864_v8, %v704_v42  ;;  %v706_v47 = vld [vmem:[%s3848_s6 + $0xf28] sm:$0xff] }
 0x148   : > { %2739 = vst [vmem:[%s3888_s21 + $0xe50] sm:$0xff] %v1715_v58  ;;  %2740 = vst [vmem:[%s3888_s21 + $0xe58] sm:$0xff] %v1716_v59  ;;  %v1741_v46 = vmul.f32 %v3862_v7, %v705_v43  ;;  %v707_v48 = vld [vmem:[%s3848_s6 + $0xf30] sm:$0xff]  ;;  %v708_v49 = vld [vmem:[%s3848_s6 + $0xf38] sm:$0xff]  ;;  %v1742_v50 = vmul.f32 %v3864_v8, %v706_v47 }
 0x149   : > { %2741 = vst [vmem:[%s3888_s21 + $0xe60] sm:$0xff] %v1717_v60  ;;  %2742 = vst [vmem:[%s3888_s21 + $0xe68] sm:$0xff] %v1718_v0  ;;  %v1743_v51 = vmul.f32 %v3862_v7, %v707_v48  ;;  %v1744_v52 = vmul.f32 %v3864_v8, %v708_v49  ;;  %v709_v53 = vld [vmem:[%s3848_s6 + $0xf40] sm:$0xff]  ;;  %v710_v54 = vld [vmem:[%s3848_s6 + $0xf48] sm:$0xff] }
 0x14a   : > { %2743 = vst [vmem:[%s3888_s21 + $0xe70] sm:$0xff] %v1719_v1  ;;  %2744 = vst [vmem:[%s3888_s21 + $0xe78] sm:$0xff] %v1720_v2  ;;  %v711_v55 = vld [vmem:[%s3848_s6 + $0xf50] sm:$0xff]  ;;  %v1745_v56 = vmul.f32 %v3862_v7, %v709_v53  ;;  %v1746_v57 = vmul.f32 %v3864_v8, %v710_v54  ;;  %v712_v59 = vld [vmem:[%s3848_s6 + $0xf58] sm:$0xff] }
 0x14b   : > { %2745 = vst [vmem:[%s3888_s21 + $0xe80] sm:$0xff] %v1721_v6  ;;  %2746 = vst [vmem:[%s3888_s21 + $0xe88] sm:$0xff] %v1722_v9  ;;  %v1747_v58 = vmul.f32 %v3862_v7, %v711_v55  ;;  %v713_v60 = vld [vmem:[%s3848_s6 + $0xf60] sm:$0xff]  ;;  %v714_v61 = vld [vmem:[%s3848_s6 + $0xf68] sm:$0xff]  ;;  %v1748_v62 = vmul.f32 %v3864_v8, %v712_v59 }
 0x14c   : > { %2747 = vst [vmem:[%s3888_s21 + $0xe90] sm:$0xff] %v1723_v10  ;;  %2748 = vst [vmem:[%s3888_s21 + $0xe98] sm:$0xff] %v1724_v14  ;;  %v1749_v63 = vmul.f32 %v3862_v7, %v713_v60  ;;  %v1750_v0 = vmul.f32 %v3864_v8, %v714_v61  ;;  %v715_v1 = vld [vmem:[%s3848_s6 + $0xf70] sm:$0xff]  ;;  %v716_v2 = vld [vmem:[%s3848_s6 + $0xf78] sm:$0xff] }
 0x14d   : > { %2749 = vst [vmem:[%s3888_s21 + $0xea0] sm:$0xff] %v1725_v15  ;;  %2750 = vst [vmem:[%s3888_s21 + $0xea8] sm:$0xff] %v1726_v16  ;;  %v717_v3 = vld [vmem:[%s3848_s6 + $0xf80] sm:$0xff]  ;;  %v1751_v4 = vmul.f32 %v3862_v7, %v715_v1  ;;  %v1752_v5 = vmul.f32 %v3864_v8, %v716_v2  ;;  %v718_v9 = vld [vmem:[%s3848_s6 + $0xf88] sm:$0xff] }
 0x14e   : > { %2751 = vst [vmem:[%s3888_s21 + $0xeb0] sm:$0xff] %v1727_v20  ;;  %2752 = vst [vmem:[%s3888_s21 + $0xeb8] sm:$0xff] %v1728_v21  ;;  %v1753_v6 = vmul.f32 %v3862_v7, %v717_v3  ;;  %v719_v10 = vld [vmem:[%s3848_s6 + $0xf90] sm:$0xff]  ;;  %v720_v11 = vld [vmem:[%s3848_s6 + $0xf98] sm:$0xff]  ;;  %v1754_v12 = vmul.f32 %v3864_v8, %v718_v9 }
 0x14f   : > { %2753 = vst [vmem:[%s3888_s21 + $0xec0] sm:$0xff] %v1729_v22  ;;  %2754 = vst [vmem:[%s3888_s21 + $0xec8] sm:$0xff] %v1730_v26  ;;  %v1755_v13 = vmul.f32 %v3862_v7, %v719_v10  ;;  %v1756_v14 = vmul.f32 %v3864_v8, %v720_v11  ;;  %v721_v15 = vld [vmem:[%s3848_s6 + $0xfa0] sm:$0xff]  ;;  %v722_v16 = vld [vmem:[%s3848_s6 + $0xfa8] sm:$0xff] }
 0x150   : > { %2755 = vst [vmem:[%s3888_s21 + $0xed0] sm:$0xff] %v1731_v27  ;;  %2756 = vst [vmem:[%s3888_s21 + $0xed8] sm:$0xff] %v1732_v28  ;;  %v723_v17 = vld [vmem:[%s3848_s6 + $0xfb0] sm:$0xff]  ;;  %v1757_v18 = vmul.f32 %v3862_v7, %v721_v15  ;;  %v1758_v19 = vmul.f32 %v3864_v8, %v722_v16  ;;  %v724_v21 = vld [vmem:[%s3848_s6 + $0xfb8] sm:$0xff] }
 0x151   : > { %2757 = vst [vmem:[%s3888_s21 + $0xee0] sm:$0xff] %v1733_v32  ;;  %2758 = vst [vmem:[%s3888_s21 + $0xee8] sm:$0xff] %v1734_v33  ;;  %v1759_v20 = vmul.f32 %v3862_v7, %v723_v17  ;;  %v725_v22 = vld [vmem:[%s3848_s6 + $0xfc0] sm:$0xff]  ;;  %v726_v23 = vld [vmem:[%s3848_s6 + $0xfc8] sm:$0xff]  ;;  %v1760_v24 = vmul.f32 %v3864_v8, %v724_v21 }
 0x152   : > { %2759 = vst [vmem:[%s3888_s21 + $0xef0] sm:$0xff] %v1735_v34  ;;  %2760 = vst [vmem:[%s3888_s21 + $0xef8] sm:$0xff] %v1736_v38  ;;  %v1761_v25 = vmul.f32 %v3862_v7, %v725_v22  ;;  %v1762_v26 = vmul.f32 %v3864_v8, %v726_v23  ;;  %v727_v27 = vld [vmem:[%s3848_s6 + $0xfd0] sm:$0xff]  ;;  %v728_v28 = vld [vmem:[%s3848_s6 + $0xfd8] sm:$0xff] }
 0x153   : > { %2761 = vst [vmem:[%s3888_s21 + $0xf00] sm:$0xff] %v1737_v39  ;;  %2762 = vst [vmem:[%s3888_s21 + $0xf08] sm:$0xff] %v1738_v40  ;;  %v729_v29 = vld [vmem:[%s3848_s6 + $0xfe0] sm:$0xff]  ;;  %v1763_v30 = vmul.f32 %v3862_v7, %v727_v27  ;;  %v1764_v31 = vmul.f32 %v3864_v8, %v728_v28  ;;  %v730_v33 = vld [vmem:[%s3848_s6 + $0xfe8] sm:$0xff] }
 0x154   : > { %2763 = vst [vmem:[%s3888_s21 + $0xf10] sm:$0xff] %v1739_v44  ;;  %2764 = vst [vmem:[%s3888_s21 + $0xf18] sm:$0xff] %v1740_v45  ;;  %v1765_v32 = vmul.f32 %v3862_v7, %v729_v29  ;;  %v731_v34 = vld [vmem:[%s3848_s6 + $0xff0] sm:$0xff]  ;;  %v732_v35 = vld [vmem:[%s3848_s6 + $0xff8] sm:$0xff]  ;;  %v1766_v36 = vmul.f32 %v3864_v8, %v730_v33 }
 0x155   : > { %2765 = vst [vmem:[%s3888_s21 + $0xf20] sm:$0xff] %v1741_v46  ;;  %2766 = vst [vmem:[%s3888_s21 + $0xf28] sm:$0xff] %v1742_v50  ;;  %v1767_v37 = vmul.f32 %v3862_v7, %v731_v34  ;;  %v1768_v38 = vmul.f32 %v3864_v8, %v732_v35  ;;  %v733_v39 = vld [vmem:[%s3848_s6 + $0x1000] sm:$0xff]  ;;  %v734_v40 = vld [vmem:[%s3848_s6 + $0x1008] sm:$0xff] }
 0x156   : > { %2767 = vst [vmem:[%s3888_s21 + $0xf30] sm:$0xff] %v1743_v51  ;;  %2768 = vst [vmem:[%s3888_s21 + $0xf38] sm:$0xff] %v1744_v52  ;;  %v735_v41 = vld [vmem:[%s3848_s6 + $0x1010] sm:$0xff]  ;;  %v1769_v42 = vmul.f32 %v3862_v7, %v733_v39  ;;  %v1770_v43 = vmul.f32 %v3864_v8, %v734_v40  ;;  %v736_v45 = vld [vmem:[%s3848_s6 + $0x1018] sm:$0xff] }
 0x157   : > { %2769 = vst [vmem:[%s3888_s21 + $0xf40] sm:$0xff] %v1745_v56  ;;  %2770 = vst [vmem:[%s3888_s21 + $0xf48] sm:$0xff] %v1746_v57  ;;  %v1771_v44 = vmul.f32 %v3862_v7, %v735_v41  ;;  %v737_v46 = vld [vmem:[%s3848_s6 + $0x1020] sm:$0xff]  ;;  %v738_v47 = vld [vmem:[%s3848_s6 + $0x1028] sm:$0xff]  ;;  %v1772_v48 = vmul.f32 %v3864_v8, %v736_v45 }
 0x158   : > { %2771 = vst [vmem:[%s3888_s21 + $0xf50] sm:$0xff] %v1747_v58  ;;  %2772 = vst [vmem:[%s3888_s21 + $0xf58] sm:$0xff] %v1748_v62  ;;  %v1773_v49 = vmul.f32 %v3862_v7, %v737_v46  ;;  %v1774_v50 = vmul.f32 %v3864_v8, %v738_v47  ;;  %v739_v51 = vld [vmem:[%s3848_s6 + $0x1030] sm:$0xff]  ;;  %v740_v52 = vld [vmem:[%s3848_s6 + $0x1038] sm:$0xff] }
 0x159   : > { %2773 = vst [vmem:[%s3888_s21 + $0xf60] sm:$0xff] %v1749_v63  ;;  %2774 = vst [vmem:[%s3888_s21 + $0xf68] sm:$0xff] %v1750_v0  ;;  %v741_v53 = vld [vmem:[%s3848_s6 + $0x1040] sm:$0xff]  ;;  %v1775_v54 = vmul.f32 %v3862_v7, %v739_v51  ;;  %v1776_v55 = vmul.f32 %v3864_v8, %v740_v52  ;;  %v742_v57 = vld [vmem:[%s3848_s6 + $0x1048] sm:$0xff] }
 0x15a   : > { %2775 = vst [vmem:[%s3888_s21 + $0xf70] sm:$0xff] %v1751_v4  ;;  %2776 = vst [vmem:[%s3888_s21 + $0xf78] sm:$0xff] %v1752_v5  ;;  %v1777_v56 = vmul.f32 %v3862_v7, %v741_v53  ;;  %v743_v58 = vld [vmem:[%s3848_s6 + $0x1050] sm:$0xff]  ;;  %v744_v59 = vld [vmem:[%s3848_s6 + $0x1058] sm:$0xff]  ;;  %v1778_v60 = vmul.f32 %v3864_v8, %v742_v57 }
 0x15b   : > { %2777 = vst [vmem:[%s3888_s21 + $0xf80] sm:$0xff] %v1753_v6  ;;  %2778 = vst [vmem:[%s3888_s21 + $0xf88] sm:$0xff] %v1754_v12  ;;  %v1779_v61 = vmul.f32 %v3862_v7, %v743_v58  ;;  %v1780_v62 = vmul.f32 %v3864_v8, %v744_v59  ;;  %v745_v63 = vld [vmem:[%s3848_s6 + $0x1060] sm:$0xff]  ;;  %v746_v0 = vld [vmem:[%s3848_s6 + $0x1068] sm:$0xff] }
 0x15c   : > { %2779 = vst [vmem:[%s3888_s21 + $0xf90] sm:$0xff] %v1755_v13  ;;  %2780 = vst [vmem:[%s3888_s21 + $0xf98] sm:$0xff] %v1756_v14  ;;  %v747_v1 = vld [vmem:[%s3848_s6 + $0x1070] sm:$0xff]  ;;  %v1781_v2 = vmul.f32 %v3862_v7, %v745_v63  ;;  %v1782_v3 = vmul.f32 %v3864_v8, %v746_v0  ;;  %v748_v5 = vld [vmem:[%s3848_s6 + $0x1078] sm:$0xff] }
 0x15d   : > { %2781 = vst [vmem:[%s3888_s21 + $0xfa0] sm:$0xff] %v1757_v18  ;;  %2782 = vst [vmem:[%s3888_s21 + $0xfa8] sm:$0xff] %v1758_v19  ;;  %v1783_v4 = vmul.f32 %v3862_v7, %v747_v1  ;;  %v749_v6 = vld [vmem:[%s3848_s6 + $0x1080] sm:$0xff]  ;;  %v750_v9 = vld [vmem:[%s3848_s6 + $0x1088] sm:$0xff]  ;;  %v1784_v10 = vmul.f32 %v3864_v8, %v748_v5 }
 0x15e   : > { %2783 = vst [vmem:[%s3888_s21 + $0xfb0] sm:$0xff] %v1759_v20  ;;  %2784 = vst [vmem:[%s3888_s21 + $0xfb8] sm:$0xff] %v1760_v24  ;;  %v1785_v11 = vmul.f32 %v3862_v7, %v749_v6  ;;  %v1786_v12 = vmul.f32 %v3864_v8, %v750_v9  ;;  %v751_v13 = vld [vmem:[%s3848_s6 + $0x1090] sm:$0xff]  ;;  %v752_v14 = vld [vmem:[%s3848_s6 + $0x1098] sm:$0xff] }
 0x15f   : > { %2785 = vst [vmem:[%s3888_s21 + $0xfc0] sm:$0xff] %v1761_v25  ;;  %2786 = vst [vmem:[%s3888_s21 + $0xfc8] sm:$0xff] %v1762_v26  ;;  %v753_v15 = vld [vmem:[%s3848_s6 + $0x10a0] sm:$0xff]  ;;  %v1787_v16 = vmul.f32 %v3862_v7, %v751_v13  ;;  %v1788_v17 = vmul.f32 %v3864_v8, %v752_v14  ;;  %v754_v19 = vld [vmem:[%s3848_s6 + $0x10a8] sm:$0xff] }
 0x160   : > { %2787 = vst [vmem:[%s3888_s21 + $0xfd0] sm:$0xff] %v1763_v30  ;;  %2788 = vst [vmem:[%s3888_s21 + $0xfd8] sm:$0xff] %v1764_v31  ;;  %v1789_v18 = vmul.f32 %v3862_v7, %v753_v15  ;;  %v755_v20 = vld [vmem:[%s3848_s6 + $0x10b0] sm:$0xff]  ;;  %v756_v21 = vld [vmem:[%s3848_s6 + $0x10b8] sm:$0xff]  ;;  %v1790_v22 = vmul.f32 %v3864_v8, %v754_v19 }
 0x161   : > { %2789 = vst [vmem:[%s3888_s21 + $0xfe0] sm:$0xff] %v1765_v32  ;;  %2790 = vst [vmem:[%s3888_s21 + $0xfe8] sm:$0xff] %v1766_v36  ;;  %v1791_v23 = vmul.f32 %v3862_v7, %v755_v20  ;;  %v1792_v24 = vmul.f32 %v3864_v8, %v756_v21  ;;  %v757_v25 = vld [vmem:[%s3848_s6 + $0x10c0] sm:$0xff]  ;;  %v758_v26 = vld [vmem:[%s3848_s6 + $0x10c8] sm:$0xff] }
 0x162   : > { %2791 = vst [vmem:[%s3888_s21 + $0xff0] sm:$0xff] %v1767_v37  ;;  %2792 = vst [vmem:[%s3888_s21 + $0xff8] sm:$0xff] %v1768_v38  ;;  %v759_v27 = vld [vmem:[%s3848_s6 + $0x10d0] sm:$0xff]  ;;  %v1793_v28 = vmul.f32 %v3862_v7, %v757_v25  ;;  %v1794_v29 = vmul.f32 %v3864_v8, %v758_v26  ;;  %v760_v31 = vld [vmem:[%s3848_s6 + $0x10d8] sm:$0xff] }
 0x163   : > { %2793 = vst [vmem:[%s3888_s21 + $0x1000] sm:$0xff] %v1769_v42  ;;  %2794 = vst [vmem:[%s3888_s21 + $0x1008] sm:$0xff] %v1770_v43  ;;  %v1795_v30 = vmul.f32 %v3862_v7, %v759_v27  ;;  %v761_v32 = vld [vmem:[%s3848_s6 + $0x10e0] sm:$0xff]  ;;  %v762_v33 = vld [vmem:[%s3848_s6 + $0x10e8] sm:$0xff]  ;;  %v1796_v34 = vmul.f32 %v3864_v8, %v760_v31 }
 0x164   : > { %2795 = vst [vmem:[%s3888_s21 + $0x1010] sm:$0xff] %v1771_v44  ;;  %2796 = vst [vmem:[%s3888_s21 + $0x1018] sm:$0xff] %v1772_v48  ;;  %v1797_v35 = vmul.f32 %v3862_v7, %v761_v32  ;;  %v1798_v36 = vmul.f32 %v3864_v8, %v762_v33  ;;  %v763_v37 = vld [vmem:[%s3848_s6 + $0x10f0] sm:$0xff]  ;;  %v764_v38 = vld [vmem:[%s3848_s6 + $0x10f8] sm:$0xff] }
 0x165   : > { %2797 = vst [vmem:[%s3888_s21 + $0x1020] sm:$0xff] %v1773_v49  ;;  %2798 = vst [vmem:[%s3888_s21 + $0x1028] sm:$0xff] %v1774_v50  ;;  %v765_v39 = vld [vmem:[%s3848_s6 + $0x1100] sm:$0xff]  ;;  %v1799_v40 = vmul.f32 %v3862_v7, %v763_v37  ;;  %v1800_v41 = vmul.f32 %v3864_v8, %v764_v38  ;;  %v766_v43 = vld [vmem:[%s3848_s6 + $0x1108] sm:$0xff] }
 0x166   : > { %2799 = vst [vmem:[%s3888_s21 + $0x1030] sm:$0xff] %v1775_v54  ;;  %2800 = vst [vmem:[%s3888_s21 + $0x1038] sm:$0xff] %v1776_v55  ;;  %v1801_v42 = vmul.f32 %v3862_v7, %v765_v39  ;;  %v767_v44 = vld [vmem:[%s3848_s6 + $0x1110] sm:$0xff]  ;;  %v768_v45 = vld [vmem:[%s3848_s6 + $0x1118] sm:$0xff]  ;;  %v1802_v46 = vmul.f32 %v3864_v8, %v766_v43 }
 0x167   : > { %2801 = vst [vmem:[%s3888_s21 + $0x1040] sm:$0xff] %v1777_v56  ;;  %2802 = vst [vmem:[%s3888_s21 + $0x1048] sm:$0xff] %v1778_v60  ;;  %v1803_v47 = vmul.f32 %v3862_v7, %v767_v44  ;;  %v1804_v48 = vmul.f32 %v3864_v8, %v768_v45  ;;  %v769_v49 = vld [vmem:[%s3848_s6 + $0x1120] sm:$0xff]  ;;  %v770_v50 = vld [vmem:[%s3848_s6 + $0x1128] sm:$0xff] }
 0x168   : > { %2803 = vst [vmem:[%s3888_s21 + $0x1050] sm:$0xff] %v1779_v61  ;;  %2804 = vst [vmem:[%s3888_s21 + $0x1058] sm:$0xff] %v1780_v62  ;;  %v771_v51 = vld [vmem:[%s3848_s6 + $0x1130] sm:$0xff]  ;;  %v1805_v52 = vmul.f32 %v3862_v7, %v769_v49  ;;  %v1806_v53 = vmul.f32 %v3864_v8, %v770_v50  ;;  %v772_v55 = vld [vmem:[%s3848_s6 + $0x1138] sm:$0xff] }
 0x169   : > { %2805 = vst [vmem:[%s3888_s21 + $0x1060] sm:$0xff] %v1781_v2  ;;  %2806 = vst [vmem:[%s3888_s21 + $0x1068] sm:$0xff] %v1782_v3  ;;  %v1807_v54 = vmul.f32 %v3862_v7, %v771_v51  ;;  %v773_v56 = vld [vmem:[%s3848_s6 + $0x1140] sm:$0xff]  ;;  %v774_v57 = vld [vmem:[%s3848_s6 + $0x1148] sm:$0xff]  ;;  %v1808_v58 = vmul.f32 %v3864_v8, %v772_v55 }
 0x16a   : > { %2807 = vst [vmem:[%s3888_s21 + $0x1070] sm:$0xff] %v1783_v4  ;;  %2808 = vst [vmem:[%s3888_s21 + $0x1078] sm:$0xff] %v1784_v10  ;;  %v1809_v59 = vmul.f32 %v3862_v7, %v773_v56  ;;  %v1810_v60 = vmul.f32 %v3864_v8, %v774_v57  ;;  %v775_v61 = vld [vmem:[%s3848_s6 + $0x1150] sm:$0xff]  ;;  %v776_v62 = vld [vmem:[%s3848_s6 + $0x1158] sm:$0xff] }
 0x16b   : > { %2809 = vst [vmem:[%s3888_s21 + $0x1080] sm:$0xff] %v1785_v11  ;;  %2810 = vst [vmem:[%s3888_s21 + $0x1088] sm:$0xff] %v1786_v12  ;;  %v777_v63 = vld [vmem:[%s3848_s6 + $0x1160] sm:$0xff]  ;;  %v1811_v0 = vmul.f32 %v3862_v7, %v775_v61  ;;  %v1812_v1 = vmul.f32 %v3864_v8, %v776_v62  ;;  %v778_v3 = vld [vmem:[%s3848_s6 + $0x1168] sm:$0xff] }
 0x16c   : > { %2811 = vst [vmem:[%s3888_s21 + $0x1090] sm:$0xff] %v1787_v16  ;;  %2812 = vst [vmem:[%s3888_s21 + $0x1098] sm:$0xff] %v1788_v17  ;;  %v1813_v2 = vmul.f32 %v3862_v7, %v777_v63  ;;  %v779_v4 = vld [vmem:[%s3848_s6 + $0x1170] sm:$0xff]  ;;  %v780_v5 = vld [vmem:[%s3848_s6 + $0x1178] sm:$0xff]  ;;  %v1814_v6 = vmul.f32 %v3864_v8, %v778_v3 }
 0x16d   : > { %2813 = vst [vmem:[%s3888_s21 + $0x10a0] sm:$0xff] %v1789_v18  ;;  %2814 = vst [vmem:[%s3888_s21 + $0x10a8] sm:$0xff] %v1790_v22  ;;  %v1815_v9 = vmul.f32 %v3862_v7, %v779_v4  ;;  %v1816_v10 = vmul.f32 %v3864_v8, %v780_v5  ;;  %v781_v11 = vld [vmem:[%s3848_s6 + $0x1180] sm:$0xff]  ;;  %v782_v12 = vld [vmem:[%s3848_s6 + $0x1188] sm:$0xff] }
 0x16e   : > { %2815 = vst [vmem:[%s3888_s21 + $0x10b0] sm:$0xff] %v1791_v23  ;;  %2816 = vst [vmem:[%s3888_s21 + $0x10b8] sm:$0xff] %v1792_v24  ;;  %v783_v13 = vld [vmem:[%s3848_s6 + $0x1190] sm:$0xff]  ;;  %v1817_v14 = vmul.f32 %v3862_v7, %v781_v11  ;;  %v1818_v15 = vmul.f32 %v3864_v8, %v782_v12  ;;  %v784_v17 = vld [vmem:[%s3848_s6 + $0x1198] sm:$0xff] }
 0x16f   : > { %2817 = vst [vmem:[%s3888_s21 + $0x10c0] sm:$0xff] %v1793_v28  ;;  %2818 = vst [vmem:[%s3888_s21 + $0x10c8] sm:$0xff] %v1794_v29  ;;  %v1819_v16 = vmul.f32 %v3862_v7, %v783_v13  ;;  %v785_v18 = vld [vmem:[%s3848_s6 + $0x11a0] sm:$0xff]  ;;  %v786_v19 = vld [vmem:[%s3848_s6 + $0x11a8] sm:$0xff]  ;;  %v1820_v20 = vmul.f32 %v3864_v8, %v784_v17 }
 0x170   : > { %2819 = vst [vmem:[%s3888_s21 + $0x10d0] sm:$0xff] %v1795_v30  ;;  %2820 = vst [vmem:[%s3888_s21 + $0x10d8] sm:$0xff] %v1796_v34  ;;  %v1821_v21 = vmul.f32 %v3862_v7, %v785_v18  ;;  %v1822_v22 = vmul.f32 %v3864_v8, %v786_v19  ;;  %v787_v23 = vld [vmem:[%s3848_s6 + $0x11b0] sm:$0xff]  ;;  %v788_v24 = vld [vmem:[%s3848_s6 + $0x11b8] sm:$0xff] }
 0x171   : > { %2821 = vst [vmem:[%s3888_s21 + $0x10e0] sm:$0xff] %v1797_v35  ;;  %2822 = vst [vmem:[%s3888_s21 + $0x10e8] sm:$0xff] %v1798_v36  ;;  %v789_v25 = vld [vmem:[%s3848_s6 + $0x11c0] sm:$0xff]  ;;  %v1823_v26 = vmul.f32 %v3862_v7, %v787_v23  ;;  %v1824_v27 = vmul.f32 %v3864_v8, %v788_v24  ;;  %v790_v29 = vld [vmem:[%s3848_s6 + $0x11c8] sm:$0xff] }
 0x172   : > { %2823 = vst [vmem:[%s3888_s21 + $0x10f0] sm:$0xff] %v1799_v40  ;;  %2824 = vst [vmem:[%s3888_s21 + $0x10f8] sm:$0xff] %v1800_v41  ;;  %v1825_v28 = vmul.f32 %v3862_v7, %v789_v25  ;;  %v791_v30 = vld [vmem:[%s3848_s6 + $0x11d0] sm:$0xff]  ;;  %v792_v31 = vld [vmem:[%s3848_s6 + $0x11d8] sm:$0xff]  ;;  %v1826_v32 = vmul.f32 %v3864_v8, %v790_v29 }
 0x173   : > { %2825 = vst [vmem:[%s3888_s21 + $0x1100] sm:$0xff] %v1801_v42  ;;  %2826 = vst [vmem:[%s3888_s21 + $0x1108] sm:$0xff] %v1802_v46  ;;  %v1827_v33 = vmul.f32 %v3862_v7, %v791_v30  ;;  %v1828_v34 = vmul.f32 %v3864_v8, %v792_v31  ;;  %v793_v35 = vld [vmem:[%s3848_s6 + $0x11e0] sm:$0xff]  ;;  %v794_v36 = vld [vmem:[%s3848_s6 + $0x11e8] sm:$0xff] }
 0x174   : > { %2827 = vst [vmem:[%s3888_s21 + $0x1110] sm:$0xff] %v1803_v47  ;;  %2828 = vst [vmem:[%s3888_s21 + $0x1118] sm:$0xff] %v1804_v48  ;;  %v795_v37 = vld [vmem:[%s3848_s6 + $0x11f0] sm:$0xff]  ;;  %v1829_v38 = vmul.f32 %v3862_v7, %v793_v35  ;;  %v1830_v39 = vmul.f32 %v3864_v8, %v794_v36  ;;  %v796_v41 = vld [vmem:[%s3848_s6 + $0x11f8] sm:$0xff] }
 0x175   : > { %2829 = vst [vmem:[%s3888_s21 + $0x1120] sm:$0xff] %v1805_v52  ;;  %2830 = vst [vmem:[%s3888_s21 + $0x1128] sm:$0xff] %v1806_v53  ;;  %v1831_v40 = vmul.f32 %v3862_v7, %v795_v37  ;;  %v797_v42 = vld [vmem:[%s3848_s6 + $0x1200] sm:$0xff]  ;;  %v798_v43 = vld [vmem:[%s3848_s6 + $0x1208] sm:$0xff]  ;;  %v1832_v44 = vmul.f32 %v3864_v8, %v796_v41 }
 0x176   : > { %2831 = vst [vmem:[%s3888_s21 + $0x1130] sm:$0xff] %v1807_v54  ;;  %2832 = vst [vmem:[%s3888_s21 + $0x1138] sm:$0xff] %v1808_v58  ;;  %v1833_v45 = vmul.f32 %v3862_v7, %v797_v42  ;;  %v1834_v46 = vmul.f32 %v3864_v8, %v798_v43  ;;  %v799_v47 = vld [vmem:[%s3848_s6 + $0x1210] sm:$0xff]  ;;  %v800_v48 = vld [vmem:[%s3848_s6 + $0x1218] sm:$0xff] }
 0x177   : > { %2833 = vst [vmem:[%s3888_s21 + $0x1140] sm:$0xff] %v1809_v59  ;;  %2834 = vst [vmem:[%s3888_s21 + $0x1148] sm:$0xff] %v1810_v60  ;;  %v801_v49 = vld [vmem:[%s3848_s6 + $0x1220] sm:$0xff]  ;;  %v1835_v50 = vmul.f32 %v3862_v7, %v799_v47  ;;  %v1836_v51 = vmul.f32 %v3864_v8, %v800_v48  ;;  %v802_v53 = vld [vmem:[%s3848_s6 + $0x1228] sm:$0xff] }
 0x178   : > { %2835 = vst [vmem:[%s3888_s21 + $0x1150] sm:$0xff] %v1811_v0  ;;  %2836 = vst [vmem:[%s3888_s21 + $0x1158] sm:$0xff] %v1812_v1  ;;  %v1837_v52 = vmul.f32 %v3862_v7, %v801_v49  ;;  %v803_v54 = vld [vmem:[%s3848_s6 + $0x1230] sm:$0xff]  ;;  %v804_v55 = vld [vmem:[%s3848_s6 + $0x1238] sm:$0xff]  ;;  %v1838_v56 = vmul.f32 %v3864_v8, %v802_v53 }
 0x179   : > { %2837 = vst [vmem:[%s3888_s21 + $0x1160] sm:$0xff] %v1813_v2  ;;  %2838 = vst [vmem:[%s3888_s21 + $0x1168] sm:$0xff] %v1814_v6  ;;  %v1839_v57 = vmul.f32 %v3862_v7, %v803_v54  ;;  %v1840_v58 = vmul.f32 %v3864_v8, %v804_v55  ;;  %v805_v59 = vld [vmem:[%s3848_s6 + $0x1240] sm:$0xff]  ;;  %v806_v60 = vld [vmem:[%s3848_s6 + $0x1248] sm:$0xff] }
 0x17a   : > { %2839 = vst [vmem:[%s3888_s21 + $0x1170] sm:$0xff] %v1815_v9  ;;  %2840 = vst [vmem:[%s3888_s21 + $0x1178] sm:$0xff] %v1816_v10  ;;  %v807_v61 = vld [vmem:[%s3848_s6 + $0x1250] sm:$0xff]  ;;  %v1841_v62 = vmul.f32 %v3862_v7, %v805_v59  ;;  %v1842_v63 = vmul.f32 %v3864_v8, %v806_v60  ;;  %v808_v1 = vld [vmem:[%s3848_s6 + $0x1258] sm:$0xff] }
 0x17b   : > { %2841 = vst [vmem:[%s3888_s21 + $0x1180] sm:$0xff] %v1817_v14  ;;  %2842 = vst [vmem:[%s3888_s21 + $0x1188] sm:$0xff] %v1818_v15  ;;  %v1843_v0 = vmul.f32 %v3862_v7, %v807_v61  ;;  %v809_v2 = vld [vmem:[%s3848_s6 + $0x1260] sm:$0xff]  ;;  %v810_v3 = vld [vmem:[%s3848_s6 + $0x1268] sm:$0xff]  ;;  %v1844_v4 = vmul.f32 %v3864_v8, %v808_v1 }
 0x17c   : > { %2843 = vst [vmem:[%s3888_s21 + $0x1190] sm:$0xff] %v1819_v16  ;;  %2844 = vst [vmem:[%s3888_s21 + $0x1198] sm:$0xff] %v1820_v20  ;;  %v1845_v5 = vmul.f32 %v3862_v7, %v809_v2  ;;  %v1846_v6 = vmul.f32 %v3864_v8, %v810_v3  ;;  %v811_v9 = vld [vmem:[%s3848_s6 + $0x1270] sm:$0xff]  ;;  %v812_v10 = vld [vmem:[%s3848_s6 + $0x1278] sm:$0xff] }
 0x17d   : > { %2845 = vst [vmem:[%s3888_s21 + $0x11a0] sm:$0xff] %v1821_v21  ;;  %2846 = vst [vmem:[%s3888_s21 + $0x11a8] sm:$0xff] %v1822_v22  ;;  %v813_v11 = vld [vmem:[%s3848_s6 + $0x1280] sm:$0xff]  ;;  %v1847_v12 = vmul.f32 %v3862_v7, %v811_v9  ;;  %v1848_v13 = vmul.f32 %v3864_v8, %v812_v10  ;;  %v814_v15 = vld [vmem:[%s3848_s6 + $0x1288] sm:$0xff] }
 0x17e   : > { %2847 = vst [vmem:[%s3888_s21 + $0x11b0] sm:$0xff] %v1823_v26  ;;  %2848 = vst [vmem:[%s3888_s21 + $0x11b8] sm:$0xff] %v1824_v27  ;;  %v1849_v14 = vmul.f32 %v3862_v7, %v813_v11  ;;  %v815_v16 = vld [vmem:[%s3848_s6 + $0x1290] sm:$0xff]  ;;  %v816_v17 = vld [vmem:[%s3848_s6 + $0x1298] sm:$0xff]  ;;  %v1850_v18 = vmul.f32 %v3864_v8, %v814_v15 }
 0x17f   : > { %2849 = vst [vmem:[%s3888_s21 + $0x11c0] sm:$0xff] %v1825_v28  ;;  %2850 = vst [vmem:[%s3888_s21 + $0x11c8] sm:$0xff] %v1826_v32  ;;  %v1851_v19 = vmul.f32 %v3862_v7, %v815_v16  ;;  %v1852_v20 = vmul.f32 %v3864_v8, %v816_v17  ;;  %v817_v21 = vld [vmem:[%s3848_s6 + $0x12a0] sm:$0xff]  ;;  %v818_v22 = vld [vmem:[%s3848_s6 + $0x12a8] sm:$0xff] }
 0x180   : > { %2851 = vst [vmem:[%s3888_s21 + $0x11d0] sm:$0xff] %v1827_v33  ;;  %2852 = vst [vmem:[%s3888_s21 + $0x11d8] sm:$0xff] %v1828_v34  ;;  %v819_v23 = vld [vmem:[%s3848_s6 + $0x12b0] sm:$0xff]  ;;  %v1853_v24 = vmul.f32 %v3862_v7, %v817_v21  ;;  %v1854_v25 = vmul.f32 %v3864_v8, %v818_v22  ;;  %v820_v27 = vld [vmem:[%s3848_s6 + $0x12b8] sm:$0xff] }
 0x181   : > { %2853 = vst [vmem:[%s3888_s21 + $0x11e0] sm:$0xff] %v1829_v38  ;;  %2854 = vst [vmem:[%s3888_s21 + $0x11e8] sm:$0xff] %v1830_v39  ;;  %v1855_v26 = vmul.f32 %v3862_v7, %v819_v23  ;;  %v821_v28 = vld [vmem:[%s3848_s6 + $0x12c0] sm:$0xff]  ;;  %v822_v29 = vld [vmem:[%s3848_s6 + $0x12c8] sm:$0xff]  ;;  %v1856_v30 = vmul.f32 %v3864_v8, %v820_v27 }
 0x182   : > { %2855 = vst [vmem:[%s3888_s21 + $0x11f0] sm:$0xff] %v1831_v40  ;;  %2856 = vst [vmem:[%s3888_s21 + $0x11f8] sm:$0xff] %v1832_v44  ;;  %v1857_v31 = vmul.f32 %v3862_v7, %v821_v28  ;;  %v1858_v32 = vmul.f32 %v3864_v8, %v822_v29  ;;  %v823_v33 = vld [vmem:[%s3848_s6 + $0x12d0] sm:$0xff]  ;;  %v824_v34 = vld [vmem:[%s3848_s6 + $0x12d8] sm:$0xff] }
 0x183   : > { %2857 = vst [vmem:[%s3888_s21 + $0x1200] sm:$0xff] %v1833_v45  ;;  %2858 = vst [vmem:[%s3888_s21 + $0x1208] sm:$0xff] %v1834_v46  ;;  %v825_v35 = vld [vmem:[%s3848_s6 + $0x12e0] sm:$0xff]  ;;  %v1859_v36 = vmul.f32 %v3862_v7, %v823_v33  ;;  %v1860_v37 = vmul.f32 %v3864_v8, %v824_v34  ;;  %v826_v39 = vld [vmem:[%s3848_s6 + $0x12e8] sm:$0xff] }
 0x184   : > { %2859 = vst [vmem:[%s3888_s21 + $0x1210] sm:$0xff] %v1835_v50  ;;  %2860 = vst [vmem:[%s3888_s21 + $0x1218] sm:$0xff] %v1836_v51  ;;  %v1861_v38 = vmul.f32 %v3862_v7, %v825_v35  ;;  %v827_v40 = vld [vmem:[%s3848_s6 + $0x12f0] sm:$0xff]  ;;  %v828_v41 = vld [vmem:[%s3848_s6 + $0x12f8] sm:$0xff]  ;;  %v1862_v42 = vmul.f32 %v3864_v8, %v826_v39 }
 0x185   : > { %2861 = vst [vmem:[%s3888_s21 + $0x1220] sm:$0xff] %v1837_v52  ;;  %2862 = vst [vmem:[%s3888_s21 + $0x1228] sm:$0xff] %v1838_v56  ;;  %v1863_v43 = vmul.f32 %v3862_v7, %v827_v40  ;;  %v1864_v44 = vmul.f32 %v3864_v8, %v828_v41  ;;  %v829_v45 = vld [vmem:[%s3848_s6 + $0x1300] sm:$0xff]  ;;  %v830_v46 = vld [vmem:[%s3848_s6 + $0x1308] sm:$0xff] }
 0x186   : > { %2863 = vst [vmem:[%s3888_s21 + $0x1230] sm:$0xff] %v1839_v57  ;;  %2864 = vst [vmem:[%s3888_s21 + $0x1238] sm:$0xff] %v1840_v58  ;;  %v831_v47 = vld [vmem:[%s3848_s6 + $0x1310] sm:$0xff]  ;;  %v1865_v48 = vmul.f32 %v3862_v7, %v829_v45  ;;  %v1866_v49 = vmul.f32 %v3864_v8, %v830_v46  ;;  %v832_v51 = vld [vmem:[%s3848_s6 + $0x1318] sm:$0xff] }
 0x187   : > { %2865 = vst [vmem:[%s3888_s21 + $0x1240] sm:$0xff] %v1841_v62  ;;  %2866 = vst [vmem:[%s3888_s21 + $0x1248] sm:$0xff] %v1842_v63  ;;  %v1867_v50 = vmul.f32 %v3862_v7, %v831_v47  ;;  %v833_v52 = vld [vmem:[%s3848_s6 + $0x1320] sm:$0xff]  ;;  %v834_v53 = vld [vmem:[%s3848_s6 + $0x1328] sm:$0xff]  ;;  %v1868_v54 = vmul.f32 %v3864_v8, %v832_v51 }
 0x188   : > { %2867 = vst [vmem:[%s3888_s21 + $0x1250] sm:$0xff] %v1843_v0  ;;  %2868 = vst [vmem:[%s3888_s21 + $0x1258] sm:$0xff] %v1844_v4  ;;  %v1869_v55 = vmul.f32 %v3862_v7, %v833_v52  ;;  %v1870_v56 = vmul.f32 %v3864_v8, %v834_v53  ;;  %v835_v57 = vld [vmem:[%s3848_s6 + $0x1330] sm:$0xff]  ;;  %v836_v58 = vld [vmem:[%s3848_s6 + $0x1338] sm:$0xff] }
 0x189   : > { %2869 = vst [vmem:[%s3888_s21 + $0x1260] sm:$0xff] %v1845_v5  ;;  %2870 = vst [vmem:[%s3888_s21 + $0x1268] sm:$0xff] %v1846_v6  ;;  %v837_v59 = vld [vmem:[%s3848_s6 + $0x1340] sm:$0xff]  ;;  %v1871_v60 = vmul.f32 %v3862_v7, %v835_v57  ;;  %v1872_v61 = vmul.f32 %v3864_v8, %v836_v58  ;;  %v838_v63 = vld [vmem:[%s3848_s6 + $0x1348] sm:$0xff] }
 0x18a   : > { %2871 = vst [vmem:[%s3888_s21 + $0x1270] sm:$0xff] %v1847_v12  ;;  %2872 = vst [vmem:[%s3888_s21 + $0x1278] sm:$0xff] %v1848_v13  ;;  %v1873_v62 = vmul.f32 %v3862_v7, %v837_v59  ;;  %v839_v0 = vld [vmem:[%s3848_s6 + $0x1350] sm:$0xff]  ;;  %v840_v1 = vld [vmem:[%s3848_s6 + $0x1358] sm:$0xff]  ;;  %v1874_v2 = vmul.f32 %v3864_v8, %v838_v63 }
 0x18b   : > { %2873 = vst [vmem:[%s3888_s21 + $0x1280] sm:$0xff] %v1849_v14  ;;  %2874 = vst [vmem:[%s3888_s21 + $0x1288] sm:$0xff] %v1850_v18  ;;  %v1875_v3 = vmul.f32 %v3862_v7, %v839_v0  ;;  %v1876_v4 = vmul.f32 %v3864_v8, %v840_v1  ;;  %v841_v5 = vld [vmem:[%s3848_s6 + $0x1360] sm:$0xff]  ;;  %v842_v6 = vld [vmem:[%s3848_s6 + $0x1368] sm:$0xff] }
 0x18c   : > { %2875 = vst [vmem:[%s3888_s21 + $0x1290] sm:$0xff] %v1851_v19  ;;  %2876 = vst [vmem:[%s3888_s21 + $0x1298] sm:$0xff] %v1852_v20  ;;  %v843_v9 = vld [vmem:[%s3848_s6 + $0x1370] sm:$0xff]  ;;  %v1877_v10 = vmul.f32 %v3862_v7, %v841_v5  ;;  %v1878_v11 = vmul.f32 %v3864_v8, %v842_v6  ;;  %v844_v13 = vld [vmem:[%s3848_s6 + $0x1378] sm:$0xff] }
 0x18d   : > { %2877 = vst [vmem:[%s3888_s21 + $0x12a0] sm:$0xff] %v1853_v24  ;;  %2878 = vst [vmem:[%s3888_s21 + $0x12a8] sm:$0xff] %v1854_v25  ;;  %v1879_v12 = vmul.f32 %v3862_v7, %v843_v9  ;;  %v845_v14 = vld [vmem:[%s3848_s6 + $0x1380] sm:$0xff]  ;;  %v846_v15 = vld [vmem:[%s3848_s6 + $0x1388] sm:$0xff]  ;;  %v1880_v16 = vmul.f32 %v3864_v8, %v844_v13 }
 0x18e   : > { %2879 = vst [vmem:[%s3888_s21 + $0x12b0] sm:$0xff] %v1855_v26  ;;  %2880 = vst [vmem:[%s3888_s21 + $0x12b8] sm:$0xff] %v1856_v30  ;;  %v1881_v17 = vmul.f32 %v3862_v7, %v845_v14  ;;  %v1882_v18 = vmul.f32 %v3864_v8, %v846_v15  ;;  %v847_v19 = vld [vmem:[%s3848_s6 + $0x1390] sm:$0xff]  ;;  %v848_v20 = vld [vmem:[%s3848_s6 + $0x1398] sm:$0xff] }
 0x18f   : > { %2881 = vst [vmem:[%s3888_s21 + $0x12c0] sm:$0xff] %v1857_v31  ;;  %2882 = vst [vmem:[%s3888_s21 + $0x12c8] sm:$0xff] %v1858_v32  ;;  %v849_v21 = vld [vmem:[%s3848_s6 + $0x13a0] sm:$0xff]  ;;  %v1883_v22 = vmul.f32 %v3862_v7, %v847_v19  ;;  %v1884_v23 = vmul.f32 %v3864_v8, %v848_v20  ;;  %v850_v25 = vld [vmem:[%s3848_s6 + $0x13a8] sm:$0xff] }
 0x190   : > { %2883 = vst [vmem:[%s3888_s21 + $0x12d0] sm:$0xff] %v1859_v36  ;;  %2884 = vst [vmem:[%s3888_s21 + $0x12d8] sm:$0xff] %v1860_v37  ;;  %v1885_v24 = vmul.f32 %v3862_v7, %v849_v21  ;;  %v851_v26 = vld [vmem:[%s3848_s6 + $0x13b0] sm:$0xff]  ;;  %v852_v27 = vld [vmem:[%s3848_s6 + $0x13b8] sm:$0xff]  ;;  %v1886_v28 = vmul.f32 %v3864_v8, %v850_v25 }
 0x191   : > { %2885 = vst [vmem:[%s3888_s21 + $0x12e0] sm:$0xff] %v1861_v38  ;;  %2886 = vst [vmem:[%s3888_s21 + $0x12e8] sm:$0xff] %v1862_v42  ;;  %v1887_v29 = vmul.f32 %v3862_v7, %v851_v26  ;;  %v1888_v30 = vmul.f32 %v3864_v8, %v852_v27  ;;  %v853_v31 = vld [vmem:[%s3848_s6 + $0x13c0] sm:$0xff]  ;;  %v854_v32 = vld [vmem:[%s3848_s6 + $0x13c8] sm:$0xff] }
 0x192   : > { %2887 = vst [vmem:[%s3888_s21 + $0x12f0] sm:$0xff] %v1863_v43  ;;  %2888 = vst [vmem:[%s3888_s21 + $0x12f8] sm:$0xff] %v1864_v44  ;;  %v855_v33 = vld [vmem:[%s3848_s6 + $0x13d0] sm:$0xff]  ;;  %v1889_v34 = vmul.f32 %v3862_v7, %v853_v31  ;;  %v1890_v35 = vmul.f32 %v3864_v8, %v854_v32  ;;  %v856_v37 = vld [vmem:[%s3848_s6 + $0x13d8] sm:$0xff] }
 0x193   : > { %2889 = vst [vmem:[%s3888_s21 + $0x1300] sm:$0xff] %v1865_v48  ;;  %2890 = vst [vmem:[%s3888_s21 + $0x1308] sm:$0xff] %v1866_v49  ;;  %v1891_v36 = vmul.f32 %v3862_v7, %v855_v33  ;;  %v857_v38 = vld [vmem:[%s3848_s6 + $0x13e0] sm:$0xff]  ;;  %v858_v39 = vld [vmem:[%s3848_s6 + $0x13e8] sm:$0xff]  ;;  %v1892_v40 = vmul.f32 %v3864_v8, %v856_v37 }
 0x194   : > { %2891 = vst [vmem:[%s3888_s21 + $0x1310] sm:$0xff] %v1867_v50  ;;  %2892 = vst [vmem:[%s3888_s21 + $0x1318] sm:$0xff] %v1868_v54  ;;  %v1893_v41 = vmul.f32 %v3862_v7, %v857_v38  ;;  %v1894_v42 = vmul.f32 %v3864_v8, %v858_v39  ;;  %v859_v43 = vld [vmem:[%s3848_s6 + $0x13f0] sm:$0xff]  ;;  %v860_v44 = vld [vmem:[%s3848_s6 + $0x13f8] sm:$0xff] }
 0x195   : > { %2893 = vst [vmem:[%s3888_s21 + $0x1320] sm:$0xff] %v1869_v55  ;;  %2894 = vst [vmem:[%s3888_s21 + $0x1328] sm:$0xff] %v1870_v56  ;;  %v861_v45 = vld [vmem:[%s3848_s6 + $0x1400] sm:$0xff]  ;;  %v1895_v46 = vmul.f32 %v3862_v7, %v859_v43  ;;  %v1896_v47 = vmul.f32 %v3864_v8, %v860_v44  ;;  %v862_v49 = vld [vmem:[%s3848_s6 + $0x1408] sm:$0xff] }
 0x196   : > { %2895 = vst [vmem:[%s3888_s21 + $0x1330] sm:$0xff] %v1871_v60  ;;  %2896 = vst [vmem:[%s3888_s21 + $0x1338] sm:$0xff] %v1872_v61  ;;  %v1897_v48 = vmul.f32 %v3862_v7, %v861_v45  ;;  %v863_v50 = vld [vmem:[%s3848_s6 + $0x1410] sm:$0xff]  ;;  %v864_v51 = vld [vmem:[%s3848_s6 + $0x1418] sm:$0xff]  ;;  %v1898_v52 = vmul.f32 %v3864_v8, %v862_v49 }
 0x197   : > { %2897 = vst [vmem:[%s3888_s21 + $0x1340] sm:$0xff] %v1873_v62  ;;  %2898 = vst [vmem:[%s3888_s21 + $0x1348] sm:$0xff] %v1874_v2  ;;  %v1899_v53 = vmul.f32 %v3862_v7, %v863_v50  ;;  %v1900_v54 = vmul.f32 %v3864_v8, %v864_v51  ;;  %v865_v55 = vld [vmem:[%s3848_s6 + $0x1420] sm:$0xff]  ;;  %v866_v56 = vld [vmem:[%s3848_s6 + $0x1428] sm:$0xff] }
 0x198   : > { %2899 = vst [vmem:[%s3888_s21 + $0x1350] sm:$0xff] %v1875_v3  ;;  %2900 = vst [vmem:[%s3888_s21 + $0x1358] sm:$0xff] %v1876_v4  ;;  %v867_v57 = vld [vmem:[%s3848_s6 + $0x1430] sm:$0xff]  ;;  %v1901_v58 = vmul.f32 %v3862_v7, %v865_v55  ;;  %v1902_v59 = vmul.f32 %v3864_v8, %v866_v56  ;;  %v868_v61 = vld [vmem:[%s3848_s6 + $0x1438] sm:$0xff] }
 0x199   : > { %2901 = vst [vmem:[%s3888_s21 + $0x1360] sm:$0xff] %v1877_v10  ;;  %2902 = vst [vmem:[%s3888_s21 + $0x1368] sm:$0xff] %v1878_v11  ;;  %v1903_v60 = vmul.f32 %v3862_v7, %v867_v57  ;;  %v869_v62 = vld [vmem:[%s3848_s6 + $0x1440] sm:$0xff]  ;;  %v870_v63 = vld [vmem:[%s3848_s6 + $0x1448] sm:$0xff]  ;;  %v1904_v0 = vmul.f32 %v3864_v8, %v868_v61 }
 0x19a   : > { %2903 = vst [vmem:[%s3888_s21 + $0x1370] sm:$0xff] %v1879_v12  ;;  %2904 = vst [vmem:[%s3888_s21 + $0x1378] sm:$0xff] %v1880_v16  ;;  %v1905_v1 = vmul.f32 %v3862_v7, %v869_v62  ;;  %v1906_v2 = vmul.f32 %v3864_v8, %v870_v63  ;;  %v871_v3 = vld [vmem:[%s3848_s6 + $0x1450] sm:$0xff]  ;;  %v872_v4 = vld [vmem:[%s3848_s6 + $0x1458] sm:$0xff] }
 0x19b   : > { %2905 = vst [vmem:[%s3888_s21 + $0x1380] sm:$0xff] %v1881_v17  ;;  %2906 = vst [vmem:[%s3888_s21 + $0x1388] sm:$0xff] %v1882_v18  ;;  %v873_v5 = vld [vmem:[%s3848_s6 + $0x1460] sm:$0xff]  ;;  %v1907_v6 = vmul.f32 %v3862_v7, %v871_v3  ;;  %v1908_v9 = vmul.f32 %v3864_v8, %v872_v4  ;;  %v874_v11 = vld [vmem:[%s3848_s6 + $0x1468] sm:$0xff] }
 0x19c   : > { %2907 = vst [vmem:[%s3888_s21 + $0x1390] sm:$0xff] %v1883_v22  ;;  %2908 = vst [vmem:[%s3888_s21 + $0x1398] sm:$0xff] %v1884_v23  ;;  %v1909_v10 = vmul.f32 %v3862_v7, %v873_v5  ;;  %v875_v12 = vld [vmem:[%s3848_s6 + $0x1470] sm:$0xff]  ;;  %v876_v13 = vld [vmem:[%s3848_s6 + $0x1478] sm:$0xff]  ;;  %v1910_v14 = vmul.f32 %v3864_v8, %v874_v11 }
 0x19d   : > { %2909 = vst [vmem:[%s3888_s21 + $0x13a0] sm:$0xff] %v1885_v24  ;;  %2910 = vst [vmem:[%s3888_s21 + $0x13a8] sm:$0xff] %v1886_v28  ;;  %v1911_v15 = vmul.f32 %v3862_v7, %v875_v12  ;;  %v1912_v16 = vmul.f32 %v3864_v8, %v876_v13  ;;  %v877_v17 = vld [vmem:[%s3848_s6 + $0x1480] sm:$0xff]  ;;  %v878_v18 = vld [vmem:[%s3848_s6 + $0x1488] sm:$0xff] }
 0x19e   : > { %2911 = vst [vmem:[%s3888_s21 + $0x13b0] sm:$0xff] %v1887_v29  ;;  %2912 = vst [vmem:[%s3888_s21 + $0x13b8] sm:$0xff] %v1888_v30  ;;  %v879_v19 = vld [vmem:[%s3848_s6 + $0x1490] sm:$0xff]  ;;  %v1913_v20 = vmul.f32 %v3862_v7, %v877_v17  ;;  %v1914_v21 = vmul.f32 %v3864_v8, %v878_v18  ;;  %v880_v23 = vld [vmem:[%s3848_s6 + $0x1498] sm:$0xff] }
 0x19f   : > { %2913 = vst [vmem:[%s3888_s21 + $0x13c0] sm:$0xff] %v1889_v34  ;;  %2914 = vst [vmem:[%s3888_s21 + $0x13c8] sm:$0xff] %v1890_v35  ;;  %v1915_v22 = vmul.f32 %v3862_v7, %v879_v19  ;;  %v881_v24 = vld [vmem:[%s3848_s6 + $0x14a0] sm:$0xff]  ;;  %v882_v25 = vld [vmem:[%s3848_s6 + $0x14a8] sm:$0xff]  ;;  %v1916_v26 = vmul.f32 %v3864_v8, %v880_v23 }
 0x1a0   : > { %2915 = vst [vmem:[%s3888_s21 + $0x13d0] sm:$0xff] %v1891_v36  ;;  %2916 = vst [vmem:[%s3888_s21 + $0x13d8] sm:$0xff] %v1892_v40  ;;  %v1917_v27 = vmul.f32 %v3862_v7, %v881_v24  ;;  %v1918_v28 = vmul.f32 %v3864_v8, %v882_v25  ;;  %v883_v29 = vld [vmem:[%s3848_s6 + $0x14b0] sm:$0xff]  ;;  %v884_v30 = vld [vmem:[%s3848_s6 + $0x14b8] sm:$0xff] }
 0x1a1   : > { %2917 = vst [vmem:[%s3888_s21 + $0x13e0] sm:$0xff] %v1893_v41  ;;  %2918 = vst [vmem:[%s3888_s21 + $0x13e8] sm:$0xff] %v1894_v42  ;;  %v885_v31 = vld [vmem:[%s3848_s6 + $0x14c0] sm:$0xff]  ;;  %v1919_v32 = vmul.f32 %v3862_v7, %v883_v29  ;;  %v1920_v33 = vmul.f32 %v3864_v8, %v884_v30  ;;  %v886_v35 = vld [vmem:[%s3848_s6 + $0x14c8] sm:$0xff] }
 0x1a2   : > { %2919 = vst [vmem:[%s3888_s21 + $0x13f0] sm:$0xff] %v1895_v46  ;;  %2920 = vst [vmem:[%s3888_s21 + $0x13f8] sm:$0xff] %v1896_v47  ;;  %v1921_v34 = vmul.f32 %v3862_v7, %v885_v31  ;;  %v887_v36 = vld [vmem:[%s3848_s6 + $0x14d0] sm:$0xff]  ;;  %v888_v37 = vld [vmem:[%s3848_s6 + $0x14d8] sm:$0xff]  ;;  %v1922_v38 = vmul.f32 %v3864_v8, %v886_v35 }
 0x1a3   : > { %2921 = vst [vmem:[%s3888_s21 + $0x1400] sm:$0xff] %v1897_v48  ;;  %2922 = vst [vmem:[%s3888_s21 + $0x1408] sm:$0xff] %v1898_v52  ;;  %v1923_v39 = vmul.f32 %v3862_v7, %v887_v36  ;;  %v1924_v40 = vmul.f32 %v3864_v8, %v888_v37  ;;  %v889_v41 = vld [vmem:[%s3848_s6 + $0x14e0] sm:$0xff]  ;;  %v890_v42 = vld [vmem:[%s3848_s6 + $0x14e8] sm:$0xff] }
 0x1a4   : > { %2923 = vst [vmem:[%s3888_s21 + $0x1410] sm:$0xff] %v1899_v53  ;;  %2924 = vst [vmem:[%s3888_s21 + $0x1418] sm:$0xff] %v1900_v54  ;;  %v891_v43 = vld [vmem:[%s3848_s6 + $0x14f0] sm:$0xff]  ;;  %v1925_v44 = vmul.f32 %v3862_v7, %v889_v41  ;;  %v1926_v45 = vmul.f32 %v3864_v8, %v890_v42  ;;  %v892_v47 = vld [vmem:[%s3848_s6 + $0x14f8] sm:$0xff] }
 0x1a5   : > { %2925 = vst [vmem:[%s3888_s21 + $0x1420] sm:$0xff] %v1901_v58  ;;  %2926 = vst [vmem:[%s3888_s21 + $0x1428] sm:$0xff] %v1902_v59  ;;  %v1927_v46 = vmul.f32 %v3862_v7, %v891_v43  ;;  %v893_v48 = vld [vmem:[%s3848_s6 + $0x1500] sm:$0xff]  ;;  %v894_v49 = vld [vmem:[%s3848_s6 + $0x1508] sm:$0xff]  ;;  %v1928_v50 = vmul.f32 %v3864_v8, %v892_v47 }
 0x1a6   : > { %2927 = vst [vmem:[%s3888_s21 + $0x1430] sm:$0xff] %v1903_v60  ;;  %2928 = vst [vmem:[%s3888_s21 + $0x1438] sm:$0xff] %v1904_v0  ;;  %v1929_v51 = vmul.f32 %v3862_v7, %v893_v48  ;;  %v1930_v52 = vmul.f32 %v3864_v8, %v894_v49  ;;  %v895_v53 = vld [vmem:[%s3848_s6 + $0x1510] sm:$0xff]  ;;  %v896_v54 = vld [vmem:[%s3848_s6 + $0x1518] sm:$0xff] }
 0x1a7   : > { %2929 = vst [vmem:[%s3888_s21 + $0x1440] sm:$0xff] %v1905_v1  ;;  %2930 = vst [vmem:[%s3888_s21 + $0x1448] sm:$0xff] %v1906_v2  ;;  %v897_v55 = vld [vmem:[%s3848_s6 + $0x1520] sm:$0xff]  ;;  %v1931_v56 = vmul.f32 %v3862_v7, %v895_v53  ;;  %v1932_v57 = vmul.f32 %v3864_v8, %v896_v54  ;;  %v898_v59 = vld [vmem:[%s3848_s6 + $0x1528] sm:$0xff] }
 0x1a8   : > { %2931 = vst [vmem:[%s3888_s21 + $0x1450] sm:$0xff] %v1907_v6  ;;  %2932 = vst [vmem:[%s3888_s21 + $0x1458] sm:$0xff] %v1908_v9  ;;  %v1933_v58 = vmul.f32 %v3862_v7, %v897_v55  ;;  %v899_v60 = vld [vmem:[%s3848_s6 + $0x1530] sm:$0xff]  ;;  %v900_v61 = vld [vmem:[%s3848_s6 + $0x1538] sm:$0xff]  ;;  %v1934_v62 = vmul.f32 %v3864_v8, %v898_v59 }
 0x1a9   : > { %2933 = vst [vmem:[%s3888_s21 + $0x1460] sm:$0xff] %v1909_v10  ;;  %2934 = vst [vmem:[%s3888_s21 + $0x1468] sm:$0xff] %v1910_v14  ;;  %v1935_v63 = vmul.f32 %v3862_v7, %v899_v60  ;;  %v1936_v0 = vmul.f32 %v3864_v8, %v900_v61  ;;  %v901_v1 = vld [vmem:[%s3848_s6 + $0x1540] sm:$0xff]  ;;  %v902_v2 = vld [vmem:[%s3848_s6 + $0x1548] sm:$0xff] }
 0x1aa   : > { %2935 = vst [vmem:[%s3888_s21 + $0x1470] sm:$0xff] %v1911_v15  ;;  %2936 = vst [vmem:[%s3888_s21 + $0x1478] sm:$0xff] %v1912_v16  ;;  %v903_v3 = vld [vmem:[%s3848_s6 + $0x1550] sm:$0xff]  ;;  %v1937_v4 = vmul.f32 %v3862_v7, %v901_v1  ;;  %v1938_v5 = vmul.f32 %v3864_v8, %v902_v2  ;;  %v904_v9 = vld [vmem:[%s3848_s6 + $0x1558] sm:$0xff] }
 0x1ab   : > { %2937 = vst [vmem:[%s3888_s21 + $0x1480] sm:$0xff] %v1913_v20  ;;  %2938 = vst [vmem:[%s3888_s21 + $0x1488] sm:$0xff] %v1914_v21  ;;  %v1939_v6 = vmul.f32 %v3862_v7, %v903_v3  ;;  %v905_v10 = vld [vmem:[%s3848_s6 + $0x1560] sm:$0xff]  ;;  %v906_v11 = vld [vmem:[%s3848_s6 + $0x1568] sm:$0xff]  ;;  %v1940_v12 = vmul.f32 %v3864_v8, %v904_v9 }
 0x1ac   : > { %2939 = vst [vmem:[%s3888_s21 + $0x1490] sm:$0xff] %v1915_v22  ;;  %2940 = vst [vmem:[%s3888_s21 + $0x1498] sm:$0xff] %v1916_v26  ;;  %v1941_v13 = vmul.f32 %v3862_v7, %v905_v10  ;;  %v1942_v14 = vmul.f32 %v3864_v8, %v906_v11  ;;  %v907_v15 = vld [vmem:[%s3848_s6 + $0x1570] sm:$0xff]  ;;  %v908_v16 = vld [vmem:[%s3848_s6 + $0x1578] sm:$0xff] }
 0x1ad   : > { %2941 = vst [vmem:[%s3888_s21 + $0x14a0] sm:$0xff] %v1917_v27  ;;  %2942 = vst [vmem:[%s3888_s21 + $0x14a8] sm:$0xff] %v1918_v28  ;;  %v909_v17 = vld [vmem:[%s3848_s6 + $0x1580] sm:$0xff]  ;;  %v1943_v18 = vmul.f32 %v3862_v7, %v907_v15  ;;  %v1944_v19 = vmul.f32 %v3864_v8, %v908_v16  ;;  %v910_v21 = vld [vmem:[%s3848_s6 + $0x1588] sm:$0xff] }
 0x1ae   : > { %2943 = vst [vmem:[%s3888_s21 + $0x14b0] sm:$0xff] %v1919_v32  ;;  %2944 = vst [vmem:[%s3888_s21 + $0x14b8] sm:$0xff] %v1920_v33  ;;  %v1945_v20 = vmul.f32 %v3862_v7, %v909_v17  ;;  %v911_v22 = vld [vmem:[%s3848_s6 + $0x1590] sm:$0xff]  ;;  %v912_v23 = vld [vmem:[%s3848_s6 + $0x1598] sm:$0xff]  ;;  %v1946_v24 = vmul.f32 %v3864_v8, %v910_v21 }
 0x1af   : > { %2945 = vst [vmem:[%s3888_s21 + $0x14c0] sm:$0xff] %v1921_v34  ;;  %2946 = vst [vmem:[%s3888_s21 + $0x14c8] sm:$0xff] %v1922_v38  ;;  %v1947_v25 = vmul.f32 %v3862_v7, %v911_v22  ;;  %v1948_v26 = vmul.f32 %v3864_v8, %v912_v23  ;;  %v913_v27 = vld [vmem:[%s3848_s6 + $0x15a0] sm:$0xff]  ;;  %v914_v28 = vld [vmem:[%s3848_s6 + $0x15a8] sm:$0xff] }
 0x1b0   : > { %2947 = vst [vmem:[%s3888_s21 + $0x14d0] sm:$0xff] %v1923_v39  ;;  %2948 = vst [vmem:[%s3888_s21 + $0x14d8] sm:$0xff] %v1924_v40  ;;  %v915_v29 = vld [vmem:[%s3848_s6 + $0x15b0] sm:$0xff]  ;;  %v1949_v30 = vmul.f32 %v3862_v7, %v913_v27  ;;  %v1950_v31 = vmul.f32 %v3864_v8, %v914_v28  ;;  %v916_v33 = vld [vmem:[%s3848_s6 + $0x15b8] sm:$0xff] }
 0x1b1   : > { %2949 = vst [vmem:[%s3888_s21 + $0x14e0] sm:$0xff] %v1925_v44  ;;  %2950 = vst [vmem:[%s3888_s21 + $0x14e8] sm:$0xff] %v1926_v45  ;;  %v1951_v32 = vmul.f32 %v3862_v7, %v915_v29  ;;  %v917_v34 = vld [vmem:[%s3848_s6 + $0x15c0] sm:$0xff]  ;;  %v918_v35 = vld [vmem:[%s3848_s6 + $0x15c8] sm:$0xff]  ;;  %v1952_v36 = vmul.f32 %v3864_v8, %v916_v33 }
 0x1b2   : > { %2951 = vst [vmem:[%s3888_s21 + $0x14f0] sm:$0xff] %v1927_v46  ;;  %2952 = vst [vmem:[%s3888_s21 + $0x14f8] sm:$0xff] %v1928_v50  ;;  %v1953_v37 = vmul.f32 %v3862_v7, %v917_v34  ;;  %v1954_v38 = vmul.f32 %v3864_v8, %v918_v35  ;;  %v919_v39 = vld [vmem:[%s3848_s6 + $0x15d0] sm:$0xff]  ;;  %v920_v40 = vld [vmem:[%s3848_s6 + $0x15d8] sm:$0xff] }
 0x1b3   : > { %2953 = vst [vmem:[%s3888_s21 + $0x1500] sm:$0xff] %v1929_v51  ;;  %2954 = vst [vmem:[%s3888_s21 + $0x1508] sm:$0xff] %v1930_v52  ;;  %v921_v41 = vld [vmem:[%s3848_s6 + $0x15e0] sm:$0xff]  ;;  %v1955_v42 = vmul.f32 %v3862_v7, %v919_v39  ;;  %v1956_v43 = vmul.f32 %v3864_v8, %v920_v40  ;;  %v922_v45 = vld [vmem:[%s3848_s6 + $0x15e8] sm:$0xff] }
 0x1b4   : > { %2955 = vst [vmem:[%s3888_s21 + $0x1510] sm:$0xff] %v1931_v56  ;;  %2956 = vst [vmem:[%s3888_s21 + $0x1518] sm:$0xff] %v1932_v57  ;;  %v1957_v44 = vmul.f32 %v3862_v7, %v921_v41  ;;  %v923_v46 = vld [vmem:[%s3848_s6 + $0x15f0] sm:$0xff]  ;;  %v924_v47 = vld [vmem:[%s3848_s6 + $0x15f8] sm:$0xff]  ;;  %v1958_v48 = vmul.f32 %v3864_v8, %v922_v45 }
 0x1b5   : > { %2957 = vst [vmem:[%s3888_s21 + $0x1520] sm:$0xff] %v1933_v58  ;;  %2958 = vst [vmem:[%s3888_s21 + $0x1528] sm:$0xff] %v1934_v62  ;;  %v1959_v49 = vmul.f32 %v3862_v7, %v923_v46  ;;  %v1960_v50 = vmul.f32 %v3864_v8, %v924_v47  ;;  %v925_v51 = vld [vmem:[%s3848_s6 + $0x1600] sm:$0xff]  ;;  %v926_v52 = vld [vmem:[%s3848_s6 + $0x1608] sm:$0xff] }
 0x1b6   : > { %2959 = vst [vmem:[%s3888_s21 + $0x1530] sm:$0xff] %v1935_v63  ;;  %2960 = vst [vmem:[%s3888_s21 + $0x1538] sm:$0xff] %v1936_v0  ;;  %v927_v53 = vld [vmem:[%s3848_s6 + $0x1610] sm:$0xff]  ;;  %v1961_v54 = vmul.f32 %v3862_v7, %v925_v51  ;;  %v1962_v55 = vmul.f32 %v3864_v8, %v926_v52  ;;  %v928_v57 = vld [vmem:[%s3848_s6 + $0x1618] sm:$0xff] }
 0x1b7   : > { %2961 = vst [vmem:[%s3888_s21 + $0x1540] sm:$0xff] %v1937_v4  ;;  %2962 = vst [vmem:[%s3888_s21 + $0x1548] sm:$0xff] %v1938_v5  ;;  %v1963_v56 = vmul.f32 %v3862_v7, %v927_v53  ;;  %v929_v58 = vld [vmem:[%s3848_s6 + $0x1620] sm:$0xff]  ;;  %v930_v59 = vld [vmem:[%s3848_s6 + $0x1628] sm:$0xff]  ;;  %v1964_v60 = vmul.f32 %v3864_v8, %v928_v57 }
 0x1b8   : > { %2963 = vst [vmem:[%s3888_s21 + $0x1550] sm:$0xff] %v1939_v6  ;;  %2964 = vst [vmem:[%s3888_s21 + $0x1558] sm:$0xff] %v1940_v12  ;;  %v1965_v61 = vmul.f32 %v3862_v7, %v929_v58  ;;  %v1966_v62 = vmul.f32 %v3864_v8, %v930_v59  ;;  %v931_v63 = vld [vmem:[%s3848_s6 + $0x1630] sm:$0xff]  ;;  %v932_v0 = vld [vmem:[%s3848_s6 + $0x1638] sm:$0xff] }
 0x1b9   : > { %2965 = vst [vmem:[%s3888_s21 + $0x1560] sm:$0xff] %v1941_v13  ;;  %2966 = vst [vmem:[%s3888_s21 + $0x1568] sm:$0xff] %v1942_v14  ;;  %v933_v1 = vld [vmem:[%s3848_s6 + $0x1640] sm:$0xff]  ;;  %v1967_v2 = vmul.f32 %v3862_v7, %v931_v63  ;;  %v1968_v3 = vmul.f32 %v3864_v8, %v932_v0  ;;  %v934_v5 = vld [vmem:[%s3848_s6 + $0x1648] sm:$0xff] }
 0x1ba   : > { %2967 = vst [vmem:[%s3888_s21 + $0x1570] sm:$0xff] %v1943_v18  ;;  %2968 = vst [vmem:[%s3888_s21 + $0x1578] sm:$0xff] %v1944_v19  ;;  %v1969_v4 = vmul.f32 %v3862_v7, %v933_v1  ;;  %v935_v6 = vld [vmem:[%s3848_s6 + $0x1650] sm:$0xff]  ;;  %v936_v9 = vld [vmem:[%s3848_s6 + $0x1658] sm:$0xff]  ;;  %v1970_v10 = vmul.f32 %v3864_v8, %v934_v5 }
 0x1bb   : > { %2969 = vst [vmem:[%s3888_s21 + $0x1580] sm:$0xff] %v1945_v20  ;;  %2970 = vst [vmem:[%s3888_s21 + $0x1588] sm:$0xff] %v1946_v24  ;;  %v1971_v11 = vmul.f32 %v3862_v7, %v935_v6  ;;  %v1972_v12 = vmul.f32 %v3864_v8, %v936_v9  ;;  %v937_v13 = vld [vmem:[%s3848_s6 + $0x1660] sm:$0xff]  ;;  %v938_v14 = vld [vmem:[%s3848_s6 + $0x1668] sm:$0xff] }
 0x1bc   : > { %2971 = vst [vmem:[%s3888_s21 + $0x1590] sm:$0xff] %v1947_v25  ;;  %2972 = vst [vmem:[%s3888_s21 + $0x1598] sm:$0xff] %v1948_v26  ;;  %v939_v15 = vld [vmem:[%s3848_s6 + $0x1670] sm:$0xff]  ;;  %v1973_v16 = vmul.f32 %v3862_v7, %v937_v13  ;;  %v1974_v17 = vmul.f32 %v3864_v8, %v938_v14  ;;  %v940_v19 = vld [vmem:[%s3848_s6 + $0x1678] sm:$0xff] }
 0x1bd   : > { %2973 = vst [vmem:[%s3888_s21 + $0x15a0] sm:$0xff] %v1949_v30  ;;  %2974 = vst [vmem:[%s3888_s21 + $0x15a8] sm:$0xff] %v1950_v31  ;;  %v1975_v18 = vmul.f32 %v3862_v7, %v939_v15  ;;  %v941_v20 = vld [vmem:[%s3848_s6 + $0x1680] sm:$0xff]  ;;  %v942_v21 = vld [vmem:[%s3848_s6 + $0x1688] sm:$0xff]  ;;  %v1976_v22 = vmul.f32 %v3864_v8, %v940_v19 }
 0x1be   : > { %2975 = vst [vmem:[%s3888_s21 + $0x15b0] sm:$0xff] %v1951_v32  ;;  %2976 = vst [vmem:[%s3888_s21 + $0x15b8] sm:$0xff] %v1952_v36  ;;  %v1977_v23 = vmul.f32 %v3862_v7, %v941_v20  ;;  %v1978_v24 = vmul.f32 %v3864_v8, %v942_v21  ;;  %v943_v25 = vld [vmem:[%s3848_s6 + $0x1690] sm:$0xff]  ;;  %v944_v26 = vld [vmem:[%s3848_s6 + $0x1698] sm:$0xff] }
 0x1bf   : > { %2977 = vst [vmem:[%s3888_s21 + $0x15c0] sm:$0xff] %v1953_v37  ;;  %2978 = vst [vmem:[%s3888_s21 + $0x15c8] sm:$0xff] %v1954_v38  ;;  %v945_v27 = vld [vmem:[%s3848_s6 + $0x16a0] sm:$0xff]  ;;  %v1979_v28 = vmul.f32 %v3862_v7, %v943_v25  ;;  %v1980_v29 = vmul.f32 %v3864_v8, %v944_v26  ;;  %v946_v31 = vld [vmem:[%s3848_s6 + $0x16a8] sm:$0xff] }
 0x1c0   : > { %2979 = vst [vmem:[%s3888_s21 + $0x15d0] sm:$0xff] %v1955_v42  ;;  %2980 = vst [vmem:[%s3888_s21 + $0x15d8] sm:$0xff] %v1956_v43  ;;  %v1981_v30 = vmul.f32 %v3862_v7, %v945_v27  ;;  %v947_v32 = vld [vmem:[%s3848_s6 + $0x16b0] sm:$0xff]  ;;  %v948_v33 = vld [vmem:[%s3848_s6 + $0x16b8] sm:$0xff]  ;;  %v1982_v34 = vmul.f32 %v3864_v8, %v946_v31 }
 0x1c1   : > { %2981 = vst [vmem:[%s3888_s21 + $0x15e0] sm:$0xff] %v1957_v44  ;;  %2982 = vst [vmem:[%s3888_s21 + $0x15e8] sm:$0xff] %v1958_v48  ;;  %v1983_v35 = vmul.f32 %v3862_v7, %v947_v32  ;;  %v1984_v36 = vmul.f32 %v3864_v8, %v948_v33  ;;  %v949_v37 = vld [vmem:[%s3848_s6 + $0x16c0] sm:$0xff]  ;;  %v950_v38 = vld [vmem:[%s3848_s6 + $0x16c8] sm:$0xff] }
 0x1c2   : > { %2983 = vst [vmem:[%s3888_s21 + $0x15f0] sm:$0xff] %v1959_v49  ;;  %2984 = vst [vmem:[%s3888_s21 + $0x15f8] sm:$0xff] %v1960_v50  ;;  %v951_v39 = vld [vmem:[%s3848_s6 + $0x16d0] sm:$0xff]  ;;  %v1985_v40 = vmul.f32 %v3862_v7, %v949_v37  ;;  %v1986_v41 = vmul.f32 %v3864_v8, %v950_v38  ;;  %v952_v43 = vld [vmem:[%s3848_s6 + $0x16d8] sm:$0xff] }
 0x1c3   : > { %2985 = vst [vmem:[%s3888_s21 + $0x1600] sm:$0xff] %v1961_v54  ;;  %2986 = vst [vmem:[%s3888_s21 + $0x1608] sm:$0xff] %v1962_v55  ;;  %v1987_v42 = vmul.f32 %v3862_v7, %v951_v39  ;;  %v953_v44 = vld [vmem:[%s3848_s6 + $0x16e0] sm:$0xff]  ;;  %v954_v45 = vld [vmem:[%s3848_s6 + $0x16e8] sm:$0xff]  ;;  %v1988_v46 = vmul.f32 %v3864_v8, %v952_v43 }
 0x1c4   : > { %2987 = vst [vmem:[%s3888_s21 + $0x1610] sm:$0xff] %v1963_v56  ;;  %2988 = vst [vmem:[%s3888_s21 + $0x1618] sm:$0xff] %v1964_v60  ;;  %v1989_v47 = vmul.f32 %v3862_v7, %v953_v44  ;;  %v1990_v48 = vmul.f32 %v3864_v8, %v954_v45  ;;  %v955_v49 = vld [vmem:[%s3848_s6 + $0x16f0] sm:$0xff]  ;;  %v956_v50 = vld [vmem:[%s3848_s6 + $0x16f8] sm:$0xff] }
 0x1c5   : > { %2989 = vst [vmem:[%s3888_s21 + $0x1620] sm:$0xff] %v1965_v61  ;;  %2990 = vst [vmem:[%s3888_s21 + $0x1628] sm:$0xff] %v1966_v62  ;;  %v957_v51 = vld [vmem:[%s3848_s6 + $0x1700] sm:$0xff]  ;;  %v1991_v52 = vmul.f32 %v3862_v7, %v955_v49  ;;  %v1992_v53 = vmul.f32 %v3864_v8, %v956_v50  ;;  %v958_v55 = vld [vmem:[%s3848_s6 + $0x1708] sm:$0xff] }
 0x1c6   : > { %2991 = vst [vmem:[%s3888_s21 + $0x1630] sm:$0xff] %v1967_v2  ;;  %2992 = vst [vmem:[%s3888_s21 + $0x1638] sm:$0xff] %v1968_v3  ;;  %v1993_v54 = vmul.f32 %v3862_v7, %v957_v51  ;;  %v959_v56 = vld [vmem:[%s3848_s6 + $0x1710] sm:$0xff]  ;;  %v960_v57 = vld [vmem:[%s3848_s6 + $0x1718] sm:$0xff]  ;;  %v1994_v58 = vmul.f32 %v3864_v8, %v958_v55 }
 0x1c7   : > { %2993 = vst [vmem:[%s3888_s21 + $0x1640] sm:$0xff] %v1969_v4  ;;  %2994 = vst [vmem:[%s3888_s21 + $0x1648] sm:$0xff] %v1970_v10  ;;  %v1995_v59 = vmul.f32 %v3862_v7, %v959_v56  ;;  %v1996_v60 = vmul.f32 %v3864_v8, %v960_v57  ;;  %v961_v61 = vld [vmem:[%s3848_s6 + $0x1720] sm:$0xff]  ;;  %v962_v62 = vld [vmem:[%s3848_s6 + $0x1728] sm:$0xff] }
 0x1c8   : > { %2995 = vst [vmem:[%s3888_s21 + $0x1650] sm:$0xff] %v1971_v11  ;;  %2996 = vst [vmem:[%s3888_s21 + $0x1658] sm:$0xff] %v1972_v12  ;;  %v963_v63 = vld [vmem:[%s3848_s6 + $0x1730] sm:$0xff]  ;;  %v1997_v0 = vmul.f32 %v3862_v7, %v961_v61  ;;  %v1998_v1 = vmul.f32 %v3864_v8, %v962_v62  ;;  %v964_v3 = vld [vmem:[%s3848_s6 + $0x1738] sm:$0xff] }
 0x1c9   : > { %2997 = vst [vmem:[%s3888_s21 + $0x1660] sm:$0xff] %v1973_v16  ;;  %2998 = vst [vmem:[%s3888_s21 + $0x1668] sm:$0xff] %v1974_v17  ;;  %v1999_v2 = vmul.f32 %v3862_v7, %v963_v63  ;;  %v965_v4 = vld [vmem:[%s3848_s6 + $0x1740] sm:$0xff]  ;;  %v966_v5 = vld [vmem:[%s3848_s6 + $0x1748] sm:$0xff]  ;;  %v2000_v6 = vmul.f32 %v3864_v8, %v964_v3 }
 0x1ca   : > { %2999 = vst [vmem:[%s3888_s21 + $0x1670] sm:$0xff] %v1975_v18  ;;  %3000 = vst [vmem:[%s3888_s21 + $0x1678] sm:$0xff] %v1976_v22  ;;  %v2001_v9 = vmul.f32 %v3862_v7, %v965_v4  ;;  %v2002_v10 = vmul.f32 %v3864_v8, %v966_v5  ;;  %v967_v11 = vld [vmem:[%s3848_s6 + $0x1750] sm:$0xff]  ;;  %v968_v12 = vld [vmem:[%s3848_s6 + $0x1758] sm:$0xff] }
 0x1cb   : > { %3001 = vst [vmem:[%s3888_s21 + $0x1680] sm:$0xff] %v1977_v23  ;;  %3002 = vst [vmem:[%s3888_s21 + $0x1688] sm:$0xff] %v1978_v24  ;;  %v969_v13 = vld [vmem:[%s3848_s6 + $0x1760] sm:$0xff]  ;;  %v2003_v14 = vmul.f32 %v3862_v7, %v967_v11  ;;  %v2004_v15 = vmul.f32 %v3864_v8, %v968_v12  ;;  %v970_v17 = vld [vmem:[%s3848_s6 + $0x1768] sm:$0xff] }
 0x1cc   : > { %3003 = vst [vmem:[%s3888_s21 + $0x1690] sm:$0xff] %v1979_v28  ;;  %3004 = vst [vmem:[%s3888_s21 + $0x1698] sm:$0xff] %v1980_v29  ;;  %v2005_v16 = vmul.f32 %v3862_v7, %v969_v13  ;;  %v971_v18 = vld [vmem:[%s3848_s6 + $0x1770] sm:$0xff]  ;;  %v972_v19 = vld [vmem:[%s3848_s6 + $0x1778] sm:$0xff]  ;;  %v2006_v20 = vmul.f32 %v3864_v8, %v970_v17 }
 0x1cd   : > { %3005 = vst [vmem:[%s3888_s21 + $0x16a0] sm:$0xff] %v1981_v30  ;;  %3006 = vst [vmem:[%s3888_s21 + $0x16a8] sm:$0xff] %v1982_v34  ;;  %v2007_v21 = vmul.f32 %v3862_v7, %v971_v18  ;;  %v2008_v22 = vmul.f32 %v3864_v8, %v972_v19  ;;  %v973_v23 = vld [vmem:[%s3848_s6 + $0x1780] sm:$0xff]  ;;  %v974_v24 = vld [vmem:[%s3848_s6 + $0x1788] sm:$0xff] }
 0x1ce   : > { %3007 = vst [vmem:[%s3888_s21 + $0x16b0] sm:$0xff] %v1983_v35  ;;  %3008 = vst [vmem:[%s3888_s21 + $0x16b8] sm:$0xff] %v1984_v36  ;;  %v975_v25 = vld [vmem:[%s3848_s6 + $0x1790] sm:$0xff]  ;;  %v2009_v26 = vmul.f32 %v3862_v7, %v973_v23  ;;  %v2010_v27 = vmul.f32 %v3864_v8, %v974_v24  ;;  %v976_v29 = vld [vmem:[%s3848_s6 + $0x1798] sm:$0xff] }
 0x1cf   : > { %3009 = vst [vmem:[%s3888_s21 + $0x16c0] sm:$0xff] %v1985_v40  ;;  %3010 = vst [vmem:[%s3888_s21 + $0x16c8] sm:$0xff] %v1986_v41  ;;  %v2011_v28 = vmul.f32 %v3862_v7, %v975_v25  ;;  %v977_v30 = vld [vmem:[%s3848_s6 + $0x17a0] sm:$0xff]  ;;  %v978_v31 = vld [vmem:[%s3848_s6 + $0x17a8] sm:$0xff]  ;;  %v2012_v32 = vmul.f32 %v3864_v8, %v976_v29 }
 0x1d0   : > { %3011 = vst [vmem:[%s3888_s21 + $0x16d0] sm:$0xff] %v1987_v42  ;;  %3012 = vst [vmem:[%s3888_s21 + $0x16d8] sm:$0xff] %v1988_v46  ;;  %v2013_v33 = vmul.f32 %v3862_v7, %v977_v30  ;;  %v2014_v34 = vmul.f32 %v3864_v8, %v978_v31  ;;  %v979_v35 = vld [vmem:[%s3848_s6 + $0x17b0] sm:$0xff]  ;;  %v980_v36 = vld [vmem:[%s3848_s6 + $0x17b8] sm:$0xff] }
 0x1d1   : > { %3013 = vst [vmem:[%s3888_s21 + $0x16e0] sm:$0xff] %v1989_v47  ;;  %3014 = vst [vmem:[%s3888_s21 + $0x16e8] sm:$0xff] %v1990_v48  ;;  %v981_v37 = vld [vmem:[%s3848_s6 + $0x17c0] sm:$0xff]  ;;  %v2015_v38 = vmul.f32 %v3862_v7, %v979_v35  ;;  %v2016_v39 = vmul.f32 %v3864_v8, %v980_v36  ;;  %v982_v41 = vld [vmem:[%s3848_s6 + $0x17c8] sm:$0xff] }
 0x1d2   : > { %3015 = vst [vmem:[%s3888_s21 + $0x16f0] sm:$0xff] %v1991_v52  ;;  %3016 = vst [vmem:[%s3888_s21 + $0x16f8] sm:$0xff] %v1992_v53  ;;  %v2017_v40 = vmul.f32 %v3862_v7, %v981_v37  ;;  %v983_v42 = vld [vmem:[%s3848_s6 + $0x17d0] sm:$0xff]  ;;  %v984_v43 = vld [vmem:[%s3848_s6 + $0x17d8] sm:$0xff]  ;;  %v2018_v44 = vmul.f32 %v3864_v8, %v982_v41 }
 0x1d3   : > { %3017 = vst [vmem:[%s3888_s21 + $0x1700] sm:$0xff] %v1993_v54  ;;  %3018 = vst [vmem:[%s3888_s21 + $0x1708] sm:$0xff] %v1994_v58  ;;  %v2019_v45 = vmul.f32 %v3862_v7, %v983_v42  ;;  %v2020_v46 = vmul.f32 %v3864_v8, %v984_v43  ;;  %v985_v47 = vld [vmem:[%s3848_s6 + $0x17e0] sm:$0xff]  ;;  %v986_v48 = vld [vmem:[%s3848_s6 + $0x17e8] sm:$0xff] }
 0x1d4   : > { %3019 = vst [vmem:[%s3888_s21 + $0x1710] sm:$0xff] %v1995_v59  ;;  %3020 = vst [vmem:[%s3888_s21 + $0x1718] sm:$0xff] %v1996_v60  ;;  %v987_v49 = vld [vmem:[%s3848_s6 + $0x17f0] sm:$0xff]  ;;  %v2021_v50 = vmul.f32 %v3862_v7, %v985_v47  ;;  %v2022_v51 = vmul.f32 %v3864_v8, %v986_v48  ;;  %v988_v53 = vld [vmem:[%s3848_s6 + $0x17f8] sm:$0xff] }
 0x1d5   : > { %3021 = vst [vmem:[%s3888_s21 + $0x1720] sm:$0xff] %v1997_v0  ;;  %3022 = vst [vmem:[%s3888_s21 + $0x1728] sm:$0xff] %v1998_v1  ;;  %v2023_v52 = vmul.f32 %v3862_v7, %v987_v49  ;;  %v989_v54 = vld [vmem:[%s3848_s6 + $0x1800] sm:$0xff]  ;;  %v990_v55 = vld [vmem:[%s3848_s6 + $0x1808] sm:$0xff]  ;;  %v2024_v56 = vmul.f32 %v3864_v8, %v988_v53 }
 0x1d6   : > { %3023 = vst [vmem:[%s3888_s21 + $0x1730] sm:$0xff] %v1999_v2  ;;  %3024 = vst [vmem:[%s3888_s21 + $0x1738] sm:$0xff] %v2000_v6  ;;  %v2025_v57 = vmul.f32 %v3862_v7, %v989_v54  ;;  %v2026_v58 = vmul.f32 %v3864_v8, %v990_v55  ;;  %v991_v59 = vld [vmem:[%s3848_s6 + $0x1810] sm:$0xff]  ;;  %v992_v60 = vld [vmem:[%s3848_s6 + $0x1818] sm:$0xff] }
 0x1d7   : > { %3025 = vst [vmem:[%s3888_s21 + $0x1740] sm:$0xff] %v2001_v9  ;;  %3026 = vst [vmem:[%s3888_s21 + $0x1748] sm:$0xff] %v2002_v10  ;;  %v993_v61 = vld [vmem:[%s3848_s6 + $0x1820] sm:$0xff]  ;;  %v2027_v62 = vmul.f32 %v3862_v7, %v991_v59  ;;  %v2028_v63 = vmul.f32 %v3864_v8, %v992_v60  ;;  %v994_v1 = vld [vmem:[%s3848_s6 + $0x1828] sm:$0xff] }
 0x1d8   : > { %3027 = vst [vmem:[%s3888_s21 + $0x1750] sm:$0xff] %v2003_v14  ;;  %3028 = vst [vmem:[%s3888_s21 + $0x1758] sm:$0xff] %v2004_v15  ;;  %v2029_v0 = vmul.f32 %v3862_v7, %v993_v61  ;;  %v995_v2 = vld [vmem:[%s3848_s6 + $0x1830] sm:$0xff]  ;;  %v996_v3 = vld [vmem:[%s3848_s6 + $0x1838] sm:$0xff]  ;;  %v2030_v4 = vmul.f32 %v3864_v8, %v994_v1 }
 0x1d9   : > { %3029 = vst [vmem:[%s3888_s21 + $0x1760] sm:$0xff] %v2005_v16  ;;  %3030 = vst [vmem:[%s3888_s21 + $0x1768] sm:$0xff] %v2006_v20  ;;  %v2031_v5 = vmul.f32 %v3862_v7, %v995_v2  ;;  %v2032_v6 = vmul.f32 %v3864_v8, %v996_v3  ;;  %v997_v9 = vld [vmem:[%s3848_s6 + $0x1840] sm:$0xff]  ;;  %v998_v10 = vld [vmem:[%s3848_s6 + $0x1848] sm:$0xff] }
 0x1da   : > { %3031 = vst [vmem:[%s3888_s21 + $0x1770] sm:$0xff] %v2007_v21  ;;  %3032 = vst [vmem:[%s3888_s21 + $0x1778] sm:$0xff] %v2008_v22  ;;  %v999_v11 = vld [vmem:[%s3848_s6 + $0x1850] sm:$0xff]  ;;  %v2033_v12 = vmul.f32 %v3862_v7, %v997_v9  ;;  %v2034_v13 = vmul.f32 %v3864_v8, %v998_v10  ;;  %v1000_v15 = vld [vmem:[%s3848_s6 + $0x1858] sm:$0xff] }
 0x1db   : > { %3033 = vst [vmem:[%s3888_s21 + $0x1780] sm:$0xff] %v2009_v26  ;;  %3034 = vst [vmem:[%s3888_s21 + $0x1788] sm:$0xff] %v2010_v27  ;;  %v2035_v14 = vmul.f32 %v3862_v7, %v999_v11  ;;  %v1001_v16 = vld [vmem:[%s3848_s6 + $0x1860] sm:$0xff]  ;;  %v1002_v17 = vld [vmem:[%s3848_s6 + $0x1868] sm:$0xff]  ;;  %v2036_v18 = vmul.f32 %v3864_v8, %v1000_v15 }
 0x1dc   : > { %3035 = vst [vmem:[%s3888_s21 + $0x1790] sm:$0xff] %v2011_v28  ;;  %3036 = vst [vmem:[%s3888_s21 + $0x1798] sm:$0xff] %v2012_v32  ;;  %v2037_v19 = vmul.f32 %v3862_v7, %v1001_v16  ;;  %v2038_v20 = vmul.f32 %v3864_v8, %v1002_v17  ;;  %v1003_v21 = vld [vmem:[%s3848_s6 + $0x1870] sm:$0xff]  ;;  %v1004_v22 = vld [vmem:[%s3848_s6 + $0x1878] sm:$0xff] }
 0x1dd   : > { %3037 = vst [vmem:[%s3888_s21 + $0x17a0] sm:$0xff] %v2013_v33  ;;  %3038 = vst [vmem:[%s3888_s21 + $0x17a8] sm:$0xff] %v2014_v34  ;;  %v1005_v23 = vld [vmem:[%s3848_s6 + $0x1880] sm:$0xff]  ;;  %v2039_v24 = vmul.f32 %v3862_v7, %v1003_v21  ;;  %v2040_v25 = vmul.f32 %v3864_v8, %v1004_v22  ;;  %v1006_v27 = vld [vmem:[%s3848_s6 + $0x1888] sm:$0xff] }
 0x1de   : > { %3039 = vst [vmem:[%s3888_s21 + $0x17b0] sm:$0xff] %v2015_v38  ;;  %3040 = vst [vmem:[%s3888_s21 + $0x17b8] sm:$0xff] %v2016_v39  ;;  %v2041_v26 = vmul.f32 %v3862_v7, %v1005_v23  ;;  %v1007_v28 = vld [vmem:[%s3848_s6 + $0x1890] sm:$0xff]  ;;  %v1008_v29 = vld [vmem:[%s3848_s6 + $0x1898] sm:$0xff]  ;;  %v2042_v30 = vmul.f32 %v3864_v8, %v1006_v27 }
 0x1df   : > { %3041 = vst [vmem:[%s3888_s21 + $0x17c0] sm:$0xff] %v2017_v40  ;;  %3042 = vst [vmem:[%s3888_s21 + $0x17c8] sm:$0xff] %v2018_v44  ;;  %v2043_v31 = vmul.f32 %v3862_v7, %v1007_v28  ;;  %v2044_v32 = vmul.f32 %v3864_v8, %v1008_v29  ;;  %v1009_v33 = vld [vmem:[%s3848_s6 + $0x18a0] sm:$0xff]  ;;  %v1010_v34 = vld [vmem:[%s3848_s6 + $0x18a8] sm:$0xff] }
 0x1e0   : > { %3043 = vst [vmem:[%s3888_s21 + $0x17d0] sm:$0xff] %v2019_v45  ;;  %3044 = vst [vmem:[%s3888_s21 + $0x17d8] sm:$0xff] %v2020_v46  ;;  %v1011_v35 = vld [vmem:[%s3848_s6 + $0x18b0] sm:$0xff]  ;;  %v2045_v36 = vmul.f32 %v3862_v7, %v1009_v33  ;;  %v2046_v37 = vmul.f32 %v3864_v8, %v1010_v34  ;;  %v1012_v39 = vld [vmem:[%s3848_s6 + $0x18b8] sm:$0xff] }
 0x1e1   : > { %3045 = vst [vmem:[%s3888_s21 + $0x17e0] sm:$0xff] %v2021_v50  ;;  %3046 = vst [vmem:[%s3888_s21 + $0x17e8] sm:$0xff] %v2022_v51  ;;  %v2047_v38 = vmul.f32 %v3862_v7, %v1011_v35  ;;  %v1013_v40 = vld [vmem:[%s3848_s6 + $0x18c0] sm:$0xff]  ;;  %v1014_v41 = vld [vmem:[%s3848_s6 + $0x18c8] sm:$0xff]  ;;  %v2048_v42 = vmul.f32 %v3864_v8, %v1012_v39 }
 0x1e2   : > { %3047 = vst [vmem:[%s3888_s21 + $0x17f0] sm:$0xff] %v2023_v52  ;;  %3048 = vst [vmem:[%s3888_s21 + $0x17f8] sm:$0xff] %v2024_v56  ;;  %v2049_v43 = vmul.f32 %v3862_v7, %v1013_v40  ;;  %v2050_v44 = vmul.f32 %v3864_v8, %v1014_v41  ;;  %v1015_v45 = vld [vmem:[%s3848_s6 + $0x18d0] sm:$0xff]  ;;  %v1016_v46 = vld [vmem:[%s3848_s6 + $0x18d8] sm:$0xff] }
 0x1e3   : > { %3049 = vst [vmem:[%s3888_s21 + $0x1800] sm:$0xff] %v2025_v57  ;;  %3050 = vst [vmem:[%s3888_s21 + $0x1808] sm:$0xff] %v2026_v58  ;;  %v1017_v47 = vld [vmem:[%s3848_s6 + $0x18e0] sm:$0xff]  ;;  %v2051_v48 = vmul.f32 %v3862_v7, %v1015_v45  ;;  %v2052_v49 = vmul.f32 %v3864_v8, %v1016_v46  ;;  %v1018_v51 = vld [vmem:[%s3848_s6 + $0x18e8] sm:$0xff] }
 0x1e4   : > { %3051 = vst [vmem:[%s3888_s21 + $0x1810] sm:$0xff] %v2027_v62  ;;  %3052 = vst [vmem:[%s3888_s21 + $0x1818] sm:$0xff] %v2028_v63  ;;  %v2053_v50 = vmul.f32 %v3862_v7, %v1017_v47  ;;  %v1019_v52 = vld [vmem:[%s3848_s6 + $0x18f0] sm:$0xff]  ;;  %v1020_v53 = vld [vmem:[%s3848_s6 + $0x18f8] sm:$0xff]  ;;  %v2054_v54 = vmul.f32 %v3864_v8, %v1018_v51 }
 0x1e5   : > { %3053 = vst [vmem:[%s3888_s21 + $0x1820] sm:$0xff] %v2029_v0  ;;  %3054 = vst [vmem:[%s3888_s21 + $0x1828] sm:$0xff] %v2030_v4  ;;  %v2055_v55 = vmul.f32 %v3862_v7, %v1019_v52  ;;  %v2056_v56 = vmul.f32 %v3864_v8, %v1020_v53  ;;  %v1021_v57 = vld [vmem:[%s3848_s6 + $0x1900] sm:$0xff]  ;;  %v1022_v58 = vld [vmem:[%s3848_s6 + $0x1908] sm:$0xff] }
 0x1e6   : > { %3055 = vst [vmem:[%s3888_s21 + $0x1830] sm:$0xff] %v2031_v5  ;;  %3056 = vst [vmem:[%s3888_s21 + $0x1838] sm:$0xff] %v2032_v6  ;;  %v1023_v59 = vld [vmem:[%s3848_s6 + $0x1910] sm:$0xff]  ;;  %v2057_v60 = vmul.f32 %v3862_v7, %v1021_v57  ;;  %v2058_v61 = vmul.f32 %v3864_v8, %v1022_v58  ;;  %v1024_v63 = vld [vmem:[%s3848_s6 + $0x1918] sm:$0xff] }
 0x1e7   : > { %3057 = vst [vmem:[%s3888_s21 + $0x1840] sm:$0xff] %v2033_v12  ;;  %3058 = vst [vmem:[%s3888_s21 + $0x1848] sm:$0xff] %v2034_v13  ;;  %v2059_v62 = vmul.f32 %v3862_v7, %v1023_v59  ;;  %v1025_v0 = vld [vmem:[%s3848_s6 + $0x1920] sm:$0xff]  ;;  %v1026_v1 = vld [vmem:[%s3848_s6 + $0x1928] sm:$0xff]  ;;  %v2060_v2 = vmul.f32 %v3864_v8, %v1024_v63 }
 0x1e8   : > { %3059 = vst [vmem:[%s3888_s21 + $0x1850] sm:$0xff] %v2035_v14  ;;  %3060 = vst [vmem:[%s3888_s21 + $0x1858] sm:$0xff] %v2036_v18  ;;  %v2061_v3 = vmul.f32 %v3862_v7, %v1025_v0  ;;  %v2062_v4 = vmul.f32 %v3864_v8, %v1026_v1  ;;  %v1027_v5 = vld [vmem:[%s3848_s6 + $0x1930] sm:$0xff]  ;;  %v1028_v6 = vld [vmem:[%s3848_s6 + $0x1938] sm:$0xff] }
 0x1e9   : > { %3061 = vst [vmem:[%s3888_s21 + $0x1860] sm:$0xff] %v2037_v19  ;;  %3062 = vst [vmem:[%s3888_s21 + $0x1868] sm:$0xff] %v2038_v20  ;;  %v1029_v9 = vld [vmem:[%s3848_s6 + $0x1940] sm:$0xff]  ;;  %v2063_v10 = vmul.f32 %v3862_v7, %v1027_v5  ;;  %v2064_v11 = vmul.f32 %v3864_v8, %v1028_v6  ;;  %v1030_v13 = vld [vmem:[%s3848_s6 + $0x1948] sm:$0xff] }
 0x1ea   : > { %3063 = vst [vmem:[%s3888_s21 + $0x1870] sm:$0xff] %v2039_v24  ;;  %3064 = vst [vmem:[%s3888_s21 + $0x1878] sm:$0xff] %v2040_v25  ;;  %v2065_v12 = vmul.f32 %v3862_v7, %v1029_v9  ;;  %v1031_v14 = vld [vmem:[%s3848_s6 + $0x1950] sm:$0xff]  ;;  %v1032_v15 = vld [vmem:[%s3848_s6 + $0x1958] sm:$0xff]  ;;  %v2066_v16 = vmul.f32 %v3864_v8, %v1030_v13 }
 0x1eb   : > { %3065 = vst [vmem:[%s3888_s21 + $0x1880] sm:$0xff] %v2041_v26  ;;  %3066 = vst [vmem:[%s3888_s21 + $0x1888] sm:$0xff] %v2042_v30  ;;  %v2067_v17 = vmul.f32 %v3862_v7, %v1031_v14  ;;  %v2068_v18 = vmul.f32 %v3864_v8, %v1032_v15  ;;  %v1033_v19 = vld [vmem:[%s3848_s6 + $0x1960] sm:$0xff]  ;;  %v1034_v20 = vld [vmem:[%s3848_s6 + $0x1968] sm:$0xff] }
 0x1ec   : > { %3067 = vst [vmem:[%s3888_s21 + $0x1890] sm:$0xff] %v2043_v31  ;;  %3068 = vst [vmem:[%s3888_s21 + $0x1898] sm:$0xff] %v2044_v32  ;;  %v1035_v21 = vld [vmem:[%s3848_s6 + $0x1970] sm:$0xff]  ;;  %v2069_v22 = vmul.f32 %v3862_v7, %v1033_v19  ;;  %v2070_v23 = vmul.f32 %v3864_v8, %v1034_v20  ;;  %v1036_v25 = vld [vmem:[%s3848_s6 + $0x1978] sm:$0xff] }
 0x1ed   : > { %3069 = vst [vmem:[%s3888_s21 + $0x18a0] sm:$0xff] %v2045_v36  ;;  %3070 = vst [vmem:[%s3888_s21 + $0x18a8] sm:$0xff] %v2046_v37  ;;  %v2071_v24 = vmul.f32 %v3862_v7, %v1035_v21  ;;  %v1037_v26 = vld [vmem:[%s3848_s6 + $0x1980] sm:$0xff]  ;;  %v1038_v27 = vld [vmem:[%s3848_s6 + $0x1988] sm:$0xff]  ;;  %v2072_v28 = vmul.f32 %v3864_v8, %v1036_v25 }
 0x1ee   : > { %3071 = vst [vmem:[%s3888_s21 + $0x18b0] sm:$0xff] %v2047_v38  ;;  %3072 = vst [vmem:[%s3888_s21 + $0x18b8] sm:$0xff] %v2048_v42  ;;  %v2073_v29 = vmul.f32 %v3862_v7, %v1037_v26  ;;  %v2074_v30 = vmul.f32 %v3864_v8, %v1038_v27  ;;  %v1039_v31 = vld [vmem:[%s3848_s6 + $0x1990] sm:$0xff]  ;;  %v1040_v32 = vld [vmem:[%s3848_s6 + $0x1998] sm:$0xff] }
 0x1ef   : > { %3073 = vst [vmem:[%s3888_s21 + $0x18c0] sm:$0xff] %v2049_v43  ;;  %3074 = vst [vmem:[%s3888_s21 + $0x18c8] sm:$0xff] %v2050_v44  ;;  %v1041_v33 = vld [vmem:[%s3848_s6 + $0x19a0] sm:$0xff]  ;;  %v2075_v34 = vmul.f32 %v3862_v7, %v1039_v31  ;;  %v2076_v35 = vmul.f32 %v3864_v8, %v1040_v32  ;;  %v1042_v37 = vld [vmem:[%s3848_s6 + $0x19a8] sm:$0xff] }
 0x1f0   : > { %3075 = vst [vmem:[%s3888_s21 + $0x18d0] sm:$0xff] %v2051_v48  ;;  %3076 = vst [vmem:[%s3888_s21 + $0x18d8] sm:$0xff] %v2052_v49  ;;  %v2077_v36 = vmul.f32 %v3862_v7, %v1041_v33  ;;  %v1043_v38 = vld [vmem:[%s3848_s6 + $0x19b0] sm:$0xff]  ;;  %v1044_v39 = vld [vmem:[%s3848_s6 + $0x19b8] sm:$0xff]  ;;  %v2078_v40 = vmul.f32 %v3864_v8, %v1042_v37 }
 0x1f1   : > { %3077 = vst [vmem:[%s3888_s21 + $0x18e0] sm:$0xff] %v2053_v50  ;;  %3078 = vst [vmem:[%s3888_s21 + $0x18e8] sm:$0xff] %v2054_v54  ;;  %v2079_v41 = vmul.f32 %v3862_v7, %v1043_v38  ;;  %v2080_v42 = vmul.f32 %v3864_v8, %v1044_v39  ;;  %v1045_v43 = vld [vmem:[%s3848_s6 + $0x19c0] sm:$0xff]  ;;  %v1046_v44 = vld [vmem:[%s3848_s6 + $0x19c8] sm:$0xff] }
 0x1f2   : > { %3079 = vst [vmem:[%s3888_s21 + $0x18f0] sm:$0xff] %v2055_v55  ;;  %3080 = vst [vmem:[%s3888_s21 + $0x18f8] sm:$0xff] %v2056_v56  ;;  %v1047_v45 = vld [vmem:[%s3848_s6 + $0x19d0] sm:$0xff]  ;;  %v2081_v46 = vmul.f32 %v3862_v7, %v1045_v43  ;;  %v2082_v47 = vmul.f32 %v3864_v8, %v1046_v44  ;;  %v1048_v49 = vld [vmem:[%s3848_s6 + $0x19d8] sm:$0xff] }
 0x1f3   : > { %3081 = vst [vmem:[%s3888_s21 + $0x1900] sm:$0xff] %v2057_v60  ;;  %3082 = vst [vmem:[%s3888_s21 + $0x1908] sm:$0xff] %v2058_v61  ;;  %v2083_v48 = vmul.f32 %v3862_v7, %v1047_v45  ;;  %v1049_v50 = vld [vmem:[%s3848_s6 + $0x19e0] sm:$0xff]  ;;  %v1050_v51 = vld [vmem:[%s3848_s6 + $0x19e8] sm:$0xff]  ;;  %v2084_v52 = vmul.f32 %v3864_v8, %v1048_v49 }
 0x1f4   : > { %3083 = vst [vmem:[%s3888_s21 + $0x1910] sm:$0xff] %v2059_v62  ;;  %3084 = vst [vmem:[%s3888_s21 + $0x1918] sm:$0xff] %v2060_v2  ;;  %v2085_v53 = vmul.f32 %v3862_v7, %v1049_v50  ;;  %v2086_v54 = vmul.f32 %v3864_v8, %v1050_v51  ;;  %v1051_v55 = vld [vmem:[%s3848_s6 + $0x19f0] sm:$0xff]  ;;  %v1052_v56 = vld [vmem:[%s3848_s6 + $0x19f8] sm:$0xff] }
 0x1f5   : > { %3085 = vst [vmem:[%s3888_s21 + $0x1920] sm:$0xff] %v2061_v3  ;;  %3086 = vst [vmem:[%s3888_s21 + $0x1928] sm:$0xff] %v2062_v4  ;;  %v1053_v57 = vld [vmem:[%s3848_s6 + $0x1a00] sm:$0xff]  ;;  %v2087_v58 = vmul.f32 %v3862_v7, %v1051_v55  ;;  %v2088_v59 = vmul.f32 %v3864_v8, %v1052_v56  ;;  %v1054_v61 = vld [vmem:[%s3848_s6 + $0x1a08] sm:$0xff] }
 0x1f6   : > { %3087 = vst [vmem:[%s3888_s21 + $0x1930] sm:$0xff] %v2063_v10  ;;  %3088 = vst [vmem:[%s3888_s21 + $0x1938] sm:$0xff] %v2064_v11  ;;  %v2089_v60 = vmul.f32 %v3862_v7, %v1053_v57  ;;  %v1055_v62 = vld [vmem:[%s3848_s6 + $0x1a10] sm:$0xff]  ;;  %v1056_v63 = vld [vmem:[%s3848_s6 + $0x1a18] sm:$0xff]  ;;  %v2090_v0 = vmul.f32 %v3864_v8, %v1054_v61 }
 0x1f7   : > { %3089 = vst [vmem:[%s3888_s21 + $0x1940] sm:$0xff] %v2065_v12  ;;  %3090 = vst [vmem:[%s3888_s21 + $0x1948] sm:$0xff] %v2066_v16  ;;  %v2091_v1 = vmul.f32 %v3862_v7, %v1055_v62  ;;  %v2092_v2 = vmul.f32 %v3864_v8, %v1056_v63  ;;  %v1057_v3 = vld [vmem:[%s3848_s6 + $0x1a20] sm:$0xff]  ;;  %v1058_v4 = vld [vmem:[%s3848_s6 + $0x1a28] sm:$0xff] }
 0x1f8   : > { %3091 = vst [vmem:[%s3888_s21 + $0x1950] sm:$0xff] %v2067_v17  ;;  %3092 = vst [vmem:[%s3888_s21 + $0x1958] sm:$0xff] %v2068_v18  ;;  %v1059_v5 = vld [vmem:[%s3848_s6 + $0x1a30] sm:$0xff]  ;;  %v2093_v6 = vmul.f32 %v3862_v7, %v1057_v3  ;;  %v2094_v9 = vmul.f32 %v3864_v8, %v1058_v4  ;;  %v1060_v11 = vld [vmem:[%s3848_s6 + $0x1a38] sm:$0xff] }
 0x1f9   : > { %3093 = vst [vmem:[%s3888_s21 + $0x1960] sm:$0xff] %v2069_v22  ;;  %3094 = vst [vmem:[%s3888_s21 + $0x1968] sm:$0xff] %v2070_v23  ;;  %v2095_v10 = vmul.f32 %v3862_v7, %v1059_v5  ;;  %v1061_v12 = vld [vmem:[%s3848_s6 + $0x1a40] sm:$0xff]  ;;  %v1062_v13 = vld [vmem:[%s3848_s6 + $0x1a48] sm:$0xff]  ;;  %v2096_v14 = vmul.f32 %v3864_v8, %v1060_v11 }
 0x1fa   : > { %3095 = vst [vmem:[%s3888_s21 + $0x1970] sm:$0xff] %v2071_v24  ;;  %3096 = vst [vmem:[%s3888_s21 + $0x1978] sm:$0xff] %v2072_v28  ;;  %v2097_v15 = vmul.f32 %v3862_v7, %v1061_v12  ;;  %v2098_v16 = vmul.f32 %v3864_v8, %v1062_v13  ;;  %v1063_v17 = vld [vmem:[%s3848_s6 + $0x1a50] sm:$0xff]  ;;  %v1064_v18 = vld [vmem:[%s3848_s6 + $0x1a58] sm:$0xff] }
 0x1fb   : > { %3097 = vst [vmem:[%s3888_s21 + $0x1980] sm:$0xff] %v2073_v29  ;;  %3098 = vst [vmem:[%s3888_s21 + $0x1988] sm:$0xff] %v2074_v30  ;;  %v1065_v19 = vld [vmem:[%s3848_s6 + $0x1a60] sm:$0xff]  ;;  %v2099_v20 = vmul.f32 %v3862_v7, %v1063_v17  ;;  %v2100_v21 = vmul.f32 %v3864_v8, %v1064_v18  ;;  %v1066_v23 = vld [vmem:[%s3848_s6 + $0x1a68] sm:$0xff] }
 0x1fc   : > { %3099 = vst [vmem:[%s3888_s21 + $0x1990] sm:$0xff] %v2075_v34  ;;  %3100 = vst [vmem:[%s3888_s21 + $0x1998] sm:$0xff] %v2076_v35  ;;  %v2101_v22 = vmul.f32 %v3862_v7, %v1065_v19  ;;  %v1067_v24 = vld [vmem:[%s3848_s6 + $0x1a70] sm:$0xff]  ;;  %v1068_v25 = vld [vmem:[%s3848_s6 + $0x1a78] sm:$0xff]  ;;  %v2102_v26 = vmul.f32 %v3864_v8, %v1066_v23 }
 0x1fd   : > { %3101 = vst [vmem:[%s3888_s21 + $0x19a0] sm:$0xff] %v2077_v36  ;;  %3102 = vst [vmem:[%s3888_s21 + $0x19a8] sm:$0xff] %v2078_v40  ;;  %v2103_v27 = vmul.f32 %v3862_v7, %v1067_v24  ;;  %v2104_v28 = vmul.f32 %v3864_v8, %v1068_v25  ;;  %v1069_v29 = vld [vmem:[%s3848_s6 + $0x1a80] sm:$0xff]  ;;  %v1070_v30 = vld [vmem:[%s3848_s6 + $0x1a88] sm:$0xff] }
 0x1fe   : > { %3103 = vst [vmem:[%s3888_s21 + $0x19b0] sm:$0xff] %v2079_v41  ;;  %3104 = vst [vmem:[%s3888_s21 + $0x19b8] sm:$0xff] %v2080_v42  ;;  %v1071_v31 = vld [vmem:[%s3848_s6 + $0x1a90] sm:$0xff]  ;;  %v2105_v32 = vmul.f32 %v3862_v7, %v1069_v29  ;;  %v2106_v33 = vmul.f32 %v3864_v8, %v1070_v30  ;;  %v1072_v35 = vld [vmem:[%s3848_s6 + $0x1a98] sm:$0xff] }
 0x1ff   : > { %3105 = vst [vmem:[%s3888_s21 + $0x19c0] sm:$0xff] %v2081_v46  ;;  %3106 = vst [vmem:[%s3888_s21 + $0x19c8] sm:$0xff] %v2082_v47  ;;  %v2107_v34 = vmul.f32 %v3862_v7, %v1071_v31  ;;  %v1073_v36 = vld [vmem:[%s3848_s6 + $0x1aa0] sm:$0xff]  ;;  %v1074_v37 = vld [vmem:[%s3848_s6 + $0x1aa8] sm:$0xff]  ;;  %v2108_v38 = vmul.f32 %v3864_v8, %v1072_v35 }
 0x200   : > { %3107 = vst [vmem:[%s3888_s21 + $0x19d0] sm:$0xff] %v2083_v48  ;;  %3108 = vst [vmem:[%s3888_s21 + $0x19d8] sm:$0xff] %v2084_v52  ;;  %v2109_v39 = vmul.f32 %v3862_v7, %v1073_v36  ;;  %v2110_v40 = vmul.f32 %v3864_v8, %v1074_v37  ;;  %v1075_v41 = vld [vmem:[%s3848_s6 + $0x1ab0] sm:$0xff]  ;;  %v1076_v42 = vld [vmem:[%s3848_s6 + $0x1ab8] sm:$0xff] }
 0x201   : > { %3109 = vst [vmem:[%s3888_s21 + $0x19e0] sm:$0xff] %v2085_v53  ;;  %3110 = vst [vmem:[%s3888_s21 + $0x19e8] sm:$0xff] %v2086_v54  ;;  %v1077_v43 = vld [vmem:[%s3848_s6 + $0x1ac0] sm:$0xff]  ;;  %v2111_v44 = vmul.f32 %v3862_v7, %v1075_v41  ;;  %v2112_v45 = vmul.f32 %v3864_v8, %v1076_v42  ;;  %v1078_v47 = vld [vmem:[%s3848_s6 + $0x1ac8] sm:$0xff] }
 0x202   : > { %3111 = vst [vmem:[%s3888_s21 + $0x19f0] sm:$0xff] %v2087_v58  ;;  %3112 = vst [vmem:[%s3888_s21 + $0x19f8] sm:$0xff] %v2088_v59  ;;  %v2113_v46 = vmul.f32 %v3862_v7, %v1077_v43  ;;  %v1079_v48 = vld [vmem:[%s3848_s6 + $0x1ad0] sm:$0xff]  ;;  %v1080_v49 = vld [vmem:[%s3848_s6 + $0x1ad8] sm:$0xff]  ;;  %v2114_v50 = vmul.f32 %v3864_v8, %v1078_v47 }
 0x203   : > { %3113 = vst [vmem:[%s3888_s21 + $0x1a00] sm:$0xff] %v2089_v60  ;;  %3114 = vst [vmem:[%s3888_s21 + $0x1a08] sm:$0xff] %v2090_v0  ;;  %v2115_v51 = vmul.f32 %v3862_v7, %v1079_v48  ;;  %v2116_v52 = vmul.f32 %v3864_v8, %v1080_v49  ;;  %v1081_v53 = vld [vmem:[%s3848_s6 + $0x1ae0] sm:$0xff]  ;;  %v1082_v54 = vld [vmem:[%s3848_s6 + $0x1ae8] sm:$0xff] }
 0x204   : > { %3115 = vst [vmem:[%s3888_s21 + $0x1a10] sm:$0xff] %v2091_v1  ;;  %3116 = vst [vmem:[%s3888_s21 + $0x1a18] sm:$0xff] %v2092_v2  ;;  %v1083_v55 = vld [vmem:[%s3848_s6 + $0x1af0] sm:$0xff]  ;;  %v2117_v56 = vmul.f32 %v3862_v7, %v1081_v53  ;;  %v2118_v57 = vmul.f32 %v3864_v8, %v1082_v54  ;;  %v1084_v59 = vld [vmem:[%s3848_s6 + $0x1af8] sm:$0xff] }
 0x205   : > { %3117 = vst [vmem:[%s3888_s21 + $0x1a20] sm:$0xff] %v2093_v6  ;;  %3118 = vst [vmem:[%s3888_s21 + $0x1a28] sm:$0xff] %v2094_v9  ;;  %v2119_v58 = vmul.f32 %v3862_v7, %v1083_v55  ;;  %v1085_v60 = vld [vmem:[%s3848_s6 + $0x1b00] sm:$0xff]  ;;  %v1086_v61 = vld [vmem:[%s3848_s6 + $0x1b08] sm:$0xff]  ;;  %v2120_v62 = vmul.f32 %v3864_v8, %v1084_v59 }
 0x206   : > { %3119 = vst [vmem:[%s3888_s21 + $0x1a30] sm:$0xff] %v2095_v10  ;;  %3120 = vst [vmem:[%s3888_s21 + $0x1a38] sm:$0xff] %v2096_v14  ;;  %v2121_v63 = vmul.f32 %v3862_v7, %v1085_v60  ;;  %v2122_v0 = vmul.f32 %v3864_v8, %v1086_v61  ;;  %v1087_v1 = vld [vmem:[%s3848_s6 + $0x1b10] sm:$0xff]  ;;  %v1088_v2 = vld [vmem:[%s3848_s6 + $0x1b18] sm:$0xff] }
 0x207   : > { %3121 = vst [vmem:[%s3888_s21 + $0x1a40] sm:$0xff] %v2097_v15  ;;  %3122 = vst [vmem:[%s3888_s21 + $0x1a48] sm:$0xff] %v2098_v16  ;;  %v1089_v3 = vld [vmem:[%s3848_s6 + $0x1b20] sm:$0xff]  ;;  %v2123_v4 = vmul.f32 %v3862_v7, %v1087_v1  ;;  %v2124_v5 = vmul.f32 %v3864_v8, %v1088_v2  ;;  %v1090_v9 = vld [vmem:[%s3848_s6 + $0x1b28] sm:$0xff] }
 0x208   : > { %3123 = vst [vmem:[%s3888_s21 + $0x1a50] sm:$0xff] %v2099_v20  ;;  %3124 = vst [vmem:[%s3888_s21 + $0x1a58] sm:$0xff] %v2100_v21  ;;  %v2125_v6 = vmul.f32 %v3862_v7, %v1089_v3  ;;  %v1091_v10 = vld [vmem:[%s3848_s6 + $0x1b30] sm:$0xff]  ;;  %v1092_v11 = vld [vmem:[%s3848_s6 + $0x1b38] sm:$0xff]  ;;  %v2126_v12 = vmul.f32 %v3864_v8, %v1090_v9 }
 0x209   : > { %3125 = vst [vmem:[%s3888_s21 + $0x1a60] sm:$0xff] %v2101_v22  ;;  %3126 = vst [vmem:[%s3888_s21 + $0x1a68] sm:$0xff] %v2102_v26  ;;  %v2127_v13 = vmul.f32 %v3862_v7, %v1091_v10  ;;  %v2128_v14 = vmul.f32 %v3864_v8, %v1092_v11  ;;  %v1093_v15 = vld [vmem:[%s3848_s6 + $0x1b40] sm:$0xff]  ;;  %v1094_v16 = vld [vmem:[%s3848_s6 + $0x1b48] sm:$0xff] }
 0x20a   : > { %3127 = vst [vmem:[%s3888_s21 + $0x1a70] sm:$0xff] %v2103_v27  ;;  %3128 = vst [vmem:[%s3888_s21 + $0x1a78] sm:$0xff] %v2104_v28  ;;  %v1095_v17 = vld [vmem:[%s3848_s6 + $0x1b50] sm:$0xff]  ;;  %v2129_v18 = vmul.f32 %v3862_v7, %v1093_v15  ;;  %v2130_v19 = vmul.f32 %v3864_v8, %v1094_v16  ;;  %v1096_v21 = vld [vmem:[%s3848_s6 + $0x1b58] sm:$0xff] }
 0x20b   : > { %3129 = vst [vmem:[%s3888_s21 + $0x1a80] sm:$0xff] %v2105_v32  ;;  %3130 = vst [vmem:[%s3888_s21 + $0x1a88] sm:$0xff] %v2106_v33  ;;  %v2131_v20 = vmul.f32 %v3862_v7, %v1095_v17  ;;  %v1097_v22 = vld [vmem:[%s3848_s6 + $0x1b60] sm:$0xff]  ;;  %v1098_v23 = vld [vmem:[%s3848_s6 + $0x1b68] sm:$0xff]  ;;  %v2132_v24 = vmul.f32 %v3864_v8, %v1096_v21 }
 0x20c   : > { %3131 = vst [vmem:[%s3888_s21 + $0x1a90] sm:$0xff] %v2107_v34  ;;  %3132 = vst [vmem:[%s3888_s21 + $0x1a98] sm:$0xff] %v2108_v38  ;;  %v2133_v25 = vmul.f32 %v3862_v7, %v1097_v22  ;;  %v2134_v26 = vmul.f32 %v3864_v8, %v1098_v23  ;;  %v1099_v27 = vld [vmem:[%s3848_s6 + $0x1b70] sm:$0xff]  ;;  %v1100_v28 = vld [vmem:[%s3848_s6 + $0x1b78] sm:$0xff] }
 0x20d   : > { %3133 = vst [vmem:[%s3888_s21 + $0x1aa0] sm:$0xff] %v2109_v39  ;;  %3134 = vst [vmem:[%s3888_s21 + $0x1aa8] sm:$0xff] %v2110_v40  ;;  %v1101_v29 = vld [vmem:[%s3848_s6 + $0x1b80] sm:$0xff]  ;;  %v2135_v30 = vmul.f32 %v3862_v7, %v1099_v27  ;;  %v2136_v31 = vmul.f32 %v3864_v8, %v1100_v28  ;;  %v1102_v33 = vld [vmem:[%s3848_s6 + $0x1b88] sm:$0xff] }
 0x20e   : > { %3135 = vst [vmem:[%s3888_s21 + $0x1ab0] sm:$0xff] %v2111_v44  ;;  %3136 = vst [vmem:[%s3888_s21 + $0x1ab8] sm:$0xff] %v2112_v45  ;;  %v2137_v32 = vmul.f32 %v3862_v7, %v1101_v29  ;;  %v1103_v34 = vld [vmem:[%s3848_s6 + $0x1b90] sm:$0xff]  ;;  %v1104_v35 = vld [vmem:[%s3848_s6 + $0x1b98] sm:$0xff]  ;;  %v2138_v36 = vmul.f32 %v3864_v8, %v1102_v33 }
 0x20f   : > { %3137 = vst [vmem:[%s3888_s21 + $0x1ac0] sm:$0xff] %v2113_v46  ;;  %3138 = vst [vmem:[%s3888_s21 + $0x1ac8] sm:$0xff] %v2114_v50  ;;  %v2139_v37 = vmul.f32 %v3862_v7, %v1103_v34  ;;  %v2140_v38 = vmul.f32 %v3864_v8, %v1104_v35  ;;  %v1105_v39 = vld [vmem:[%s3848_s6 + $0x1ba0] sm:$0xff]  ;;  %v1106_v40 = vld [vmem:[%s3848_s6 + $0x1ba8] sm:$0xff] }
 0x210   : > { %3139 = vst [vmem:[%s3888_s21 + $0x1ad0] sm:$0xff] %v2115_v51  ;;  %3140 = vst [vmem:[%s3888_s21 + $0x1ad8] sm:$0xff] %v2116_v52  ;;  %v1107_v41 = vld [vmem:[%s3848_s6 + $0x1bb0] sm:$0xff]  ;;  %v2141_v42 = vmul.f32 %v3862_v7, %v1105_v39  ;;  %v2142_v43 = vmul.f32 %v3864_v8, %v1106_v40  ;;  %v1108_v45 = vld [vmem:[%s3848_s6 + $0x1bb8] sm:$0xff] }
 0x211   : > { %3141 = vst [vmem:[%s3888_s21 + $0x1ae0] sm:$0xff] %v2117_v56  ;;  %3142 = vst [vmem:[%s3888_s21 + $0x1ae8] sm:$0xff] %v2118_v57  ;;  %v2143_v44 = vmul.f32 %v3862_v7, %v1107_v41  ;;  %v1109_v46 = vld [vmem:[%s3848_s6 + $0x1bc0] sm:$0xff]  ;;  %v1110_v47 = vld [vmem:[%s3848_s6 + $0x1bc8] sm:$0xff]  ;;  %v2144_v48 = vmul.f32 %v3864_v8, %v1108_v45 }
 0x212   : > { %3143 = vst [vmem:[%s3888_s21 + $0x1af0] sm:$0xff] %v2119_v58  ;;  %3144 = vst [vmem:[%s3888_s21 + $0x1af8] sm:$0xff] %v2120_v62  ;;  %v2145_v49 = vmul.f32 %v3862_v7, %v1109_v46  ;;  %v2146_v50 = vmul.f32 %v3864_v8, %v1110_v47  ;;  %v1111_v51 = vld [vmem:[%s3848_s6 + $0x1bd0] sm:$0xff]  ;;  %v1112_v52 = vld [vmem:[%s3848_s6 + $0x1bd8] sm:$0xff] }
 0x213   : > { %3145 = vst [vmem:[%s3888_s21 + $0x1b00] sm:$0xff] %v2121_v63  ;;  %3146 = vst [vmem:[%s3888_s21 + $0x1b08] sm:$0xff] %v2122_v0  ;;  %v1113_v53 = vld [vmem:[%s3848_s6 + $0x1be0] sm:$0xff]  ;;  %v2147_v54 = vmul.f32 %v3862_v7, %v1111_v51  ;;  %v2148_v55 = vmul.f32 %v3864_v8, %v1112_v52  ;;  %v1114_v57 = vld [vmem:[%s3848_s6 + $0x1be8] sm:$0xff] }
 0x214   : > { %3147 = vst [vmem:[%s3888_s21 + $0x1b10] sm:$0xff] %v2123_v4  ;;  %3148 = vst [vmem:[%s3888_s21 + $0x1b18] sm:$0xff] %v2124_v5  ;;  %v2149_v56 = vmul.f32 %v3862_v7, %v1113_v53  ;;  %v1115_v58 = vld [vmem:[%s3848_s6 + $0x1bf0] sm:$0xff]  ;;  %v1116_v59 = vld [vmem:[%s3848_s6 + $0x1bf8] sm:$0xff]  ;;  %v2150_v60 = vmul.f32 %v3864_v8, %v1114_v57 }
 0x215   : > { %3149 = vst [vmem:[%s3888_s21 + $0x1b20] sm:$0xff] %v2125_v6  ;;  %3150 = vst [vmem:[%s3888_s21 + $0x1b28] sm:$0xff] %v2126_v12  ;;  %v2151_v61 = vmul.f32 %v3862_v7, %v1115_v58  ;;  %v2152_v62 = vmul.f32 %v3864_v8, %v1116_v59  ;;  %v1117_v63 = vld [vmem:[%s3848_s6 + $0x1c00] sm:$0xff]  ;;  %v1118_v0 = vld [vmem:[%s3848_s6 + $0x1c08] sm:$0xff] }
 0x216   : > { %3151 = vst [vmem:[%s3888_s21 + $0x1b30] sm:$0xff] %v2127_v13  ;;  %3152 = vst [vmem:[%s3888_s21 + $0x1b38] sm:$0xff] %v2128_v14  ;;  %v1119_v1 = vld [vmem:[%s3848_s6 + $0x1c10] sm:$0xff]  ;;  %v2153_v2 = vmul.f32 %v3862_v7, %v1117_v63  ;;  %v2154_v3 = vmul.f32 %v3864_v8, %v1118_v0  ;;  %v1120_v5 = vld [vmem:[%s3848_s6 + $0x1c18] sm:$0xff] }
 0x217   : > { %3153 = vst [vmem:[%s3888_s21 + $0x1b40] sm:$0xff] %v2129_v18  ;;  %3154 = vst [vmem:[%s3888_s21 + $0x1b48] sm:$0xff] %v2130_v19  ;;  %v2155_v4 = vmul.f32 %v3862_v7, %v1119_v1  ;;  %v1121_v6 = vld [vmem:[%s3848_s6 + $0x1c20] sm:$0xff]  ;;  %v1122_v9 = vld [vmem:[%s3848_s6 + $0x1c28] sm:$0xff]  ;;  %v2156_v10 = vmul.f32 %v3864_v8, %v1120_v5 }
 0x218   : > { %3155 = vst [vmem:[%s3888_s21 + $0x1b50] sm:$0xff] %v2131_v20  ;;  %3156 = vst [vmem:[%s3888_s21 + $0x1b58] sm:$0xff] %v2132_v24  ;;  %v2157_v11 = vmul.f32 %v3862_v7, %v1121_v6  ;;  %v2158_v12 = vmul.f32 %v3864_v8, %v1122_v9  ;;  %v1123_v13 = vld [vmem:[%s3848_s6 + $0x1c30] sm:$0xff]  ;;  %v1124_v14 = vld [vmem:[%s3848_s6 + $0x1c38] sm:$0xff] }
 0x219   : > { %3157 = vst [vmem:[%s3888_s21 + $0x1b60] sm:$0xff] %v2133_v25  ;;  %3158 = vst [vmem:[%s3888_s21 + $0x1b68] sm:$0xff] %v2134_v26  ;;  %v1125_v15 = vld [vmem:[%s3848_s6 + $0x1c40] sm:$0xff]  ;;  %v2159_v16 = vmul.f32 %v3862_v7, %v1123_v13  ;;  %v2160_v17 = vmul.f32 %v3864_v8, %v1124_v14  ;;  %v1126_v19 = vld [vmem:[%s3848_s6 + $0x1c48] sm:$0xff] }
 0x21a   : > { %3159 = vst [vmem:[%s3888_s21 + $0x1b70] sm:$0xff] %v2135_v30  ;;  %3160 = vst [vmem:[%s3888_s21 + $0x1b78] sm:$0xff] %v2136_v31  ;;  %v2161_v18 = vmul.f32 %v3862_v7, %v1125_v15  ;;  %v1127_v20 = vld [vmem:[%s3848_s6 + $0x1c50] sm:$0xff]  ;;  %v1128_v21 = vld [vmem:[%s3848_s6 + $0x1c58] sm:$0xff]  ;;  %v2162_v22 = vmul.f32 %v3864_v8, %v1126_v19 }
 0x21b   : > { %3161 = vst [vmem:[%s3888_s21 + $0x1b80] sm:$0xff] %v2137_v32  ;;  %3162 = vst [vmem:[%s3888_s21 + $0x1b88] sm:$0xff] %v2138_v36  ;;  %v2163_v23 = vmul.f32 %v3862_v7, %v1127_v20  ;;  %v2164_v24 = vmul.f32 %v3864_v8, %v1128_v21  ;;  %v1129_v25 = vld [vmem:[%s3848_s6 + $0x1c60] sm:$0xff]  ;;  %v1130_v26 = vld [vmem:[%s3848_s6 + $0x1c68] sm:$0xff] }
 0x21c   : > { %3163 = vst [vmem:[%s3888_s21 + $0x1b90] sm:$0xff] %v2139_v37  ;;  %3164 = vst [vmem:[%s3888_s21 + $0x1b98] sm:$0xff] %v2140_v38  ;;  %v1131_v27 = vld [vmem:[%s3848_s6 + $0x1c70] sm:$0xff]  ;;  %v2165_v28 = vmul.f32 %v3862_v7, %v1129_v25  ;;  %v2166_v29 = vmul.f32 %v3864_v8, %v1130_v26  ;;  %v1132_v31 = vld [vmem:[%s3848_s6 + $0x1c78] sm:$0xff] }
 0x21d   : > { %3165 = vst [vmem:[%s3888_s21 + $0x1ba0] sm:$0xff] %v2141_v42  ;;  %3166 = vst [vmem:[%s3888_s21 + $0x1ba8] sm:$0xff] %v2142_v43  ;;  %v2167_v30 = vmul.f32 %v3862_v7, %v1131_v27  ;;  %v1133_v32 = vld [vmem:[%s3848_s6 + $0x1c80] sm:$0xff]  ;;  %v1134_v33 = vld [vmem:[%s3848_s6 + $0x1c88] sm:$0xff]  ;;  %v2168_v34 = vmul.f32 %v3864_v8, %v1132_v31 }
 0x21e   : > { %3167 = vst [vmem:[%s3888_s21 + $0x1bb0] sm:$0xff] %v2143_v44  ;;  %3168 = vst [vmem:[%s3888_s21 + $0x1bb8] sm:$0xff] %v2144_v48  ;;  %v2169_v35 = vmul.f32 %v3862_v7, %v1133_v32  ;;  %v2170_v36 = vmul.f32 %v3864_v8, %v1134_v33  ;;  %v1135_v37 = vld [vmem:[%s3848_s6 + $0x1c90] sm:$0xff]  ;;  %v1136_v38 = vld [vmem:[%s3848_s6 + $0x1c98] sm:$0xff] }
 0x21f   : > { %3169 = vst [vmem:[%s3888_s21 + $0x1bc0] sm:$0xff] %v2145_v49  ;;  %3170 = vst [vmem:[%s3888_s21 + $0x1bc8] sm:$0xff] %v2146_v50  ;;  %v1137_v39 = vld [vmem:[%s3848_s6 + $0x1ca0] sm:$0xff]  ;;  %v2171_v40 = vmul.f32 %v3862_v7, %v1135_v37  ;;  %v2172_v41 = vmul.f32 %v3864_v8, %v1136_v38  ;;  %v1138_v43 = vld [vmem:[%s3848_s6 + $0x1ca8] sm:$0xff] }
 0x220   : > { %3171 = vst [vmem:[%s3888_s21 + $0x1bd0] sm:$0xff] %v2147_v54  ;;  %3172 = vst [vmem:[%s3888_s21 + $0x1bd8] sm:$0xff] %v2148_v55  ;;  %v2173_v42 = vmul.f32 %v3862_v7, %v1137_v39  ;;  %v1139_v44 = vld [vmem:[%s3848_s6 + $0x1cb0] sm:$0xff]  ;;  %v1140_v45 = vld [vmem:[%s3848_s6 + $0x1cb8] sm:$0xff]  ;;  %v2174_v46 = vmul.f32 %v3864_v8, %v1138_v43 }
 0x221   : > { %3173 = vst [vmem:[%s3888_s21 + $0x1be0] sm:$0xff] %v2149_v56  ;;  %3174 = vst [vmem:[%s3888_s21 + $0x1be8] sm:$0xff] %v2150_v60  ;;  %v2175_v47 = vmul.f32 %v3862_v7, %v1139_v44  ;;  %v2176_v48 = vmul.f32 %v3864_v8, %v1140_v45  ;;  %v1141_v49 = vld [vmem:[%s3848_s6 + $0x1cc0] sm:$0xff]  ;;  %v1142_v50 = vld [vmem:[%s3848_s6 + $0x1cc8] sm:$0xff] }
 0x222   : > { %3175 = vst [vmem:[%s3888_s21 + $0x1bf0] sm:$0xff] %v2151_v61  ;;  %3176 = vst [vmem:[%s3888_s21 + $0x1bf8] sm:$0xff] %v2152_v62  ;;  %v1143_v51 = vld [vmem:[%s3848_s6 + $0x1cd0] sm:$0xff]  ;;  %v2177_v52 = vmul.f32 %v3862_v7, %v1141_v49  ;;  %v2178_v53 = vmul.f32 %v3864_v8, %v1142_v50  ;;  %v1144_v55 = vld [vmem:[%s3848_s6 + $0x1cd8] sm:$0xff] }
 0x223   : > { %3177 = vst [vmem:[%s3888_s21 + $0x1c00] sm:$0xff] %v2153_v2  ;;  %3178 = vst [vmem:[%s3888_s21 + $0x1c08] sm:$0xff] %v2154_v3  ;;  %v2179_v54 = vmul.f32 %v3862_v7, %v1143_v51  ;;  %v1145_v56 = vld [vmem:[%s3848_s6 + $0x1ce0] sm:$0xff]  ;;  %v1146_v57 = vld [vmem:[%s3848_s6 + $0x1ce8] sm:$0xff]  ;;  %v2180_v58 = vmul.f32 %v3864_v8, %v1144_v55 }
 0x224   : > { %3179 = vst [vmem:[%s3888_s21 + $0x1c10] sm:$0xff] %v2155_v4  ;;  %3180 = vst [vmem:[%s3888_s21 + $0x1c18] sm:$0xff] %v2156_v10  ;;  %v2181_v59 = vmul.f32 %v3862_v7, %v1145_v56  ;;  %v2182_v60 = vmul.f32 %v3864_v8, %v1146_v57  ;;  %v1147_v61 = vld [vmem:[%s3848_s6 + $0x1cf0] sm:$0xff]  ;;  %v1148_v62 = vld [vmem:[%s3848_s6 + $0x1cf8] sm:$0xff] }
 0x225   : > { %3181 = vst [vmem:[%s3888_s21 + $0x1c20] sm:$0xff] %v2157_v11  ;;  %3182 = vst [vmem:[%s3888_s21 + $0x1c28] sm:$0xff] %v2158_v12  ;;  %v1149_v63 = vld [vmem:[%s3848_s6 + $0x1d00] sm:$0xff]  ;;  %v2183_v0 = vmul.f32 %v3862_v7, %v1147_v61  ;;  %v2184_v1 = vmul.f32 %v3864_v8, %v1148_v62  ;;  %v1150_v3 = vld [vmem:[%s3848_s6 + $0x1d08] sm:$0xff] }
 0x226   : > { %3183 = vst [vmem:[%s3888_s21 + $0x1c30] sm:$0xff] %v2159_v16  ;;  %3184 = vst [vmem:[%s3888_s21 + $0x1c38] sm:$0xff] %v2160_v17  ;;  %v2185_v2 = vmul.f32 %v3862_v7, %v1149_v63  ;;  %v1151_v4 = vld [vmem:[%s3848_s6 + $0x1d10] sm:$0xff]  ;;  %v1152_v5 = vld [vmem:[%s3848_s6 + $0x1d18] sm:$0xff]  ;;  %v2186_v6 = vmul.f32 %v3864_v8, %v1150_v3 }
 0x227   : > { %3185 = vst [vmem:[%s3888_s21 + $0x1c40] sm:$0xff] %v2161_v18  ;;  %3186 = vst [vmem:[%s3888_s21 + $0x1c48] sm:$0xff] %v2162_v22  ;;  %v2187_v9 = vmul.f32 %v3862_v7, %v1151_v4  ;;  %v2188_v10 = vmul.f32 %v3864_v8, %v1152_v5  ;;  %v1153_v11 = vld [vmem:[%s3848_s6 + $0x1d20] sm:$0xff]  ;;  %v1154_v12 = vld [vmem:[%s3848_s6 + $0x1d28] sm:$0xff] }
 0x228   : > { %3187 = vst [vmem:[%s3888_s21 + $0x1c50] sm:$0xff] %v2163_v23  ;;  %3188 = vst [vmem:[%s3888_s21 + $0x1c58] sm:$0xff] %v2164_v24  ;;  %v1155_v13 = vld [vmem:[%s3848_s6 + $0x1d30] sm:$0xff]  ;;  %v2189_v14 = vmul.f32 %v3862_v7, %v1153_v11  ;;  %v2190_v15 = vmul.f32 %v3864_v8, %v1154_v12  ;;  %v1156_v17 = vld [vmem:[%s3848_s6 + $0x1d38] sm:$0xff] }
 0x229   : > { %3189 = vst [vmem:[%s3888_s21 + $0x1c60] sm:$0xff] %v2165_v28  ;;  %3190 = vst [vmem:[%s3888_s21 + $0x1c68] sm:$0xff] %v2166_v29  ;;  %v2191_v16 = vmul.f32 %v3862_v7, %v1155_v13  ;;  %v1157_v18 = vld [vmem:[%s3848_s6 + $0x1d40] sm:$0xff]  ;;  %v1158_v19 = vld [vmem:[%s3848_s6 + $0x1d48] sm:$0xff]  ;;  %v2192_v20 = vmul.f32 %v3864_v8, %v1156_v17 }
 0x22a   : > { %3191 = vst [vmem:[%s3888_s21 + $0x1c70] sm:$0xff] %v2167_v30  ;;  %3192 = vst [vmem:[%s3888_s21 + $0x1c78] sm:$0xff] %v2168_v34  ;;  %v2193_v21 = vmul.f32 %v3862_v7, %v1157_v18  ;;  %v2194_v22 = vmul.f32 %v3864_v8, %v1158_v19  ;;  %v1159_v23 = vld [vmem:[%s3848_s6 + $0x1d50] sm:$0xff]  ;;  %v1160_v24 = vld [vmem:[%s3848_s6 + $0x1d58] sm:$0xff] }
 0x22b   : > { %3193 = vst [vmem:[%s3888_s21 + $0x1c80] sm:$0xff] %v2169_v35  ;;  %3194 = vst [vmem:[%s3888_s21 + $0x1c88] sm:$0xff] %v2170_v36  ;;  %v1161_v25 = vld [vmem:[%s3848_s6 + $0x1d60] sm:$0xff]  ;;  %v2195_v26 = vmul.f32 %v3862_v7, %v1159_v23  ;;  %v2196_v27 = vmul.f32 %v3864_v8, %v1160_v24  ;;  %v1162_v29 = vld [vmem:[%s3848_s6 + $0x1d68] sm:$0xff] }
 0x22c   : > { %3195 = vst [vmem:[%s3888_s21 + $0x1c90] sm:$0xff] %v2171_v40  ;;  %3196 = vst [vmem:[%s3888_s21 + $0x1c98] sm:$0xff] %v2172_v41  ;;  %v2197_v28 = vmul.f32 %v3862_v7, %v1161_v25  ;;  %v1163_v30 = vld [vmem:[%s3848_s6 + $0x1d70] sm:$0xff]  ;;  %v1164_v31 = vld [vmem:[%s3848_s6 + $0x1d78] sm:$0xff]  ;;  %v2198_v32 = vmul.f32 %v3864_v8, %v1162_v29 }
 0x22d   : > { %3197 = vst [vmem:[%s3888_s21 + $0x1ca0] sm:$0xff] %v2173_v42  ;;  %3198 = vst [vmem:[%s3888_s21 + $0x1ca8] sm:$0xff] %v2174_v46  ;;  %v2199_v33 = vmul.f32 %v3862_v7, %v1163_v30  ;;  %v2200_v34 = vmul.f32 %v3864_v8, %v1164_v31  ;;  %v1165_v35 = vld [vmem:[%s3848_s6 + $0x1d80] sm:$0xff]  ;;  %v1166_v36 = vld [vmem:[%s3848_s6 + $0x1d88] sm:$0xff] }
 0x22e   : > { %3199 = vst [vmem:[%s3888_s21 + $0x1cb0] sm:$0xff] %v2175_v47  ;;  %3200 = vst [vmem:[%s3888_s21 + $0x1cb8] sm:$0xff] %v2176_v48  ;;  %v1167_v37 = vld [vmem:[%s3848_s6 + $0x1d90] sm:$0xff]  ;;  %v2201_v38 = vmul.f32 %v3862_v7, %v1165_v35  ;;  %v2202_v39 = vmul.f32 %v3864_v8, %v1166_v36  ;;  %v1168_v41 = vld [vmem:[%s3848_s6 + $0x1d98] sm:$0xff] }
 0x22f   : > { %3201 = vst [vmem:[%s3888_s21 + $0x1cc0] sm:$0xff] %v2177_v52  ;;  %3202 = vst [vmem:[%s3888_s21 + $0x1cc8] sm:$0xff] %v2178_v53  ;;  %v2203_v40 = vmul.f32 %v3862_v7, %v1167_v37  ;;  %v1169_v42 = vld [vmem:[%s3848_s6 + $0x1da0] sm:$0xff]  ;;  %v1170_v43 = vld [vmem:[%s3848_s6 + $0x1da8] sm:$0xff]  ;;  %v2204_v44 = vmul.f32 %v3864_v8, %v1168_v41 }
 0x230   : > { %3203 = vst [vmem:[%s3888_s21 + $0x1cd0] sm:$0xff] %v2179_v54  ;;  %3204 = vst [vmem:[%s3888_s21 + $0x1cd8] sm:$0xff] %v2180_v58  ;;  %v2205_v45 = vmul.f32 %v3862_v7, %v1169_v42  ;;  %v2206_v46 = vmul.f32 %v3864_v8, %v1170_v43  ;;  %v1171_v47 = vld [vmem:[%s3848_s6 + $0x1db0] sm:$0xff]  ;;  %v1172_v48 = vld [vmem:[%s3848_s6 + $0x1db8] sm:$0xff] }
 0x231   : > { %3205 = vst [vmem:[%s3888_s21 + $0x1ce0] sm:$0xff] %v2181_v59  ;;  %3206 = vst [vmem:[%s3888_s21 + $0x1ce8] sm:$0xff] %v2182_v60  ;;  %v1173_v49 = vld [vmem:[%s3848_s6 + $0x1dc0] sm:$0xff]  ;;  %v2207_v50 = vmul.f32 %v3862_v7, %v1171_v47  ;;  %v2208_v51 = vmul.f32 %v3864_v8, %v1172_v48  ;;  %v1174_v53 = vld [vmem:[%s3848_s6 + $0x1dc8] sm:$0xff] }
 0x232   : > { %3207 = vst [vmem:[%s3888_s21 + $0x1cf0] sm:$0xff] %v2183_v0  ;;  %3208 = vst [vmem:[%s3888_s21 + $0x1cf8] sm:$0xff] %v2184_v1  ;;  %v2209_v52 = vmul.f32 %v3862_v7, %v1173_v49  ;;  %v1175_v54 = vld [vmem:[%s3848_s6 + $0x1dd0] sm:$0xff]  ;;  %v1176_v55 = vld [vmem:[%s3848_s6 + $0x1dd8] sm:$0xff]  ;;  %v2210_v56 = vmul.f32 %v3864_v8, %v1174_v53 }
 0x233   : > { %3209 = vst [vmem:[%s3888_s21 + $0x1d00] sm:$0xff] %v2185_v2  ;;  %3210 = vst [vmem:[%s3888_s21 + $0x1d08] sm:$0xff] %v2186_v6  ;;  %v2211_v57 = vmul.f32 %v3862_v7, %v1175_v54  ;;  %v2212_v58 = vmul.f32 %v3864_v8, %v1176_v55  ;;  %v1177_v59 = vld [vmem:[%s3848_s6 + $0x1de0] sm:$0xff]  ;;  %v1178_v60 = vld [vmem:[%s3848_s6 + $0x1de8] sm:$0xff] }
 0x234   : > { %3211 = vst [vmem:[%s3888_s21 + $0x1d10] sm:$0xff] %v2187_v9  ;;  %3212 = vst [vmem:[%s3888_s21 + $0x1d18] sm:$0xff] %v2188_v10  ;;  %v1179_v61 = vld [vmem:[%s3848_s6 + $0x1df0] sm:$0xff]  ;;  %v2213_v62 = vmul.f32 %v3862_v7, %v1177_v59  ;;  %v2214_v63 = vmul.f32 %v3864_v8, %v1178_v60  ;;  %v1180_v1 = vld [vmem:[%s3848_s6 + $0x1df8] sm:$0xff] }
 0x235   : > { %3213 = vst [vmem:[%s3888_s21 + $0x1d20] sm:$0xff] %v2189_v14  ;;  %3214 = vst [vmem:[%s3888_s21 + $0x1d28] sm:$0xff] %v2190_v15  ;;  %v2215_v0 = vmul.f32 %v3862_v7, %v1179_v61  ;;  %v1181_v2 = vld [vmem:[%s3848_s6 + $0x1e00] sm:$0xff]  ;;  %v1182_v3 = vld [vmem:[%s3848_s6 + $0x1e08] sm:$0xff]  ;;  %v2216_v4 = vmul.f32 %v3864_v8, %v1180_v1 }
 0x236   : > { %3215 = vst [vmem:[%s3888_s21 + $0x1d30] sm:$0xff] %v2191_v16  ;;  %3216 = vst [vmem:[%s3888_s21 + $0x1d38] sm:$0xff] %v2192_v20  ;;  %v2217_v5 = vmul.f32 %v3862_v7, %v1181_v2  ;;  %v2218_v6 = vmul.f32 %v3864_v8, %v1182_v3  ;;  %v1183_v9 = vld [vmem:[%s3848_s6 + $0x1e10] sm:$0xff]  ;;  %v1184_v10 = vld [vmem:[%s3848_s6 + $0x1e18] sm:$0xff] }
 0x237   : > { %3217 = vst [vmem:[%s3888_s21 + $0x1d40] sm:$0xff] %v2193_v21  ;;  %3218 = vst [vmem:[%s3888_s21 + $0x1d48] sm:$0xff] %v2194_v22  ;;  %v1185_v11 = vld [vmem:[%s3848_s6 + $0x1e20] sm:$0xff]  ;;  %v2219_v12 = vmul.f32 %v3862_v7, %v1183_v9  ;;  %v2220_v13 = vmul.f32 %v3864_v8, %v1184_v10  ;;  %v1186_v15 = vld [vmem:[%s3848_s6 + $0x1e28] sm:$0xff] }
 0x238   : > { %3219 = vst [vmem:[%s3888_s21 + $0x1d50] sm:$0xff] %v2195_v26  ;;  %3220 = vst [vmem:[%s3888_s21 + $0x1d58] sm:$0xff] %v2196_v27  ;;  %v2221_v14 = vmul.f32 %v3862_v7, %v1185_v11  ;;  %v1187_v16 = vld [vmem:[%s3848_s6 + $0x1e30] sm:$0xff]  ;;  %v1188_v17 = vld [vmem:[%s3848_s6 + $0x1e38] sm:$0xff]  ;;  %v2222_v18 = vmul.f32 %v3864_v8, %v1186_v15 }
 0x239   : > { %3221 = vst [vmem:[%s3888_s21 + $0x1d60] sm:$0xff] %v2197_v28  ;;  %3222 = vst [vmem:[%s3888_s21 + $0x1d68] sm:$0xff] %v2198_v32  ;;  %v2223_v19 = vmul.f32 %v3862_v7, %v1187_v16  ;;  %v2224_v20 = vmul.f32 %v3864_v8, %v1188_v17  ;;  %v1189_v21 = vld [vmem:[%s3848_s6 + $0x1e40] sm:$0xff]  ;;  %v1190_v22 = vld [vmem:[%s3848_s6 + $0x1e48] sm:$0xff] }
 0x23a   : > { %3223 = vst [vmem:[%s3888_s21 + $0x1d70] sm:$0xff] %v2199_v33  ;;  %3224 = vst [vmem:[%s3888_s21 + $0x1d78] sm:$0xff] %v2200_v34  ;;  %v1191_v23 = vld [vmem:[%s3848_s6 + $0x1e50] sm:$0xff]  ;;  %v2225_v24 = vmul.f32 %v3862_v7, %v1189_v21  ;;  %v2226_v25 = vmul.f32 %v3864_v8, %v1190_v22  ;;  %v1192_v27 = vld [vmem:[%s3848_s6 + $0x1e58] sm:$0xff] }
 0x23b   : > { %3225 = vst [vmem:[%s3888_s21 + $0x1d80] sm:$0xff] %v2201_v38  ;;  %3226 = vst [vmem:[%s3888_s21 + $0x1d88] sm:$0xff] %v2202_v39  ;;  %v2227_v26 = vmul.f32 %v3862_v7, %v1191_v23  ;;  %v1193_v28 = vld [vmem:[%s3848_s6 + $0x1e60] sm:$0xff]  ;;  %v1194_v29 = vld [vmem:[%s3848_s6 + $0x1e68] sm:$0xff]  ;;  %v2228_v30 = vmul.f32 %v3864_v8, %v1192_v27 }
 0x23c   : > { %3227 = vst [vmem:[%s3888_s21 + $0x1d90] sm:$0xff] %v2203_v40  ;;  %3228 = vst [vmem:[%s3888_s21 + $0x1d98] sm:$0xff] %v2204_v44  ;;  %v2229_v31 = vmul.f32 %v3862_v7, %v1193_v28  ;;  %v2230_v32 = vmul.f32 %v3864_v8, %v1194_v29  ;;  %v1195_v33 = vld [vmem:[%s3848_s6 + $0x1e70] sm:$0xff]  ;;  %v1196_v34 = vld [vmem:[%s3848_s6 + $0x1e78] sm:$0xff] }
 0x23d   : > { %3229 = vst [vmem:[%s3888_s21 + $0x1da0] sm:$0xff] %v2205_v45  ;;  %3230 = vst [vmem:[%s3888_s21 + $0x1da8] sm:$0xff] %v2206_v46  ;;  %v1197_v35 = vld [vmem:[%s3848_s6 + $0x1e80] sm:$0xff]  ;;  %v2231_v36 = vmul.f32 %v3862_v7, %v1195_v33  ;;  %v2232_v37 = vmul.f32 %v3864_v8, %v1196_v34  ;;  %v1198_v39 = vld [vmem:[%s3848_s6 + $0x1e88] sm:$0xff] }
 0x23e   : > { %3231 = vst [vmem:[%s3888_s21 + $0x1db0] sm:$0xff] %v2207_v50  ;;  %3232 = vst [vmem:[%s3888_s21 + $0x1db8] sm:$0xff] %v2208_v51  ;;  %v2233_v38 = vmul.f32 %v3862_v7, %v1197_v35  ;;  %v1199_v40 = vld [vmem:[%s3848_s6 + $0x1e90] sm:$0xff]  ;;  %v1200_v41 = vld [vmem:[%s3848_s6 + $0x1e98] sm:$0xff]  ;;  %v2234_v42 = vmul.f32 %v3864_v8, %v1198_v39 }
 0x23f   : > { %3233 = vst [vmem:[%s3888_s21 + $0x1dc0] sm:$0xff] %v2209_v52  ;;  %3234 = vst [vmem:[%s3888_s21 + $0x1dc8] sm:$0xff] %v2210_v56  ;;  %v2235_v43 = vmul.f32 %v3862_v7, %v1199_v40  ;;  %v2236_v44 = vmul.f32 %v3864_v8, %v1200_v41  ;;  %v1201_v45 = vld [vmem:[%s3848_s6 + $0x1ea0] sm:$0xff]  ;;  %v1202_v46 = vld [vmem:[%s3848_s6 + $0x1ea8] sm:$0xff] }
 0x240   : > { %3235 = vst [vmem:[%s3888_s21 + $0x1dd0] sm:$0xff] %v2211_v57  ;;  %3236 = vst [vmem:[%s3888_s21 + $0x1dd8] sm:$0xff] %v2212_v58  ;;  %v1203_v47 = vld [vmem:[%s3848_s6 + $0x1eb0] sm:$0xff]  ;;  %v2237_v48 = vmul.f32 %v3862_v7, %v1201_v45  ;;  %v2238_v49 = vmul.f32 %v3864_v8, %v1202_v46  ;;  %v1204_v51 = vld [vmem:[%s3848_s6 + $0x1eb8] sm:$0xff] }
 0x241   : > { %3237 = vst [vmem:[%s3888_s21 + $0x1de0] sm:$0xff] %v2213_v62  ;;  %3238 = vst [vmem:[%s3888_s21 + $0x1de8] sm:$0xff] %v2214_v63  ;;  %v2239_v50 = vmul.f32 %v3862_v7, %v1203_v47  ;;  %v1205_v52 = vld [vmem:[%s3848_s6 + $0x1ec0] sm:$0xff]  ;;  %v1206_v53 = vld [vmem:[%s3848_s6 + $0x1ec8] sm:$0xff]  ;;  %v2240_v54 = vmul.f32 %v3864_v8, %v1204_v51 }
 0x242   : > { %3239 = vst [vmem:[%s3888_s21 + $0x1df0] sm:$0xff] %v2215_v0  ;;  %3240 = vst [vmem:[%s3888_s21 + $0x1df8] sm:$0xff] %v2216_v4  ;;  %v2241_v55 = vmul.f32 %v3862_v7, %v1205_v52  ;;  %v2242_v56 = vmul.f32 %v3864_v8, %v1206_v53  ;;  %v1207_v57 = vld [vmem:[%s3848_s6 + $0x1ed0] sm:$0xff]  ;;  %v1208_v58 = vld [vmem:[%s3848_s6 + $0x1ed8] sm:$0xff] }
 0x243   : > { %3241 = vst [vmem:[%s3888_s21 + $0x1e00] sm:$0xff] %v2217_v5  ;;  %3242 = vst [vmem:[%s3888_s21 + $0x1e08] sm:$0xff] %v2218_v6  ;;  %v1209_v59 = vld [vmem:[%s3848_s6 + $0x1ee0] sm:$0xff]  ;;  %v2243_v60 = vmul.f32 %v3862_v7, %v1207_v57  ;;  %v2244_v61 = vmul.f32 %v3864_v8, %v1208_v58  ;;  %v1210_v63 = vld [vmem:[%s3848_s6 + $0x1ee8] sm:$0xff] }
 0x244   : > { %3243 = vst [vmem:[%s3888_s21 + $0x1e10] sm:$0xff] %v2219_v12  ;;  %3244 = vst [vmem:[%s3888_s21 + $0x1e18] sm:$0xff] %v2220_v13  ;;  %v2245_v62 = vmul.f32 %v3862_v7, %v1209_v59  ;;  %v1211_v0 = vld [vmem:[%s3848_s6 + $0x1ef0] sm:$0xff]  ;;  %v1212_v1 = vld [vmem:[%s3848_s6 + $0x1ef8] sm:$0xff]  ;;  %v2246_v2 = vmul.f32 %v3864_v8, %v1210_v63 }
 0x245   : > { %3245 = vst [vmem:[%s3888_s21 + $0x1e20] sm:$0xff] %v2221_v14  ;;  %3246 = vst [vmem:[%s3888_s21 + $0x1e28] sm:$0xff] %v2222_v18  ;;  %v2247_v3 = vmul.f32 %v3862_v7, %v1211_v0  ;;  %v2248_v4 = vmul.f32 %v3864_v8, %v1212_v1  ;;  %v1213_v5 = vld [vmem:[%s3848_s6 + $0x1f00] sm:$0xff]  ;;  %v1214_v6 = vld [vmem:[%s3848_s6 + $0x1f08] sm:$0xff] }
 0x246   : > { %3247 = vst [vmem:[%s3888_s21 + $0x1e30] sm:$0xff] %v2223_v19  ;;  %3248 = vst [vmem:[%s3888_s21 + $0x1e38] sm:$0xff] %v2224_v20  ;;  %v1215_v9 = vld [vmem:[%s3848_s6 + $0x1f10] sm:$0xff]  ;;  %v2249_v10 = vmul.f32 %v3862_v7, %v1213_v5  ;;  %v2250_v11 = vmul.f32 %v3864_v8, %v1214_v6  ;;  %v1216_v13 = vld [vmem:[%s3848_s6 + $0x1f18] sm:$0xff] }
 0x247   : > { %3249 = vst [vmem:[%s3888_s21 + $0x1e40] sm:$0xff] %v2225_v24  ;;  %3250 = vst [vmem:[%s3888_s21 + $0x1e48] sm:$0xff] %v2226_v25  ;;  %v2251_v12 = vmul.f32 %v3862_v7, %v1215_v9  ;;  %v1217_v14 = vld [vmem:[%s3848_s6 + $0x1f20] sm:$0xff]  ;;  %v1218_v15 = vld [vmem:[%s3848_s6 + $0x1f28] sm:$0xff]  ;;  %v2252_v16 = vmul.f32 %v3864_v8, %v1216_v13 }
 0x248   : > { %3251 = vst [vmem:[%s3888_s21 + $0x1e50] sm:$0xff] %v2227_v26  ;;  %3252 = vst [vmem:[%s3888_s21 + $0x1e58] sm:$0xff] %v2228_v30  ;;  %v2253_v17 = vmul.f32 %v3862_v7, %v1217_v14  ;;  %v2254_v18 = vmul.f32 %v3864_v8, %v1218_v15  ;;  %v1219_v19 = vld [vmem:[%s3848_s6 + $0x1f30] sm:$0xff]  ;;  %v1220_v20 = vld [vmem:[%s3848_s6 + $0x1f38] sm:$0xff] }
 0x249   : > { %3253 = vst [vmem:[%s3888_s21 + $0x1e60] sm:$0xff] %v2229_v31  ;;  %3254 = vst [vmem:[%s3888_s21 + $0x1e68] sm:$0xff] %v2230_v32  ;;  %v1221_v21 = vld [vmem:[%s3848_s6 + $0x1f40] sm:$0xff]  ;;  %v2255_v22 = vmul.f32 %v3862_v7, %v1219_v19  ;;  %v2256_v23 = vmul.f32 %v3864_v8, %v1220_v20  ;;  %v1222_v25 = vld [vmem:[%s3848_s6 + $0x1f48] sm:$0xff] }
 0x24a   : > { %3255 = vst [vmem:[%s3888_s21 + $0x1e70] sm:$0xff] %v2231_v36  ;;  %3256 = vst [vmem:[%s3888_s21 + $0x1e78] sm:$0xff] %v2232_v37  ;;  %v2257_v24 = vmul.f32 %v3862_v7, %v1221_v21  ;;  %v1223_v26 = vld [vmem:[%s3848_s6 + $0x1f50] sm:$0xff]  ;;  %v1224_v27 = vld [vmem:[%s3848_s6 + $0x1f58] sm:$0xff]  ;;  %v2258_v28 = vmul.f32 %v3864_v8, %v1222_v25 }
 0x24b   : > { %3257 = vst [vmem:[%s3888_s21 + $0x1e80] sm:$0xff] %v2233_v38  ;;  %3258 = vst [vmem:[%s3888_s21 + $0x1e88] sm:$0xff] %v2234_v42  ;;  %v2259_v29 = vmul.f32 %v3862_v7, %v1223_v26  ;;  %v2260_v30 = vmul.f32 %v3864_v8, %v1224_v27  ;;  %v1225_v31 = vld [vmem:[%s3848_s6 + $0x1f60] sm:$0xff]  ;;  %v1226_v32 = vld [vmem:[%s3848_s6 + $0x1f68] sm:$0xff] }
 0x24c   : > { %3259 = vst [vmem:[%s3888_s21 + $0x1e90] sm:$0xff] %v2235_v43  ;;  %3260 = vst [vmem:[%s3888_s21 + $0x1e98] sm:$0xff] %v2236_v44  ;;  %v1227_v33 = vld [vmem:[%s3848_s6 + $0x1f70] sm:$0xff]  ;;  %v2261_v34 = vmul.f32 %v3862_v7, %v1225_v31  ;;  %v2262_v35 = vmul.f32 %v3864_v8, %v1226_v32  ;;  %v1228_v37 = vld [vmem:[%s3848_s6 + $0x1f78] sm:$0xff] }
 0x24d   : > { %3261 = vst [vmem:[%s3888_s21 + $0x1ea0] sm:$0xff] %v2237_v48  ;;  %3262 = vst [vmem:[%s3888_s21 + $0x1ea8] sm:$0xff] %v2238_v49  ;;  %v2263_v36 = vmul.f32 %v3862_v7, %v1227_v33  ;;  %v1229_v38 = vld [vmem:[%s3848_s6 + $0x1f80] sm:$0xff]  ;;  %v1230_v39 = vld [vmem:[%s3848_s6 + $0x1f88] sm:$0xff]  ;;  %v2264_v40 = vmul.f32 %v3864_v8, %v1228_v37 }
 0x24e   : > { %3263 = vst [vmem:[%s3888_s21 + $0x1eb0] sm:$0xff] %v2239_v50  ;;  %3264 = vst [vmem:[%s3888_s21 + $0x1eb8] sm:$0xff] %v2240_v54  ;;  %v2265_v41 = vmul.f32 %v3862_v7, %v1229_v38  ;;  %v2266_v42 = vmul.f32 %v3864_v8, %v1230_v39  ;;  %v1231_v43 = vld [vmem:[%s3848_s6 + $0x1f90] sm:$0xff]  ;;  %v1232_v44 = vld [vmem:[%s3848_s6 + $0x1f98] sm:$0xff] }
 0x24f   : > { %3265 = vst [vmem:[%s3888_s21 + $0x1ec0] sm:$0xff] %v2241_v55  ;;  %3266 = vst [vmem:[%s3888_s21 + $0x1ec8] sm:$0xff] %v2242_v56  ;;  %v1233_v45 = vld [vmem:[%s3848_s6 + $0x1fa0] sm:$0xff]  ;;  %v2267_v46 = vmul.f32 %v3862_v7, %v1231_v43  ;;  %v2268_v47 = vmul.f32 %v3864_v8, %v1232_v44  ;;  %v1234_v49 = vld [vmem:[%s3848_s6 + $0x1fa8] sm:$0xff] }
 0x250   : > { %3267 = vst [vmem:[%s3888_s21 + $0x1ed0] sm:$0xff] %v2243_v60  ;;  %3268 = vst [vmem:[%s3888_s21 + $0x1ed8] sm:$0xff] %v2244_v61  ;;  %v2269_v48 = vmul.f32 %v3862_v7, %v1233_v45  ;;  %v1235_v50 = vld [vmem:[%s3848_s6 + $0x1fb0] sm:$0xff]  ;;  %v1236_v51 = vld [vmem:[%s3848_s6 + $0x1fb8] sm:$0xff]  ;;  %v2270_v52 = vmul.f32 %v3864_v8, %v1234_v49 }
 0x251   : > { %3269 = vst [vmem:[%s3888_s21 + $0x1ee0] sm:$0xff] %v2245_v62  ;;  %3270 = vst [vmem:[%s3888_s21 + $0x1ee8] sm:$0xff] %v2246_v2  ;;  %v2271_v53 = vmul.f32 %v3862_v7, %v1235_v50  ;;  %v2272_v54 = vmul.f32 %v3864_v8, %v1236_v51  ;;  %v1237_v55 = vld [vmem:[%s3848_s6 + $0x1fc0] sm:$0xff]  ;;  %v1238_v56 = vld [vmem:[%s3848_s6 + $0x1fc8] sm:$0xff] }
 0x252   : > { %3271 = vst [vmem:[%s3888_s21 + $0x1ef0] sm:$0xff] %v2247_v3  ;;  %3272 = vst [vmem:[%s3888_s21 + $0x1ef8] sm:$0xff] %v2248_v4  ;;  %v1239_v57 = vld [vmem:[%s3848_s6 + $0x1fd0] sm:$0xff]  ;;  %v2273_v58 = vmul.f32 %v3862_v7, %v1237_v55  ;;  %v2274_v59 = vmul.f32 %v3864_v8, %v1238_v56  ;;  %v1240_v61 = vld [vmem:[%s3848_s6 + $0x1fd8] sm:$0xff] }
 0x253   : > { %3273 = vst [vmem:[%s3888_s21 + $0x1f00] sm:$0xff] %v2249_v10  ;;  %3274 = vst [vmem:[%s3888_s21 + $0x1f08] sm:$0xff] %v2250_v11  ;;  %v2275_v60 = vmul.f32 %v3862_v7, %v1239_v57  ;;  %v1241_v62 = vld [vmem:[%s3848_s6 + $0x1fe0] sm:$0xff]  ;;  %v1242_v63 = vld [vmem:[%s3848_s6 + $0x1fe8] sm:$0xff]  ;;  %v2276_v0 = vmul.f32 %v3864_v8, %v1240_v61 }
 0x254   : > { %3275 = vst [vmem:[%s3888_s21 + $0x1f10] sm:$0xff] %v2251_v12  ;;  %3276 = vst [vmem:[%s3888_s21 + $0x1f18] sm:$0xff] %v2252_v16  ;;  %v2277_v1 = vmul.f32 %v3862_v7, %v1241_v62  ;;  %v2278_v2 = vmul.f32 %v3864_v8, %v1242_v63  ;;  %v1243_v3 = vld [vmem:[%s3848_s6 + $0x1ff0] sm:$0xff]  ;;  %v1244_v4 = vld [vmem:[%s3848_s6 + $0x1ff8] sm:$0xff] }
 0x255   : > { %3277 = vst [vmem:[%s3888_s21 + $0x1f20] sm:$0xff] %v2253_v17  ;;  %3278 = vst [vmem:[%s3888_s21 + $0x1f28] sm:$0xff] %v2254_v18  ;;  %v2279_v5 = vmul.f32 %v3862_v7, %v1243_v3  ;;  %v2280_v6 = vmul.f32 %v3864_v8, %v1244_v4 }
 0x256   : > { %3279 = vst [vmem:[%s3888_s21 + $0x1f30] sm:$0xff] %v2255_v22  ;;  %3280 = vst [vmem:[%s3888_s21 + $0x1f38] sm:$0xff] %v2256_v23 }
 0x257   : > { %3281 = vst [vmem:[%s3888_s21 + $0x1f40] sm:$0xff] %v2257_v24  ;;  %3282 = vst [vmem:[%s3888_s21 + $0x1f48] sm:$0xff] %v2258_v28 }
 0x258   : > { %3283 = vst [vmem:[%s3888_s21 + $0x1f50] sm:$0xff] %v2259_v29  ;;  %3284 = vst [vmem:[%s3888_s21 + $0x1f58] sm:$0xff] %v2260_v30 }
 0x259   : > { %3285 = vst [vmem:[%s3888_s21 + $0x1f60] sm:$0xff] %v2261_v34  ;;  %3286 = vst [vmem:[%s3888_s21 + $0x1f68] sm:$0xff] %v2262_v35 }
 0x25a   : > { %3287 = vst [vmem:[%s3888_s21 + $0x1f70] sm:$0xff] %v2263_v36  ;;  %3288 = vst [vmem:[%s3888_s21 + $0x1f78] sm:$0xff] %v2264_v40 }
 0x25b   : > { %3289 = vst [vmem:[%s3888_s21 + $0x1f80] sm:$0xff] %v2265_v41  ;;  %3290 = vst [vmem:[%s3888_s21 + $0x1f88] sm:$0xff] %v2266_v42 }
 0x25c   : > { %3291 = vst [vmem:[%s3888_s21 + $0x1f90] sm:$0xff] %v2267_v46  ;;  %3292 = vst [vmem:[%s3888_s21 + $0x1f98] sm:$0xff] %v2268_v47 }
 0x25d   : > { %3293 = vst [vmem:[%s3888_s21 + $0x1fa0] sm:$0xff] %v2269_v48  ;;  %3294 = vst [vmem:[%s3888_s21 + $0x1fa8] sm:$0xff] %v2270_v52 }
 0x25e   : > { %3295 = vst [vmem:[%s3888_s21 + $0x1fb0] sm:$0xff] %v2271_v53  ;;  %3296 = vst [vmem:[%s3888_s21 + $0x1fb8] sm:$0xff] %v2272_v54 }
 0x25f   : > { %3297 = vst [vmem:[%s3888_s21 + $0x1fc0] sm:$0xff] %v2273_v58  ;;  %3298 = vst [vmem:[%s3888_s21 + $0x1fc8] sm:$0xff] %v2274_v59 }
 0x260   : > { %3299 = vst [vmem:[%s3888_s21 + $0x1fd0] sm:$0xff] %v2275_v60  ;;  %3300 = vst [vmem:[%s3888_s21 + $0x1fd8] sm:$0xff] %v2276_v0 }
 0x261   : > { %3301 = vst [vmem:[%s3888_s21 + $0x1fe0] sm:$0xff] %v2277_v1  ;;  %3302 = vst [vmem:[%s3888_s21 + $0x1fe8] sm:$0xff] %v2278_v2 }
 0x262   : > { %3303 = vst [vmem:[%s3888_s21 + $0x1ff0] sm:$0xff] %v2279_v5  ;;  %3304 = vst [vmem:[%s3888_s21 + $0x1ff8] sm:$0xff] %v2280_v6 }
 0x263   : > { %3598 = shalt.err (!%p3595_p9)
}
 0x264   : > { %s3599_s16 = scalar_lea.hbm %s6935_s28, 131072  ;;  %s3603_s6 = scalar_lea.hbm %s6997_s2, 524288 }
 0x265   : > { %p3600_p5 = scmp.ne.s32.totalorder %s6935_s28, %s3599_s16  ;;  %p3604_p3 = scmp.lt.u32.totalorder %s6935_s28, %s6997_s2 }
 0x266   : > { %p3605_p12 = scmp.lt.u32.totalorder %s3603_s6, %s3599_s16  ;;  %p3607_p13 = scmp.lt.u32.totalorder %s3599_s16, %s6935_s28 }
 0x267   : > { %p3601_p10 = pnand %p3600_p5, %p7009_p2 }
 0x268   : > { %p3606_p8 = por %p3605_p12, %p3604_p3 }
 0x269   : > { %p3602_p1 = pneg %p3601_p10 }
 0x26a   : > { %p3608_p11 = por %p3607_p13, %p3606_p8 }
 0x26c   : > { %p3609_p4 = pnand %p3608_p11, %p3602_p1 }
 0x26e   : > { %3612 = shalt.err (!%p3609_p4)
}
 0x26f   : > { %s3678_s19 = smov 256   ;;  %s3679_s21 = smov 16  }
 0x270   : > { %3458 = dma.vmem_to_hbm [thread:$0]  (%p7009_p2), %s6937_s30, 131072, %s6935_s28, %s3306_s29, %s3678_s19, %s3678_s19, %s3679_s21  }
 0x271 PF: > { %p3472_p6 = scmp.ge.s32.totalorder %s3671_s14, 2  ;;  %s3337_s26 = sand.u32 1, %s3651_s9  }
 0x272   : > { %p7010_p7 = scmp.ne.s32.totalorder %s7003_s24, 0  ;;  %s3338_s12 = scalar_lea.sflag [#allocation4], %s3337_s26 }
 0x274   : > { %p3468_p0 = pnand %p3472_p6, %p7010_p7 }
 0x276   : > { %3646 = dma.done.wait (!%p3468_p0), %s3338_s12, 131072  }
 0x277   : > { %3648 = vsyncadd (!%p3468_p0), %s3338_s12, 4294836224  ;;  %s21_s14 = sadd.s32 1, %s3671_s14   ;;  %s7011_s9 = smov %s3655_s10 }
 0x278   : > { %p18_p9 = scmp.ge.s32.totalorder %s21_s14, 6   ;;  %s7012_s10 = smov %s3659_s11 }
 0x279   : > { %s7013_s11 = smov %s3751_s23  ;;  %s7014_s12 = smov %s3667_s13 }
 0x27a   : > { %s7015_s13 = smov %s7017_s17  ;;  %20 = sbr.rel (!%p18_p9) target bundleno = 8 (0x8), region = 86 }
 0x281   :  { %3343 = vsyncpa [#allocation3], 1 }
 0x282   :  { %3345 = vsyncpa [#allocation3 + $0x1], 1 }
 0x283   :  { %3346 = vsyncpa [#allocation6], 1 }
 0x284   :  { %3348 = vsyncpa [#allocation6 + $0x1], 1 }
 0x285   :  { %3349 = vsyncpa [#allocation4], 1 }
 0x286   :  { %3351 = vsyncpa [#allocation4 + $0x1], 1 }

</bundles_post_ra>
